<compile_context>
chip_gen: v6e
topology: v6e:2x2x1
jax: 0.10.0
libtpu: 0.0.40
codegen_flags: <defaults>
</compile_context>

<pallas_src>
import functools

import numpy as np
import jax
import jax.numpy as jnp
from jax import lax
from jax.experimental import pallas as pl
from jax.experimental.pallas import tpu as pltpu

HASH_BITS = 14
HASH_SIZE = 2 ** HASH_BITS          # 16384
CELL_SIZE = 1.0
DIMENSIONS = 4

SUB_LO = 64                         # rows per hi-bucket (lo-select width)
LO_BITS = 6                         # log2(SUB_LO)
NUM_HI = HASH_SIZE // SUB_LO        # 256 hi-buckets == MXU contraction depth

_C1 = 2246822507                    # 0x85EBCA6B
_C2 = 3266489909                    # 0xC2B2AE35
_C1_LO = _C1 & 0xFFFF               # 16-bit limbs of C1 for the widening multiply
_C1_HI = (_C1 >> 16) & 0xFFFF
_C2_I32 = _C2 - (1 << 32)           # same 32-bit pattern as C2, as an int32 literal


# ----------------------- exact 32-bit hash helpers ---------------------------

def _srl(x, n):
    """Logical right shift on int32 (arithmetic shift + mask of the sign-extended bits)."""
    return (x >> n) & jnp.int32((1 << (32 - n)) - 1)


def _hash_idx(ix, iy):
    """int32 grid coords -> hash index in [0, HASH_SIZE); bit-exact vs the int64 torch hash.

    Only the low 14 bits of the final 64-bit value are needed.  They depend on the low 30
    bits of m + iy*C2, where m = t ^ (t >> 13) and t = (ix ^ (ix >> 16)) * C1.  Because ix
    is a sign-extended 32-bit coordinate, a = ix ^ (ix >> 16) is a non-negative 31-bit
    value, so t < 2**63 and a carry-free 16-bit-limb multiply reproduces bits 0..44 of t
    exactly — everything else is wrapping 32-bit arithmetic.
    """
    a = ix ^ (ix >> 16)                                     # h ^= h >> 16  (non-negative)
    a0 = a & jnp.int32(0xFFFF)
    a1 = a >> 16                                            # a >= 0: arithmetic == logical
    ll = a0 * jnp.int32(_C1_LO)                             # h *= C1 via 16-bit limbs
    mid = a0 * jnp.int32(_C1_HI) + a1 * jnp.int32(_C1_LO)   # < 2**32, carry-free
    hh = a1 * jnp.int32(_C1_HI)
    t_lo = ll + (mid << 16)                                 # low 32 bits of t
    t_hi = hh + _srl(mid + _srl(ll, 16), 16)                # bits 32..44 of t (all consumed)

    s_lo = _srl(t_lo, 13) | (t_hi << 19)                    # low 32 bits of t >> 13
    m_lo = t_lo ^ s_lo                                      # h ^= h >> 13  (low 32 bits)

    h_lo = m_lo + iy * jnp.int32(_C2_I32)                   # h += iy * C2  (low 32 bits)
    r = h_lo ^ _srl(h_lo, 16)                               # h ^= h >> 16  (bits 0..13 ok)
    # power-of-two hash_size: two's-complement masking == torch's floored int64 modulo.
    return r & jnp.int32(HASH_SIZE - 1)


# --------------------------------- kernel ------------------------------------

def hashgrid_kernel(pos_ref, g1_ref, g2_ref, g3_ref, out_ref):
    # pos_ref      : (2, BN) f32       row 0 = x, row 1 = y
    # g{1,2,3}_ref : (D*64, 256) bf16  VMEM-resident table planes;
    #                g1+g2+g3 == f32 table with plane[d*64 + s, b] = grid[b*64 + s, d]
    # out_ref      : (D, BN) f32
    block_n = pos_ref.shape[1]
    dims = out_ref.shape[0]
    dk = dims * SUB_LO

    # Quantize both coordinate rows together, then hash on lane-dense (1, BN) rows.
    ixy = jnp.floor(pos_ref[...] / CELL_SIZE).astype(jnp.int32)           # (2, BN)
    idx = _hash_idx(ixy[0:1, :], ixy[1:2, :])                             # (1, BN) in [0, 16384)
    idx_hi = idx >> LO_BITS                                               # hi bucket   0..255
    idx_lo = idx & jnp.int32(SUB_LO - 1)                                  # row in bucket 0..63

    # One iota feeds both one-hots (NUM_HI == D*SUB_LO == 256 here).
    row = lax.broadcasted_iota(jnp.int32, (NUM_HI, block_n), 0)           # (256, BN)
    oh_hi = (row == idx_hi).astype(jnp.bfloat16)                          # (256, BN) bucket 1-hot
    row_lo = row if dk == NUM_HI else lax.broadcasted_iota(jnp.int32, (dk, block_n), 0)
    oh_lo = ((row_lo & jnp.int32(SUB_LO - 1)) == idx_lo).astype(jnp.float32)   # (D*64, BN)

    # Stage 1 (MXU): gather the selected 64-row bucket for every point.  Three bf16 passes
    # accumulated in f32 reconstruct the f32 table rows exactly (rhs is an exact 0/1 mask).
    partial = jnp.dot(g1_ref[...], oh_hi, preferred_element_type=jnp.float32)
    partial = partial + jnp.dot(g2_ref[...], oh_hi, preferred_element_type=jnp.float32)
    partial = partial + jnp.dot(g3_ref[...], oh_hi, preferred_element_type=jnp.float32)

    # Stage 2 (VPU): keep the single row within each bucket, regroup (D*64,BN)->(D,64,BN)
    # (pure sublane-tile regrouping, no data movement), reduce over the 64 rows, and make
    # one lane-dense (D, BN) store.  No per-d slices, no concatenate.
    sel = (partial * oh_lo).reshape(dims, SUB_LO, block_n)
    out_ref[...] = jnp.sum(sel, axis=1)


# -------------------------------- wrapper ------------------------------------

@functools.partial(jax.jit, static_argnames=("block_n",))
def hashgrid2d_forward(positions, grid, *, block_n=2048):
    """positions: (N, 2) f32;  grid: (HASH_SIZE, dimensions) f32  ->  (N, dimensions)."""
    n = positions.shape[0]
    hs, dims = grid.shape
    assert hs == HASH_SIZE and hs == SUB_LO * NUM_HI
    assert block_n >= 128 and (block_n & (block_n - 1)) == 0     # pow2 (multiple of 128)

    # Keep >= 2 (and even) grid steps when there is enough work so the "parallel" axis
    # shards across both v7x TensorCores; at large N this leaves block_n untouched.
    bn = block_n
    while bn > 128 and n <= bn:
        bn //= 2
    n_blocks = max(1, (n + bn - 1) // bn)
    if n_blocks > 1 and n_blocks % 2 == 1:
        n_blocks += 1
    n_pad = n_blocks * bn

    pos = positions.astype(jnp.float32)
    if n_pad != n:
        pos = jnp.pad(pos, ((0, n_pad - n), (0, 0)))
    # Lane-dense end-to-end: the kernel works on (2, N) / (D, N).  These transposes are
    # interface plumbing only; callers that accept transposed layouts should skip them.
    pos_t = pos.T                                                 # (2, n_pad)

    # Table relayout + exact 3-plane bf16 split (done once per call; hoist and reuse for a
    # fixed grid):  plane[d*64 + s, b] = grid[b*64 + s, d]  -> (D*64, 256), 384 KiB total.
    g = grid.astype(jnp.float32).reshape(NUM_HI, SUB_LO, dims)
    g = g.transpose(2, 1, 0).reshape(dims * SUB_LO, NUM_HI)
    g1 = g.astype(jnp.bfloat16)
    r1 = g - g1.astype(jnp.float32)
    g2 = r1.astype(jnp.bfloat16)
    g3 = (r1 - g2.astype(jnp.float32)).astype(jnp.bfloat16)      # g == g1 + g2 + g3 exactly

    tbl_spec = pl.BlockSpec((dims * SUB_LO, NUM_HI), lambda i: (0, 0))   # VMEM-resident
    out_t = pl.pallas_call(
        hashgrid_kernel,
        out_shape=jax.ShapeDtypeStruct((dims, n_pad), jnp.float32),
        grid=(n_pad // bn,),
        in_specs=[
            pl.BlockSpec((2, bn), lambda i: (0, i)),
            tbl_spec, tbl_spec, tbl_spec,
        ],
        out_specs=pl.BlockSpec((dims, bn), lambda i: (0, i)),
        compiler_params=pltpu.CompilerParams(
            dimension_semantics=("parallel",)),
    )(pos_t, g1, g2, g3)

    return out_t.T[:n]                                            # (N, dims)


# ---------------------------------- main -------------------------------------

if __name__ == "__main__":
    key = jax.random.PRNGKey(0)
    k_grid, k_pos = jax.random.split(key)

    # Parameter: torch.randn(hash_size, dimensions) * 0.01 (deterministic init here).
    grid_param = jax.random.normal(k_grid, (HASH_SIZE, DIMENSIONS), jnp.float32) * 0.01

    n = 1000   # deliberately NOT a multiple of the block size -> exercises the padded tail
    positions = jax.random.uniform(k_pos, (n, 2), jnp.float32, minval=-8.0, maxval=8.0)

    out = hashgrid2d_forward(positions, grid_param)
    out = jax.block_until_ready(out)

    # int64 numpy reference reproducing the torch module semantics.
    pos_np = np.asarray(positions)
    grid_np = np.asarray(grid_param)
    ix = np.floor(pos_np[:, 0] / CELL_SIZE).astype(np.int64)
    iy = np.floor(pos_np[:, 1] / CELL_SIZE).astype(np.int64)
    h = ix.copy()
    h ^= h >> 16
    h *= np.int64(_C1)
    h ^= h >> 13
    h += iy * np.int64(_C2)
    h ^= h >> 16
    ref = grid_np[h % HASH_SIZE]

    assert out.shape == (n, DIMENSIONS)
    assert np.allclose(np.asarray(out), ref, rtol=1e-5, atol=1e-7), "mismatch vs reference"
    print("KERNEL_OK")
</pallas_src>

<mosaic_0001>
module attributes {stable_mosaic.version = 11 : i64} {
  func.func @hashgrid_kernel(%arg0: i32, %arg1: memref<2x512xf32, #tpu.memory_space<vmem>>, %arg2: memref<256x256xbf16, #tpu.memory_space<vmem>>, %arg3: memref<256x256xbf16, #tpu.memory_space<vmem>>, %arg4: memref<256x256xbf16, #tpu.memory_space<vmem>>, %arg5: memref<4x512xf32, #tpu.memory_space<vmem>>) attributes {dimension_semantics = [#tpu.dimension_semantics<parallel>], iteration_bounds = array<i64: 2>, scalar_prefetch = 0 : i64, scratch_operands = 0 : i64, tpu.core_type = #tpu.core_type<tc>, window_params = [{transform_indices = @transform_0, window_bounds = array<i64: 2, 512>}, {pipeline_mode = #tpu.pipeline_mode<synchronous>, transform_indices = @transform_1, window_bounds = array<i64: 256, 256>}, {pipeline_mode = #tpu.pipeline_mode<synchronous>, transform_indices = @transform_2, window_bounds = array<i64: 256, 256>}, {pipeline_mode = #tpu.pipeline_mode<synchronous>, transform_indices = @transform_3, window_bounds = array<i64: 256, 256>}, {transform_indices = @transform_4, window_bounds = array<i64: 4, 512>}]} {
    %c0 = arith.constant 0 : index
    %c0_0 = arith.constant 0 : index
    %0 = vector.load %arg1[%c0, %c0_0] : memref<2x512xf32, #tpu.memory_space<vmem>>, vector<2x512xf32>
    %cst = arith.constant 1.000000e+00 : f32
    %1 = vector.broadcast %cst : f32 to vector<2x512xf32>
    %2 = arith.divf %0, %1 : vector<2x512xf32>
    %3 = math.floor %2 : vector<2x512xf32>
    %4 = arith.fptosi %3 : vector<2x512xf32> to vector<2x512xi32>
    %5 = vector.extract_strided_slice %4 {offsets = [0, 0], sizes = [1, 512], strides = [1, 1]} : vector<2x512xi32> to vector<1x512xi32>
    %6 = vector.extract_strided_slice %4 {offsets = [1, 0], sizes = [1, 512], strides = [1, 1]} : vector<2x512xi32> to vector<1x512xi32>
    %c16_i32 = arith.constant 16 : i32
    %7 = vector.broadcast %c16_i32 : i32 to vector<1x512xi32>
    %8 = arith.shrsi %5, %7 : vector<1x512xi32>
    %9 = arith.xori %5, %8 : vector<1x512xi32>
    %c65535_i32 = arith.constant 65535 : i32
    %10 = vector.broadcast %c65535_i32 : i32 to vector<1x512xi32>
    %11 = arith.andi %9, %10 : vector<1x512xi32>
    %c16_i32_1 = arith.constant 16 : i32
    %12 = vector.broadcast %c16_i32_1 : i32 to vector<1x512xi32>
    %13 = arith.shrsi %9, %12 : vector<1x512xi32>
    %c51819_i32 = arith.constant 51819 : i32
    %14 = vector.broadcast %c51819_i32 : i32 to vector<1x512xi32>
    %15 = arith.muli %11, %14 : vector<1x512xi32>
    %c34283_i32 = arith.constant 34283 : i32
    %16 = vector.broadcast %c34283_i32 : i32 to vector<1x512xi32>
    %17 = arith.muli %11, %16 : vector<1x512xi32>
    %c51819_i32_2 = arith.constant 51819 : i32
    %18 = vector.broadcast %c51819_i32_2 : i32 to vector<1x512xi32>
    %19 = arith.muli %13, %18 : vector<1x512xi32>
    %20 = arith.addi %17, %19 : vector<1x512xi32>
    %c34283_i32_3 = arith.constant 34283 : i32
    %21 = vector.broadcast %c34283_i32_3 : i32 to vector<1x512xi32>
    %22 = arith.muli %13, %21 : vector<1x512xi32>
    %c16_i32_4 = arith.constant 16 : i32
    %23 = vector.broadcast %c16_i32_4 : i32 to vector<1x512xi32>
    %24 = arith.shli %20, %23 : vector<1x512xi32>
    %25 = arith.addi %15, %24 : vector<1x512xi32>
    %c16_i32_5 = arith.constant 16 : i32
    %26 = vector.broadcast %c16_i32_5 : i32 to vector<1x512xi32>
    %27 = arith.shrsi %15, %26 : vector<1x512xi32>
    %c65535_i32_6 = arith.constant 65535 : i32
    %28 = vector.broadcast %c65535_i32_6 : i32 to vector<1x512xi32>
    %29 = arith.andi %27, %28 : vector<1x512xi32>
    %30 = arith.addi %20, %29 : vector<1x512xi32>
    %c16_i32_7 = arith.constant 16 : i32
    %31 = vector.broadcast %c16_i32_7 : i32 to vector<1x512xi32>
    %32 = arith.shrsi %30, %31 : vector<1x512xi32>
    %c65535_i32_8 = arith.constant 65535 : i32
    %33 = vector.broadcast %c65535_i32_8 : i32 to vector<1x512xi32>
    %34 = arith.andi %32, %33 : vector<1x512xi32>
    %35 = arith.addi %22, %34 : vector<1x512xi32>
    %c13_i32 = arith.constant 13 : i32
    %36 = vector.broadcast %c13_i32 : i32 to vector<1x512xi32>
    %37 = arith.shrsi %25, %36 : vector<1x512xi32>
    %c524287_i32 = arith.constant 524287 : i32
    %38 = vector.broadcast %c524287_i32 : i32 to vector<1x512xi32>
    %39 = arith.andi %37, %38 : vector<1x512xi32>
    %c19_i32 = arith.constant 19 : i32
    %40 = vector.broadcast %c19_i32 : i32 to vector<1x512xi32>
    %41 = arith.shli %35, %40 : vector<1x512xi32>
    %42 = arith.ori %39, %41 : vector<1x512xi32>
    %43 = arith.xori %25, %42 : vector<1x512xi32>
    %c-1028477387_i32 = arith.constant -1028477387 : i32
    %44 = vector.broadcast %c-1028477387_i32 : i32 to vector<1x512xi32>
    %45 = arith.muli %6, %44 : vector<1x512xi32>
    %46 = arith.addi %43, %45 : vector<1x512xi32>
    %c16_i32_9 = arith.constant 16 : i32
    %47 = vector.broadcast %c16_i32_9 : i32 to vector<1x512xi32>
    %48 = arith.shrsi %46, %47 : vector<1x512xi32>
    %c65535_i32_10 = arith.constant 65535 : i32
    %49 = vector.broadcast %c65535_i32_10 : i32 to vector<1x512xi32>
    %50 = arith.andi %48, %49 : vector<1x512xi32>
    %51 = arith.xori %46, %50 : vector<1x512xi32>
    %c16383_i32 = arith.constant 16383 : i32
    %52 = vector.broadcast %c16383_i32 : i32 to vector<1x512xi32>
    %53 = arith.andi %51, %52 : vector<1x512xi32>
    %c6_i32 = arith.constant 6 : i32
    %54 = vector.broadcast %c6_i32 : i32 to vector<1x512xi32>
    %55 = arith.shrsi %53, %54 : vector<1x512xi32>
    %c63_i32 = arith.constant 63 : i32
    %56 = vector.broadcast %c63_i32 : i32 to vector<1x512xi32>
    %57 = arith.andi %53, %56 : vector<1x512xi32>
    %58 = tpu.iota {dimensions = array<i32: 0>} : vector<256x512xi32>
    %59 = vector.broadcast %55 : vector<1x512xi32> to vector<256x512xi32>
    %60 = arith.cmpi eq, %58, %59 : vector<256x512xi32>
    %61 = arith.extui %60 : vector<256x512xi1> to vector<256x512xi32>
    %62 = arith.sitofp %61 : vector<256x512xi32> to vector<256x512xf32>
    %63 = arith.truncf %62 : vector<256x512xf32> to vector<256x512xbf16>
    %c63_i32_11 = arith.constant 63 : i32
    %64 = vector.broadcast %c63_i32_11 : i32 to vector<256x512xi32>
    %65 = arith.andi %58, %64 : vector<256x512xi32>
    %66 = vector.broadcast %57 : vector<1x512xi32> to vector<256x512xi32>
    %67 = arith.cmpi eq, %65, %66 : vector<256x512xi32>
    %68 = arith.extui %67 : vector<256x512xi1> to vector<256x512xi32>
    %69 = arith.sitofp %68 : vector<256x512xi32> to vector<256x512xf32>
    %c0_12 = arith.constant 0 : index
    %c0_13 = arith.constant 0 : index
    %70 = vector.load %arg2[%c0_12, %c0_13] : memref<256x256xbf16, #tpu.memory_space<vmem>>, vector<256x256xbf16>
    %cst_14 = arith.constant dense<0.000000e+00> : vector<256x512xf32>
    %71 = tpu.matmul %70, %63, %cst_14 {dimension_numbers = #tpu.dot_dimension_numbers<[1], [0], [0], [1], [0, 0, 1, 1], [], []>} : vector<256x256xbf16>, vector<256x512xbf16>, vector<256x512xf32> -> vector<256x512xf32>
    %c0_15 = arith.constant 0 : index
    %c0_16 = arith.constant 0 : index
    %72 = vector.load %arg3[%c0_15, %c0_16] : memref<256x256xbf16, #tpu.memory_space<vmem>>, vector<256x256xbf16>
    %cst_17 = arith.constant dense<0.000000e+00> : vector<256x512xf32>
    %73 = tpu.matmul %72, %63, %cst_17 {dimension_numbers = #tpu.dot_dimension_numbers<[1], [0], [0], [1], [0, 0, 1, 1], [], []>} : vector<256x256xbf16>, vector<256x512xbf16>, vector<256x512xf32> -> vector<256x512xf32>
    %74 = arith.addf %71, %73 : vector<256x512xf32>
    %c0_18 = arith.constant 0 : index
    %c0_19 = arith.constant 0 : index
    %75 = vector.load %arg4[%c0_18, %c0_19] : memref<256x256xbf16, #tpu.memory_space<vmem>>, vector<256x256xbf16>
    %cst_20 = arith.constant dense<0.000000e+00> : vector<256x512xf32>
    %76 = tpu.matmul %75, %63, %cst_20 {dimension_numbers = #tpu.dot_dimension_numbers<[1], [0], [0], [1], [0, 0, 1, 1], [], []>} : vector<256x256xbf16>, vector<256x512xbf16>, vector<256x512xf32> -> vector<256x512xf32>
    %77 = arith.addf %74, %76 : vector<256x512xf32>
    %78 = arith.mulf %77, %69 : vector<256x512xf32>
    %79 = vector.shape_cast %78 : vector<256x512xf32> to vector<4x64x512xf32>
    %cst_21 = arith.constant dense<0.000000e+00> : vector<4x512xf32>
    %80 = vector.multi_reduction <add>, %79, %cst_21 [1] : vector<4x64x512xf32> to vector<4x512xf32>
    %c0_22 = arith.constant 0 : index
    %c0_23 = arith.constant 0 : index
    %81 = vector.load %arg5[%c0_22, %c0_23] : memref<4x512xf32, #tpu.memory_space<vmem>>, vector<4x512xf32>
    tpu.vector_store %arg5[%c0_22, %c0_23], %80 {strides = array<i32>} : memref<4x512xf32, #tpu.memory_space<vmem>>, vector<4x512xf32>,
    return
  }
  func.func @transform_0(%arg0: i32) -> (i32, i32) {
    %c0_i32 = arith.constant 0 : i32
    %c0_i32_0 = arith.constant 0 : i32
    return %c0_i32, %arg0 : i32, i32
  }
  func.func @transform_1(%arg0: i32) -> (i32, i32) {
    %c0_i32 = arith.constant 0 : i32
    %c0_i32_0 = arith.constant 0 : i32
    %c0_i32_1 = arith.constant 0 : i32
    return %c0_i32, %c0_i32_0 : i32, i32
  }
  func.func @transform_2(%arg0: i32) -> (i32, i32) {
    %c0_i32 = arith.constant 0 : i32
    %c0_i32_0 = arith.constant 0 : i32
    %c0_i32_1 = arith.constant 0 : i32
    return %c0_i32, %c0_i32_0 : i32, i32
  }
  func.func @transform_3(%arg0: i32) -> (i32, i32) {
    %c0_i32 = arith.constant 0 : i32
    %c0_i32_0 = arith.constant 0 : i32
    %c0_i32_1 = arith.constant 0 : i32
    return %c0_i32, %c0_i32_0 : i32, i32
  }
  func.func @transform_4(%arg0: i32) -> (i32, i32) {
    %c0_i32 = arith.constant 0 : i32
    %c0_i32_0 = arith.constant 0 : i32
    return %c0_i32, %arg0 : i32, i32
  }
}

</mosaic_0001>

<bundles_post_ra>
// kernel: hashgrid2d_forward.1
= control target key start
LH: loop header
LB: loop body
LE: loop exit
PB: predicated region body
PF: predicated region fallthrough
CT: control target
= control target key end

     0   :  { %9 = vsyncpa [#allocation3], 0  ;;  %s8108_s0 = inlined_call_operand.vmem [shape: f32[2,1024], index: 0, kind: input, shape index: {}]   ;;  %s8109_s1 = inlined_call_operand.vmem [shape: bf16[256,256], index: 1, kind: input, shape index: {}]   ;;  %s8110_s2 = inlined_call_operand.vmem [shape: bf16[256,256], index: 2, kind: input, shape index: {}]   ;;  %s8111_s3 = inlined_call_operand.vmem [shape: bf16[256,256], index: 3, kind: input, shape index: {}]   ;;  %s8112_s4 = inlined_call_operand.hbm [shape: f32[4,1024], index: 4, kind: output, shape index: {}]  }
   0x1   :  { %11 = vsyncpa [#allocation3 + $0x1], 0  ;;  %s4550_s15 = smov 0   ;;  %s4552_s16 = smov 0  }
   0x2   :  { %s4554_s17 = smov 0   ;;  %s4556_s18 = smov 0  }
   0x3 LB: > { %s4571_s19 = sadd.s32 4294967295, %s4520_s18   ;;  %s3519_s20 = sadd.s32 4294967294, %s4520_s18   ;;  %s4520_s18 = sphi %s4556_s18, %s9268_s18   ;;  %s4516_s17 = sphi %s4554_s17, %s9267_s17   ;;  %s4512_s16 = sphi %s4552_s16, %s9266_s16   ;;  %s4508_s15 = sphi %s4550_s15, %s9265_s15  }
   0x4   : > { %s4575_s21 = sadd.s32 1, %s4520_s18   ;;  %s113_s22 = sadd.s32 1, %s4516_s17 }
   0x5   : > { %s110_s23 = ssub.s32 %s4520_s18, %s4575_s21  ;;  %p123_p0 = scmp.ne.s32.totalorder %s4516_s17, %s4512_s16 }
   0x6   : > { %p111_p1 = scmp.eq.s32.totalorder %s110_s23, 0  ;;  %p124_p2 = scmp.eq.s32.totalorder %s4571_s19, 1 }
   0x7   : > { %p129_p3 = scmp.ne.s32.totalorder %s4512_s16, %s4508_s15  ;;  %p130_p4 = scmp.eq.s32.totalorder %s3519_s20, 1 }
   0x8   : > { %s4586_s24 = scalar_select %p111_p1, %s4516_s17, %s113_s22  }
   0x9   : > { %p4588_p5 = por %p124_p2, %p123_p0  ;;  %p4592_p6 = por %p130_p4, %p129_p3 }
   0xa   : > { %p3522_p7 = scmp.ge.s32.totalorder %s4520_s18, 1  ;;  %p166_p8 = scmp.lt.s32.totalorder %s4520_s18, 3 }
   0xc   : > { %p167_p9 = pnand %p3522_p7, %p166_p8 }
   0xe   : > { %170 = sbr.rel (%p167_p9) target bundleno = 760 (0x2f8), region = 36 }
  0x13   : > { %s3524_s27 = sshll.u32 %s4571_s19, 2  ;;  %v4318_v0 = vld [vmem:[%s8110_s2 + $0x4] ss:$8 sps:$4 sm:$0xff]   ;;  %v234_v26 = vlaneseq  ;;  %v4522_v54 = vmov 1.0|1.0   ;;  %v8284_v55 = vmov 0 }
  0x14   : > { %p193_p10 = scmp.lt.s32.totalorder %s3524_s27, 7  ;;  %1451 = vmatprep.mubr.bf16.mxu0 %v4318_v0  ;;  %1644 = vmatprep.mubr.bf16.mxu1 %v4318_v0  ;;  %v8295_v61 = vmov 0  ;;  %v8299_v0 = vmov 0  ;;  %v4348_v53 = vld [vmem:[%s8110_s2 + $0xa0] ss:$8 sps:$4 sm:$0xff]   ;;  %s189_s11 = sand.u32 1, %s4512_s16  }
  0x15   : > { %v4605_v29 = vshrl.u32 %v234_v26, 7  ;;  %v8344_v26 = vmov 0  ;;  %v4370_v58 = vld [vmem:[%s8109_s1 + $0x24] ss:$8 sps:$4 sm:$0xff]   ;;  %v4372_v59 = vld [vmem:[%s8109_s1 + $0x20] ss:$8 sps:$4 sm:$0xff]  }
  0x16   : > { %s9270_s27 = smov (!%p193_p10, %s3524_s27), 7  ;;  %v4373_v60 = vld [vmem:[%s8109_s1 + $0x34] ss:$8 sps:$4 sm:$0xff]   ;;  %s3523_s12 = sshll.u32 %s189_s11, 4 }
  0x17   : > { %s3525_s30 = sshll.u32 %s9270_s27, 1  ;;  %8272 = vst [vmem:[#allocation5_spill] sm:$0xff] %v4605_v29  ;;  %v273_v32 = vsub.s32 2, %v4605_v29  ;;  %v281_v33 = vsub.s32 6, %v4605_v29  ;;  %v4610_v34 = vsub.s32 0, %v4605_v29  ;;  %v277_v35 = vsub.s32 4, %v4605_v29 }
  0x18   : > { %s196_s7 = scalar_lea.vmem %s8108_s0, %s3525_s30  ;;  %v4616_v38 = vadd.s32 112, %v4605_v29  ;;  %v4619_v39 = vadd.s32 120, %v4605_v29  ;;  %v4638_v49 = vadd.s32 96, %v4605_v29  ;;  %v4641_v50 = vadd.s32 104, %v4605_v29  ;;  %s4272_s13 = sshll.u32 %s4571_s19, 8 }
  0x19   : > { %v199_v1 = vld [vmem:[%s196_s7] sm:$0xff]  ;;  %8273 = vst [vmem:[#allocation6_spill] sm:$0xff] %v4610_v34  ;;  %v4681_v56 = vadd.s32 80, %v4605_v29  ;;  %v4684_v57 = vadd.s32 88, %v4605_v29  ;;  %v4731_v62 = vadd.s32 64, %v4605_v29  ;;  %v4734_v63 = vadd.s32 72, %v4605_v29  ;;  %s8067_s27 = scalar_lea.hbm %s8112_s4, %s4272_s13 }
  0x1a   : > { %v200_v2 = vfloor.f32 %v199_v1  ;;  %8275 = vst [vmem:[#allocation8_spill] sm:$0xff] %v4616_v38  ;;  %8276 = vst [vmem:[#allocation9_spill] sm:$0xff] %v4619_v39  ;;  %v8301_v1 = vmov 0  ;;  %s191_s14 = scalar_lea.vmem [#allocation2], %s3523_s12  ;;  %s3446_s19 = scalar_lea.sflag [#allocation3], %s189_s11 }
  0x1b   : > { %8280 = vst [vmem:[#allocation13_spill] sm:$0xff] %v4638_v49  ;;  %8281 = vst [vmem:[#allocation14_spill] sm:$0xff] %v4641_v50  ;;  %s3460_s20 = sshll.u32 %s191_s14, 4  ;;  %s4524_s29 = smov [#allocation2]   ;;  %s8069_s20 = int_to_ptr.vmem [resolvable:$true] %s3460_s20 }
  0x1c   : > { %v4273_v3 = vtrunc.f32 %v200_v2  ;;  %8287 = vst [vmem:[#allocation16_spill] sm:$0xff] %v4681_v56  ;;  %8288 = vst [vmem:[#allocation17_spill] sm:$0xff] %v4684_v57  ;;  %v8303_v2 = vmov 0  ;;  %s4460_s28 = scalar_lea.vmem %s8069_s20, 256  ;;  %s4464_s30 = sshll.u32 %s4524_s29, 4  ;;  %s4465_s30 = int_to_ptr.vmem [resolvable:$false] %s4464_s30 }
  0x1d   : > { %8297 = vst [vmem:[#allocation18_spill] sm:$0xff] %v4731_v62  ;;  %8298 = vst [vmem:[#allocation19_spill] sm:$0xff] %v4734_v63  ;;  %p4461_p11 = scmp.ne.s32.totalorder %s8069_s20, %s4460_s28  ;;  %s4466_s5 = scalar_lea.vmem %s4465_s30, 512 }
  0x1e   : > { %v4274_v4 = vcvt.f32.s32 %v4273_v3  ;;  %v8305_v3 = vmov 0  ;;  %p4467_p0 = scmp.lt.s32.totalorder %s8069_s20, %s4465_s30  ;;  %p4468_p1 = scmp.lt.s32.totalorder %s4466_s5, %s4460_s28 }
  0x1f   : > { %p4462_p12 = pnand %p4461_p11, %p4588_p5 }
  0x20   : > { %v202_v5 = vshra.s32 %v4274_v4, 16  ;;  %v224_v21 = vmul.u32 3266489909, %v4274_v4  ;;  %p4469_p2 = por %p4468_p1, %p4467_p0 }
  0x21   : > { %p4463_p13 = pneg %p4462_p12 }
  0x22   : > { %v203_v6 = vxor.u32 %v4274_v4, %v202_v5  ;;  %v3529_v24 = vrot.slane %v224_v21, 9  ;;  %v4781_v4 = vadd.s32 48, %v4605_v29  ;;  %v4784_v5 = vadd.s32 56, %v4605_v29 }
  0x23   : > { %v8335_v21 = vmov 0  ;;  %p4470_p3 = pnand %p4469_p2, %p4463_p13 }
  0x24   : > { %v204_v7 = vand.u32 65535, %v203_v6  ;;  %v205_v8 = vshra.s32 %v203_v6, 16  ;;  %8307 = vst [vmem:[#allocation20_spill] sm:$0xff] %v4781_v4  ;;  %8308 = vst [vmem:[#allocation21_spill] sm:$0xff] %v4784_v5  ;;  %v8309_v6 = vmov 0 }
  0x26   : > { %v206_v9 = vmul.u32 51819, %v204_v7  ;;  %v207_v10 = vmul.u32 34283, %v204_v7  ;;  %v8311_v7 = vmov 0 }
  0x27   : > { %v208_v11 = vmul.u32 51819, %v205_v8  ;;  %v210_v14 = vmul.u32 34283, %v205_v8  ;;  %v8313_v8 = vmov 0 }
  0x28   : > { %v3526_v12 = vshrl.u32 %v206_v9, 16 }
  0x29   : > { %v209_v13 = vadd.s32 %v208_v11, %v207_v10  ;;  %v4831_v10 = vadd.s32 32, %v4605_v29  ;;  %v4834_v11 = vadd.s32 40, %v4605_v29 }
  0x2b   : > { %v211_v15 = vshll.u32 %v209_v13, 16  ;;  %v215_v16 = vadd.s32 %v3526_v12, %v209_v13  ;;  %8317 = vst [vmem:[#allocation22_spill] sm:$0xff] %v4831_v10  ;;  %8318 = vst [vmem:[#allocation23_spill] sm:$0xff] %v4834_v11  ;;  %v8319_v12 = vmov 0  ;;  %v8321_v13 = vmov 0 }
  0x2d   : > { %v212_v17 = vadd.s32 %v211_v15, %v206_v9  ;;  %v3527_v18 = vshrl.u32 %v215_v16, 16  ;;  %v8315_v9 = vmov 0  ;;  %v8325_v15 = vmov 0 }
  0x2e   : > { %v4881_v16 = vadd.s32 16, %v4605_v29 }
  0x2f   : > { %v218_v19 = vadd.s32 %v3527_v18, %v210_v14  ;;  %v3528_v20 = vshrl.u32 %v212_v17, 13  ;;  %v8323_v14 = vmov 0  ;;  %v8329_v18 = vmov 0 }
  0x30   : > { %8327 = vst [vmem:[#allocation24_spill] sm:$0xff] %v4881_v16 }
  0x31   : > { %v221_v22 = vshll.u32 %v218_v19, 19  ;;  %v8331_v19 = vmov 0 }
  0x33   : > { %v222_v23 = vor.u32 %v3528_v20, %v221_v22  ;;  %v8333_v20 = vmov 0  ;;  %v4931_v22 = vadd.s32 8, %v4605_v29 }
  0x35   : > { %v223_v25 = vxor.u32 %v222_v23, %v212_v17  ;;  %v4884_v17 = vadd.s32 24, %v4605_v29  ;;  %8337 = vst [vmem:[#allocation26_spill] sm:$0xff] %v4931_v22  ;;  %v8338_v23 = vmov 0 }
  0x37   : > { %v227_v27 = vadd.s32 %v3529_v24, %v223_v25  ;;  %8328 = vst [vmem:[#allocation25_spill] sm:$0xff] %v4884_v17  ;;  %v8340_v24 = vmov 0  ;;  %v8342_v25 = vmov 0 }
  0x39   : > { %v3530_v28 = vshrl.u32 %v227_v27, 16 }
  0x3b   : > { %v230_v30 = vxor.u32 %v3530_v28, %v227_v27  ;;  %v4978_v27 = vadd.s32 240, %v4605_v29  ;;  %v4981_v28 = vadd.s32 248, %v4605_v29 }
  0x3d   : > { %v231_v31 = vand.u32 16383, %v230_v30  ;;  %8346 = vst [vmem:[#allocation27_spill] sm:$0xff] %v4978_v27  ;;  %8347 = vst [vmem:[#allocation28_spill] sm:$0xff] %v4981_v28  ;;  %v8348_v30 = vmov 0 }
  0x3f   : > { %v232_v36 = vshra.s32 %v231_v31, 6  ;;  %v4613_v37 = vand.u32 63, %v231_v31  ;;  %v8350_v31 = vmov 0 }
  0x41   : > { %8274 = vst [vmem:[#allocation7_spill] sm:$0xff] %v4613_v37  ;;  %v274_v40 = vrot.slane %v232_v36, %v273_v32  ;;  %v4622_v41 = vrot.slane %v4613_v37, %v273_v32  ;;  %v282_v42 = vrot.slane %v232_v36, %v281_v33  ;;  %v4625_v43 = vrot.slane %v4613_v37, %v281_v33 }
  0x42   : > { %v270_v44 = vrot.slane %v232_v36, %v4610_v34  ;;  %v278_v45 = vrot.slane %v232_v36, %v277_v35  ;;  %v4629_v46 = vrot.slane %v4613_v37, %v277_v35  ;;  %v8352_v32 = vmov 0 }
  0x43   : > { %8277 = vst [vmem:[#allocation10_spill] sm:$0xff] %v4622_v41  ;;  %8278 = vst [vmem:[#allocation11_spill] sm:$0xff] %v4625_v43  ;;  %v4632_v47 = vrot.slane %v274_v40, %v4610_v34  ;;  %v4635_v48 = vrot.slane %v282_v42, %v4610_v34  ;;  %v8354_v33 = vmov 0  ;;  %v5028_v35 = vadd.s32 224, %v4605_v29 }
  0x44   : > { %8279 = vst [vmem:[#allocation12_spill] sm:$0xff] %v4629_v46  ;;  %v4644_v51 = vrot.slane %v270_v44, %v4610_v34  ;;  %v4647_v52 = vrot.slane %v278_v45, %v4610_v34  ;;  %v5031_v36 = vadd.s32 232, %v4605_v29  ;;  %v8358_v40 = vmov 0 }
  0x45   : > { %vm356_vm0 = vcmp.eq.s32.totalorder %v4616_v38, %v4632_v47  ;;  %vm360_vm1 = vcmp.eq.s32.totalorder %v4619_v39, %v4632_v47  ;;  %vm358_vm2 = vcmp.eq.s32.totalorder %v4616_v38, %v4635_v48  ;;  %vm362_vm3 = vcmp.eq.s32.totalorder %v4619_v39, %v4635_v48  ;;  %8356 = vst [vmem:[#allocation29_spill] sm:$0xff] %v5028_v35 }
  0x46   : > { %vm4657_vm4 = vmpackc.low %vm360_vm1, %vm356_vm0  ;;  %vm355_vm5 = vcmp.eq.s32.totalorder %v4616_v38, %v4644_v51  ;;  %vm359_vm6 = vcmp.eq.s32.totalorder %v4619_v39, %v4644_v51  ;;  %vm357_vm7 = vcmp.eq.s32.totalorder %v4616_v38, %v4647_v52  ;;  %vm361_vm8 = vcmp.eq.s32.totalorder %v4619_v39, %v4647_v52  ;;  %8357 = vst [vmem:[#allocation30_spill] sm:$0xff] %v5031_v36 }
  0x47   : > { %3820 = vmatprep.subr.msk.bf16.mxu0 %vm4657_vm4, %v4522_v54  ;;  %vm4672_vm9 = vmpackc.low %vm362_vm3, %vm358_vm2  ;;  %vm348_vm10 = vcmp.eq.s32.totalorder %v4638_v49, %v4632_v47  ;;  %vm352_vm11 = vcmp.eq.s32.totalorder %v4641_v50, %v4632_v47  ;;  %vm350_vm13 = vcmp.eq.s32.totalorder %v4638_v49, %v4635_v48  ;;  %vm354_vm14 = vcmp.eq.s32.totalorder %v4641_v50, %v4635_v48 }
  0x48   : > { %v8285_v55 = vsel %vm4672_vm9, 4294967295, %v8284_v55  ;;  %3884 = vmatprep.subr.msk.bf16.mxu1 %vm4672_vm9, %v4522_v54  ;;  %vm4689_vm12 = vmpackc.low %vm359_vm6, %vm355_vm5  ;;  %vm347_vm0 = vcmp.eq.s32.totalorder %v4638_v49, %v4644_v51  ;;  %vm351_vm1 = vcmp.eq.s32.totalorder %v4641_v50, %v4644_v51  ;;  %vm349_vm3 = vcmp.eq.s32.totalorder %v4638_v49, %v4647_v52 }
  0x49   : > { %8286 = vst [vmem:[#allocation15_spill] sm:$0xff] %v8285_v55  ;;  %3822 = vmatpush1.bf16.msk.msra.mxu0 %vm4689_vm12, %v4522_v54  ;;  %vm4700_vm15 = vmpackc.low %vm361_vm8, %vm357_vm7  ;;  %vm353_vm5 = vcmp.eq.s32.totalorder %v4641_v50, %v4647_v52  ;;  %vm340_vm7 = vcmp.eq.s32.totalorder %v4681_v56, %v4632_v47  ;;  %vm344_vm8 = vcmp.eq.s32.totalorder %v4684_v57, %v4632_v47  ;;  %v8360_v42 = vmov 0  ;;  %v4321_v55 = vld [vmem:[%s8110_s2 + $0x10] ss:$8 sps:$4 sm:$0xff]  }
  0x4a   : > { %3886 = vmatpush1.bf16.msk.msra.mxu1 %vm4700_vm15, %v4522_v54  ;;  %vm4711_vm2 = vmpackc.low %vm352_vm11, %vm348_vm10  ;;  %vm342_vm11 = vcmp.eq.s32.totalorder %v4681_v56, %v4635_v48  ;;  %v8362_v44 = vmov 0  ;;  %v8364_v45 = vmov 0  ;;  %v5078_v39 = vadd.s32 208, %v4605_v29 }
  0x4b   : > { %3824 = vmatprep.subr.msk.bf16.mxu0 %vm4711_vm2, %v4522_v54  ;;  %vm4722_vm6 = vmpackc.low %vm354_vm14, %vm350_vm13  ;;  %vm346_vm13 = vcmp.eq.s32.totalorder %v4684_v57, %v4635_v48  ;;  %v8370_v38 = vmov 0  ;;  %v8372_v50 = vmov 0  ;;  %v8374_v49 = vmov 0 }
  0x4c   : > { %v8296_v61 = vsel %vm4722_vm6, 4294967295, %v8295_v61  ;;  %3888 = vmatprep.subr.msk.bf16.mxu1 %vm4722_vm6, %v4522_v54  ;;  %vm4739_vm10 = vmpackc.low %vm351_vm1, %vm347_vm0  ;;  %vm339_vm0 = vcmp.eq.s32.totalorder %v4681_v56, %v4644_v51  ;;  %vm343_vm1 = vcmp.eq.s32.totalorder %v4684_v57, %v4644_v51  ;;  %8366 = vst [vmem:[#allocation31_spill] sm:$0xff] %v5078_v39  ;;  %v8404_v43 = vmov 0 }
  0x4d   : > { %v8300_v0 = vsel %vm4739_vm10, 4294967295, %v8299_v0  ;;  %3826 = vmatpush1.bf16.msk.msra.mxu0 %vm4739_vm10, %v4522_v54  ;;  %vm4750_vm14 = vmpackc.low %vm353_vm5, %vm349_vm3  ;;  %vm341_vm3 = vcmp.eq.s32.totalorder %v4681_v56, %v4647_v52  ;;  %vm345_vm5 = vcmp.eq.s32.totalorder %v4684_v57, %v4647_v52  ;;  %v5128_v57 = vadd.s32 192, %v4605_v29 }
  0x4e   : > { %v8302_v1 = vsel %vm4750_vm14, 4294967295, %v8301_v1  ;;  %3890 = vmatpush1.bf16.msk.msra.mxu1 %vm4750_vm14, %v4522_v54  ;;  %vm4761_vm6 = vmpackc.low %vm344_vm8, %vm340_vm7  ;;  %vm332_vm7 = vcmp.eq.s32.totalorder %v4731_v62, %v4632_v47  ;;  %vm336_vm8 = vcmp.eq.s32.totalorder %v4734_v63, %v4632_v47  ;;  %v8380_v56 = vmov 0 }
  0x4f   : > { %v8304_v2 = vsel %vm4761_vm6, 4294967295, %v8303_v2  ;;  %3828 = vmatprep.subr.msk.bf16.mxu0 %vm4761_vm6, %v4522_v54  ;;  %vm4772_vm10 = vmpackc.low %vm346_vm13, %vm342_vm11  ;;  %vm334_vm13 = vcmp.eq.s32.totalorder %v4731_v62, %v4635_v48  ;;  %vm338_vm6 = vcmp.eq.s32.totalorder %v4734_v63, %v4635_v48  ;;  %8376 = vst [vmem:[#allocation33_spill] sm:$0xff] %v5128_v57  ;;  %v5278_v41 = vadd.s32 144, %v4605_v29 }
  0x50   : > { %v8306_v3 = vsel %vm4772_vm10, 4294967295, %v8305_v3  ;;  %3892 = vmatprep.subr.msk.bf16.mxu1 %vm4772_vm10, %v4522_v54  ;;  %vm4789_vm11 = vmpackc.low %vm343_vm1, %vm339_vm0  ;;  %vm331_vm0 = vcmp.eq.s32.totalorder %v4731_v62, %v4644_v51  ;;  %vm335_vm1 = vcmp.eq.s32.totalorder %v4734_v63, %v4644_v51  ;;  %v8412_v46 = vmov 0 }
  0x51   : > { %v8310_v6 = vsel %vm4789_vm11, 4294967295, %v8309_v6  ;;  %3830 = vmatpush1.bf16.msk.msra.mxu0 %vm4789_vm11, %v4522_v54  ;;  %vm4800_vm14 = vmpackc.low %vm345_vm5, %vm341_vm3  ;;  %vm333_vm3 = vcmp.eq.s32.totalorder %v4731_v62, %v4647_v52  ;;  %vm337_vm5 = vcmp.eq.s32.totalorder %v4734_v63, %v4647_v52  ;;  %v8382_v63 = vmov 0  ;;  %8407 = vst [vmem:[#allocation40_spill] sm:$0xff] %v5278_v41 }
  0x52   : > { %v8312_v7 = vsel %vm4800_vm14, 4294967295, %v8311_v7  ;;  %3894 = vmatpush1.bf16.msk.msra.mxu1 %vm4800_vm14, %v4522_v54  ;;  %vm4811_vm10 = vmpackc.low %vm336_vm8, %vm332_vm7  ;;  %vm324_vm7 = vcmp.eq.s32.totalorder %v4781_v4, %v4632_v47  ;;  %vm328_vm8 = vcmp.eq.s32.totalorder %v4784_v5, %v4632_v47  ;;  %v8384_v62 = vmov 0 }
  0x53   : > { %v8314_v8 = vsel %vm4811_vm10, 4294967295, %v8313_v8  ;;  %3832 = vmatprep.subr.msk.bf16.mxu0 %vm4811_vm10, %v4522_v54  ;;  %vm4822_vm11 = vmpackc.low %vm338_vm6, %vm334_vm13  ;;  %vm326_vm13 = vcmp.eq.s32.totalorder %v4781_v4, %v4635_v48  ;;  %vm330_vm10 = vcmp.eq.s32.totalorder %v4784_v5, %v4635_v48  ;;  %v8415_v37 = vmov 0 }
  0x54   : > { %v8316_v9 = vsel %vm4822_vm11, 4294967295, %v8315_v9  ;;  %3896 = vmatprep.subr.msk.bf16.mxu1 %vm4822_vm11, %v4522_v54  ;;  %vm4839_vm6 = vmpackc.low %vm335_vm1, %vm331_vm0  ;;  %vm323_vm0 = vcmp.eq.s32.totalorder %v4781_v4, %v4644_v51  ;;  %vm327_vm1 = vcmp.eq.s32.totalorder %v4784_v5, %v4644_v51  ;;  %v8417_v34 = vmov 0 }
  0x55   : > { %v8320_v12 = vsel %vm4839_vm6, 4294967295, %v8319_v12  ;;  %3834 = vmatpush1.bf16.msk.msra.mxu0 %vm4839_vm6, %v4522_v54  ;;  %vm4850_vm14 = vmpackc.low %vm337_vm5, %vm333_vm3  ;;  %vm325_vm3 = vcmp.eq.s32.totalorder %v4781_v4, %v4647_v52  ;;  %vm329_vm5 = vcmp.eq.s32.totalorder %v4784_v5, %v4647_v52  ;;  %v5178_v5 = vadd.s32 176, %v4605_v29 }
  0x56   : > { %v8322_v13 = vsel %vm4850_vm14, 4294967295, %v8321_v13  ;;  %3898 = vmatpush1.bf16.msk.msra.mxu1 %vm4850_vm14, %v4522_v54  ;;  %vm4861_vm11 = vmpackc.low %vm328_vm8, %vm324_vm7  ;;  %vm316_vm7 = vcmp.eq.s32.totalorder %v4831_v10, %v4632_v47  ;;  %vm320_vm8 = vcmp.eq.s32.totalorder %v4834_v11, %v4632_v47  ;;  %v8390_v4 = vmov 0 }
  0x57   : > { %v8324_v14 = vsel %vm4861_vm11, 4294967295, %v8323_v14  ;;  %3836 = vmatprep.subr.msk.bf16.mxu0 %vm4861_vm11, %v4522_v54  ;;  %vm4872_vm6 = vmpackc.low %vm330_vm10, %vm326_vm13  ;;  %vm318_vm13 = vcmp.eq.s32.totalorder %v4831_v10, %v4635_v48  ;;  %vm322_vm11 = vcmp.eq.s32.totalorder %v4834_v11, %v4635_v48  ;;  %8386 = vst [vmem:[#allocation35_spill] sm:$0xff] %v5178_v5 }
  0x58   : > { %v8326_v15 = vsel %vm4872_vm6, 4294967295, %v8325_v15  ;;  %3900 = vmatprep.subr.msk.bf16.mxu1 %vm4872_vm6, %v4522_v54  ;;  %vm4889_vm10 = vmpackc.low %vm327_vm1, %vm323_vm0  ;;  %vm315_vm0 = vcmp.eq.s32.totalorder %v4831_v10, %v4644_v51  ;;  %vm319_vm1 = vcmp.eq.s32.totalorder %v4834_v11, %v4644_v51 }
  0x59   : > { %v8330_v18 = vsel %vm4889_vm10, 4294967295, %v8329_v18  ;;  %3838 = vmatpush1.bf16.msk.msra.mxu0 %vm4889_vm10, %v4522_v54  ;;  %vm4900_vm14 = vmpackc.low %vm329_vm5, %vm325_vm3  ;;  %vm317_vm3 = vcmp.eq.s32.totalorder %v4831_v10, %v4647_v52  ;;  %vm321_vm5 = vcmp.eq.s32.totalorder %v4834_v11, %v4647_v52  ;;  %v8392_v11 = vmov 0 }
  0x5a   : > { %v8332_v19 = vsel %vm4900_vm14, 4294967295, %v8331_v19  ;;  %3902 = vmatpush1.bf16.msk.msra.mxu1 %vm4900_vm14, %v4522_v54  ;;  %vm4911_vm6 = vmpackc.low %vm320_vm8, %vm316_vm7  ;;  %vm308_vm7 = vcmp.eq.s32.totalorder %v4881_v16, %v4632_v47  ;;  %vm312_vm8 = vcmp.eq.s32.totalorder %v4884_v17, %v4632_v47  ;;  %v8394_v10 = vmov 0 }
  0x5b   : > { %v8334_v20 = vsel %vm4911_vm6, 4294967295, %v8333_v20  ;;  %3840 = vmatprep.subr.msk.bf16.mxu0 %vm4911_vm6, %v4522_v54  ;;  %vm4922_vm10 = vmpackc.low %vm322_vm11, %vm318_vm13  ;;  %vm310_vm11 = vcmp.eq.s32.totalorder %v4881_v16, %v4635_v48  ;;  %vm314_vm13 = vcmp.eq.s32.totalorder %v4884_v17, %v4635_v48 }
  0x5c   : > { %v8336_v21 = vsel %vm4922_vm10, 4294967295, %v8335_v21  ;;  %3904 = vmatprep.subr.msk.bf16.mxu1 %vm4922_vm10, %v4522_v54  ;;  %vm4936_vm14 = vmpackc.low %vm319_vm1, %vm315_vm0  ;;  %vm307_vm0 = vcmp.eq.s32.totalorder %v4881_v16, %v4644_v51  ;;  %vm311_vm1 = vcmp.eq.s32.totalorder %v4884_v17, %v4644_v51 }
  0x5d   : > { %v8339_v23 = vsel %vm4936_vm14, 4294967295, %v8338_v23  ;;  %3842 = vmatpush1.bf16.msk.msra.mxu0 %vm4936_vm14, %v4522_v54  ;;  %vm4947_vm6 = vmpackc.low %vm321_vm5, %vm317_vm3  ;;  %vm309_vm3 = vcmp.eq.s32.totalorder %v4881_v16, %v4647_v52  ;;  %vm313_vm5 = vcmp.eq.s32.totalorder %v4884_v17, %v4647_v52  ;;  %v5228_v17 = vadd.s32 160, %v4605_v29 }
  0x5e   : > { %v8341_v24 = vsel %vm4947_vm6, 4294967295, %v8340_v24  ;;  %3906 = vmatpush1.bf16.msk.msra.mxu1 %vm4947_vm6, %v4522_v54  ;;  %vm4958_vm10 = vmpackc.low %vm312_vm8, %vm308_vm7  ;;  %vm300_vm7 = vcmp.eq.s32.totalorder %v4605_v29, %v4632_v47  ;;  %vm304_vm8 = vcmp.eq.s32.totalorder %v4931_v22, %v4632_v47  ;;  %v8400_v16 = vmov 0 }
  0x5f   : > { %v8343_v25 = vsel %vm4958_vm10, 4294967295, %v8342_v25  ;;  %3844 = vmatprep.subr.msk.bf16.mxu0 %vm4958_vm10, %v4522_v54  ;;  %vm4969_vm14 = vmpackc.low %vm314_vm13, %vm310_vm11  ;;  %vm302_vm13 = vcmp.eq.s32.totalorder %v4605_v29, %v4635_v48  ;;  %vm306_vm10 = vcmp.eq.s32.totalorder %v4931_v22, %v4635_v48  ;;  %8396 = vst [vmem:[#allocation37_spill] sm:$0xff] %v5228_v17 }
  0x60   : > { %v8345_v26 = vsel %vm4969_vm14, 4294967295, %v8344_v26  ;;  %3908 = vmatprep.subr.msk.bf16.mxu1 %vm4969_vm14, %v4522_v54  ;;  %vm4986_vm11 = vmpackc.low %vm311_vm1, %vm307_vm0  ;;  %vm299_vm0 = vcmp.eq.s32.totalorder %v4605_v29, %v4644_v51  ;;  %vm303_vm1 = vcmp.eq.s32.totalorder %v4931_v22, %v4644_v51 }
  0x61   : > { %v8349_v30 = vsel %vm4986_vm11, 4294967295, %v8348_v30  ;;  %3846 = vmatpush1.bf16.msk.msra.mxu0 %vm4986_vm11, %v4522_v54  ;;  %vm4997_vm6 = vmpackc.low %vm313_vm5, %vm309_vm3  ;;  %vm301_vm3 = vcmp.eq.s32.totalorder %v4605_v29, %v4647_v52  ;;  %vm305_vm5 = vcmp.eq.s32.totalorder %v4931_v22, %v4647_v52  ;;  %v8402_v22 = vmov 0 }
  0x62   : > { %v8351_v31 = vsel %vm4997_vm6, 4294967295, %v8350_v31  ;;  %3910 = vmatpush1.bf16.msk.msra.mxu1 %vm4997_vm6, %v4522_v54  ;;  %vm5008_vm14 = vmpackc.low %vm304_vm8, %vm300_vm7  ;;  %vm420_vm7 = vcmp.eq.s32.totalorder %v4978_v27, %v4632_v47  ;;  %vm424_vm8 = vcmp.eq.s32.totalorder %v4981_v28, %v4632_v47 }
  0x63   : > { %v8353_v32 = vsel %vm5008_vm14, 4294967295, %v8352_v32  ;;  %3848 = vmatprep.subr.msk.bf16.mxu0 %vm5008_vm14, %v4522_v54  ;;  %vm5019_vm11 = vmpackc.low %vm306_vm10, %vm302_vm13  ;;  %vm422_vm13 = vcmp.eq.s32.totalorder %v4978_v27, %v4635_v48  ;;  %vm426_vm14 = vcmp.eq.s32.totalorder %v4981_v28, %v4635_v48 }
  0x64   : > { %v8355_v33 = vsel %vm5019_vm11, 4294967295, %v8354_v33  ;;  %3912 = vmatprep.subr.msk.bf16.mxu1 %vm5019_vm11, %v4522_v54  ;;  %vm5036_vm10 = vmpackc.low %vm303_vm1, %vm299_vm0  ;;  %vm419_vm0 = vcmp.eq.s32.totalorder %v4978_v27, %v4644_v51  ;;  %vm423_vm1 = vcmp.eq.s32.totalorder %v4981_v28, %v4644_v51 }
  0x65   : > { %v8359_v40 = vsel %vm5036_vm10, 4294967295, %v8358_v40  ;;  %3850 = vmatpush1.bf16.msk.msra.mxu0 %vm5036_vm10, %v4522_v54  ;;  %vm5047_vm6 = vmpackc.low %vm305_vm5, %vm301_vm3  ;;  %vm421_vm3 = vcmp.eq.s32.totalorder %v4978_v27, %v4647_v52  ;;  %vm425_vm5 = vcmp.eq.s32.totalorder %v4981_v28, %v4647_v52  ;;  %v5081_v27 = vadd.s32 216, %v4605_v29 }
  0x66   : > { %v8361_v42 = vsel %vm5047_vm6, 4294967295, %v8360_v42  ;;  %3914 = vmatpush1.bf16.msk.msra.mxu1 %vm5047_vm6, %v4522_v54  ;;  %vm5058_vm11 = vmpackc.low %vm424_vm8, %vm420_vm7  ;;  %vm412_vm7 = vcmp.eq.s32.totalorder %v5028_v35, %v4632_v47  ;;  %vm416_vm8 = vcmp.eq.s32.totalorder %v5031_v36, %v4632_v47  ;;  %v8368_v28 = vmov 0 }
  0x67   : > { %v8363_v44 = vsel %vm5058_vm11, 4294967295, %v8362_v44  ;;  %3852 = vmatprep.subr.msk.bf16.mxu0 %vm5058_vm11, %v4522_v54  ;;  %vm5069_vm10 = vmpackc.low %vm426_vm14, %vm422_vm13  ;;  %8367 = vst [vmem:[#allocation32_spill] sm:$0xff] %v5081_v27  ;;  %vm414_vm13 = vcmp.eq.s32.totalorder %v5028_v35, %v4635_v48  ;;  %vm418_vm11 = vcmp.eq.s32.totalorder %v5031_v36, %v4635_v48 }
  0x68   : > { %v8365_v45 = vsel %vm5069_vm10, 4294967295, %v8364_v45  ;;  %3916 = vmatprep.subr.msk.bf16.mxu1 %vm5069_vm10, %v4522_v54  ;;  %vm5086_vm14 = vmpackc.low %vm423_vm1, %vm419_vm0  ;;  %vm411_vm0 = vcmp.eq.s32.totalorder %v5028_v35, %v4644_v51  ;;  %vm415_vm1 = vcmp.eq.s32.totalorder %v5031_v36, %v4644_v51 }
  0x69   : > { %v8369_v28 = vsel %vm5086_vm14, 4294967295, %v8368_v28  ;;  %3854 = vmatpush2.bf16.msk.msra.mxu0 %vm5086_vm14, %v4522_v54  ;;  %vm5097_vm6 = vmpackc.low %vm425_vm5, %vm421_vm3  ;;  %vm413_vm3 = vcmp.eq.s32.totalorder %v5028_v35, %v4647_v52  ;;  %vm417_vm5 = vcmp.eq.s32.totalorder %v5031_v36, %v4647_v52  ;;  %v5131_v35 = vadd.s32 200, %v4605_v29 }
  0x6a   : > { %v8371_v38 = vsel %vm5097_vm6, 4294967295, %v8370_v38  ;;  %3918 = vmatpush2.bf16.msk.msra.mxu1 %vm5097_vm6, %v4522_v54  ;;  %vm5108_vm10 = vmpackc.low %vm416_vm8, %vm412_vm7  ;;  %vm404_vm7 = vcmp.eq.s32.totalorder %v5078_v39, %v4632_v47  ;;  %vm408_vm8 = vcmp.eq.s32.totalorder %v5081_v27, %v4632_v47  ;;  %v8378_v36 = vmov 0 }
  0x6b   : > { %v8373_v50 = vsel %vm5108_vm10, 4294967295, %v8372_v50  ;;  %3856 = vmatprep.subr.msk.bf16.mxu0 %vm5108_vm10, %v4522_v54  ;;  %vm5119_vm14 = vmpackc.low %vm418_vm11, %vm414_vm13  ;;  %8377 = vst [vmem:[#allocation34_spill] sm:$0xff] %v5131_v35  ;;  %vm406_vm13 = vcmp.eq.s32.totalorder %v5078_v39, %v4635_v48  ;;  %vm410_vm10 = vcmp.eq.s32.totalorder %v5081_v27, %v4635_v48 }
  0x6c   : > { %v8375_v49 = vsel %vm5119_vm14, 4294967295, %v8374_v49  ;;  %3920 = vmatprep.subr.msk.bf16.mxu1 %vm5119_vm14, %v4522_v54  ;;  %vm5136_vm11 = vmpackc.low %vm415_vm1, %vm411_vm0  ;;  %vm403_vm0 = vcmp.eq.s32.totalorder %v5078_v39, %v4644_v51  ;;  %vm407_vm1 = vcmp.eq.s32.totalorder %v5081_v27, %v4644_v51 }
  0x6d   : > { %v8379_v36 = vsel %vm5136_vm11, 4294967295, %v8378_v36  ;;  %3858 = vmatpush2.bf16.msk.msra.mxu0 %vm5136_vm11, %v4522_v54  ;;  %vm5147_vm6 = vmpackc.low %vm417_vm5, %vm413_vm3  ;;  %vm405_vm3 = vcmp.eq.s32.totalorder %v5078_v39, %v4647_v52  ;;  %vm409_vm5 = vcmp.eq.s32.totalorder %v5081_v27, %v4647_v52  ;;  %v5181_v39 = vadd.s32 184, %v4605_v29 }
  0x6e   : > { %v8381_v56 = vsel %vm5147_vm6, 4294967295, %v8380_v56  ;;  %3922 = vmatpush2.bf16.msk.msra.mxu1 %vm5147_vm6, %v4522_v54  ;;  %vm5158_vm14 = vmpackc.low %vm408_vm8, %vm404_vm7  ;;  %vm396_vm7 = vcmp.eq.s32.totalorder %v5128_v57, %v4632_v47  ;;  %vm400_vm8 = vcmp.eq.s32.totalorder %v5131_v35, %v4632_v47  ;;  %v8388_v27 = vmov 0 }
  0x6f   : > { %v8383_v63 = vsel %vm5158_vm14, 4294967295, %v8382_v63  ;;  %3860 = vmatprep.subr.msk.bf16.mxu0 %vm5158_vm14, %v4522_v54  ;;  %vm5169_vm11 = vmpackc.low %vm410_vm10, %vm406_vm13  ;;  %8387 = vst [vmem:[#allocation36_spill] sm:$0xff] %v5181_v39  ;;  %vm398_vm13 = vcmp.eq.s32.totalorder %v5128_v57, %v4635_v48  ;;  %vm402_vm14 = vcmp.eq.s32.totalorder %v5131_v35, %v4635_v48 }
  0x70   : > { %v8385_v62 = vsel %vm5169_vm11, 4294967295, %v8384_v62  ;;  %3924 = vmatprep.subr.msk.bf16.mxu1 %vm5169_vm11, %v4522_v54  ;;  %vm5186_vm10 = vmpackc.low %vm407_vm1, %vm403_vm0  ;;  %vm395_vm0 = vcmp.eq.s32.totalorder %v5128_v57, %v4644_v51  ;;  %vm399_vm1 = vcmp.eq.s32.totalorder %v5131_v35, %v4644_v51 }
  0x71   : > { %v8389_v27 = vsel %vm5186_vm10, 4294967295, %v8388_v27  ;;  %3862 = vmatpush2.bf16.msk.msra.mxu0 %vm5186_vm10, %v4522_v54  ;;  %vm5197_vm6 = vmpackc.low %vm409_vm5, %vm405_vm3  ;;  %vm397_vm3 = vcmp.eq.s32.totalorder %v5128_v57, %v4647_v52  ;;  %vm401_vm5 = vcmp.eq.s32.totalorder %v5131_v35, %v4647_v52  ;;  %v5231_v57 = vadd.s32 168, %v4605_v29 }
  0x72   : > { %v8391_v4 = vsel %vm5197_vm6, 4294967295, %v8390_v4  ;;  %3926 = vmatpush2.bf16.msk.msra.mxu1 %vm5197_vm6, %v4522_v54  ;;  %vm5208_vm11 = vmpackc.low %vm400_vm8, %vm396_vm7  ;;  %vm388_vm7 = vcmp.eq.s32.totalorder %v5178_v5, %v4632_v47  ;;  %vm392_vm8 = vcmp.eq.s32.totalorder %v5181_v39, %v4632_v47  ;;  %v8398_v35 = vmov 0 }
  0x73   : > { %v8393_v11 = vsel %vm5208_vm11, 4294967295, %v8392_v11  ;;  %3864 = vmatprep.subr.msk.bf16.mxu0 %vm5208_vm11, %v4522_v54  ;;  %vm5219_vm10 = vmpackc.low %vm402_vm14, %vm398_vm13  ;;  %8397 = vst [vmem:[#allocation38_spill] sm:$0xff] %v5231_v57  ;;  %vm390_vm13 = vcmp.eq.s32.totalorder %v5178_v5, %v4635_v48  ;;  %vm394_vm11 = vcmp.eq.s32.totalorder %v5181_v39, %v4635_v48 }
  0x74   : > { %v8395_v10 = vsel %vm5219_vm10, 4294967295, %v8394_v10  ;;  %3928 = vmatprep.subr.msk.bf16.mxu1 %vm5219_vm10, %v4522_v54  ;;  %vm5236_vm14 = vmpackc.low %vm399_vm1, %vm395_vm0  ;;  %vm387_vm0 = vcmp.eq.s32.totalorder %v5178_v5, %v4644_v51  ;;  %vm391_vm1 = vcmp.eq.s32.totalorder %v5181_v39, %v4644_v51 }
  0x75   : > { %v8399_v35 = vsel %vm5236_vm14, 4294967295, %v8398_v35  ;;  %3866 = vmatpush2.bf16.msk.msra.mxu0 %vm5236_vm14, %v4522_v54  ;;  %vm5247_vm6 = vmpackc.low %vm401_vm5, %vm397_vm3  ;;  %vm389_vm3 = vcmp.eq.s32.totalorder %v5178_v5, %v4647_v52  ;;  %vm393_vm5 = vcmp.eq.s32.totalorder %v5181_v39, %v4647_v52  ;;  %v5281_v5 = vadd.s32 152, %v4605_v29 }
  0x76   : > { %v8401_v16 = vsel %vm5247_vm6, 4294967295, %v8400_v16  ;;  %3930 = vmatpush2.bf16.msk.msra.mxu1 %vm5247_vm6, %v4522_v54  ;;  %vm5258_vm10 = vmpackc.low %vm392_vm8, %vm388_vm7  ;;  %vm380_vm7 = vcmp.eq.s32.totalorder %v5228_v17, %v4632_v47  ;;  %vm384_vm8 = vcmp.eq.s32.totalorder %v5231_v57, %v4632_v47  ;;  %v8409_v39 = vmov 0 }
  0x77   : > { %v8403_v22 = vsel %vm5258_vm10, 4294967295, %v8402_v22  ;;  %3868 = vmatprep.subr.msk.bf16.mxu0 %vm5258_vm10, %v4522_v54  ;;  %vm5269_vm14 = vmpackc.low %vm394_vm11, %vm390_vm13  ;;  %8408 = vst [vmem:[#allocation41_spill] sm:$0xff] %v5281_v5  ;;  %vm382_vm13 = vcmp.eq.s32.totalorder %v5228_v17, %v4635_v48  ;;  %vm386_vm10 = vcmp.eq.s32.totalorder %v5231_v57, %v4635_v48 }
  0x78   : > { %v8405_v43 = vsel %vm5269_vm14, 4294967295, %v8404_v43  ;;  %3932 = vmatprep.subr.msk.bf16.mxu1 %vm5269_vm14, %v4522_v54  ;;  %vm5286_vm11 = vmpackc.low %vm391_vm1, %vm387_vm0  ;;  %vm379_vm0 = vcmp.eq.s32.totalorder %v5228_v17, %v4644_v51  ;;  %vm383_vm1 = vcmp.eq.s32.totalorder %v5231_v57, %v4644_v51 }
  0x79   : > { %8406 = vst [vmem:[#allocation39_spill] sm:$0xff] %v8405_v43  ;;  %v8410_v39 = vsel %vm5286_vm11, 4294967295, %v8409_v39  ;;  %3870 = vmatpush2.bf16.msk.msra.mxu0 %vm5286_vm11, %v4522_v54  ;;  %vm5297_vm6 = vmpackc.low %vm393_vm5, %vm389_vm3  ;;  %vm381_vm3 = vcmp.eq.s32.totalorder %v5228_v17, %v4647_v52  ;;  %vm385_vm5 = vcmp.eq.s32.totalorder %v5231_v57, %v4647_v52  ;;  %v5331_v17 = vadd.s32 136, %v4605_v29 }
  0x7a   : > { %8411 = vst [vmem:[#allocation42_spill] sm:$0xff] %v8410_v39  ;;  %v8413_v46 = vsel %vm5297_vm6, 4294967295, %v8412_v46  ;;  %3934 = vmatpush2.bf16.msk.msra.mxu1 %vm5297_vm6, %v4522_v54  ;;  %vm5308_vm14 = vmpackc.low %vm384_vm8, %vm380_vm7  ;;  %vm372_vm7 = vcmp.eq.s32.totalorder %v5278_v41, %v4632_v47  ;;  %vm376_vm8 = vcmp.eq.s32.totalorder %v5281_v5, %v4632_v47  ;;  %v8422_v57 = vmov 0 }
  0x7b   : > { %8414 = vst [vmem:[#allocation43_spill] sm:$0xff] %v8413_v46  ;;  %v8416_v37 = vsel %vm5308_vm14, 4294967295, %v8415_v37  ;;  %3872 = vmatprep.subr.msk.bf16.mxu0 %vm5308_vm14, %v4522_v54  ;;  %vm5319_vm11 = vmpackc.low %vm386_vm10, %vm382_vm13  ;;  %v5328_v46 = vadd.s32 128, %v4605_v29  ;;  %vm374_vm13 = vcmp.eq.s32.totalorder %v5278_v41, %v4635_v48  ;;  %vm378_vm14 = vcmp.eq.s32.totalorder %v5281_v5, %v4635_v48 }
  0x7c   : > { %v8418_v34 = vsel %vm5319_vm11, 4294967295, %v8417_v34  ;;  %8421 = vst [vmem:[#allocation46_spill] sm:$0xff] %v5331_v17  ;;  %3936 = vmatprep.subr.msk.bf16.mxu1 %vm5319_vm11, %v4522_v54  ;;  %vm5336_vm10 = vmpackc.low %vm383_vm1, %vm379_vm0  ;;  %v8425_v29 = vmov 0  ;;  %vm371_vm0 = vcmp.eq.s32.totalorder %v5278_v41, %v4644_v51  ;;  %vm375_vm1 = vcmp.eq.s32.totalorder %v5281_v5, %v4644_v51 }
  0x7d   : > { %8419 = vst [vmem:[#allocation44_spill] sm:$0xff] %v8418_v34  ;;  %8420 = vst [vmem:[#allocation45_spill] sm:$0xff] %v5328_v46  ;;  %v8423_v57 = vsel %vm5336_vm10, 4294967295, %v8422_v57  ;;  %3874 = vmatpush2.bf16.msk.msra.mxu0 %vm5336_vm10, %v4522_v54  ;;  %v8427_v34 = vmov 0 }
  0x7e   : > { %8424 = vst [vmem:[#allocation47_spill] sm:$0xff] %v8423_v57  ;;  %vm5347_vm6 = vmpackc.low %vm385_vm5, %vm381_vm3  ;;  %vm373_vm3 = vcmp.eq.s32.totalorder %v5278_v41, %v4647_v52  ;;  %vm377_vm5 = vcmp.eq.s32.totalorder %v5281_v5, %v4647_v52  ;;  %v8429_v57 = vmov 0  ;;  %v8432_v5 = vmov 0 }
  0x7f   : > { %v8426_v29 = vsel %vm5347_vm6, 4294967295, %v8425_v29  ;;  %3938 = vmatpush2.bf16.msk.msra.mxu1 %vm5347_vm6, %v4522_v54  ;;  %vm5358_vm11 = vmpackc.low %vm376_vm8, %vm372_vm7  ;;  %vm364_vm7 = vcmp.eq.s32.totalorder %v5328_v46, %v4632_v47  ;;  %vm368_vm8 = vcmp.eq.s32.totalorder %v5331_v17, %v4632_v47  ;;  %v8440_v41 = vmov 0 }
  0x80   : > { %v8428_v34 = vsel %vm5358_vm11, 4294967295, %v8427_v34  ;;  %3876 = vmatprep.subr.msk.bf16.mxu0 %vm5358_vm11, %v4522_v54  ;;  %vm5369_vm10 = vmpackc.low %vm378_vm14, %vm374_vm13  ;;  %vm366_vm14 = vcmp.eq.s32.totalorder %v5328_v46, %v4635_v48  ;;  %vm370_vm13 = vcmp.eq.s32.totalorder %v5331_v17, %v4635_v48 }
  0x81   : > { %v8430_v57 = vsel %vm5369_vm10, 4294967295, %v8429_v57  ;;  %3940 = vmatprep.subr.msk.bf16.mxu1 %vm5369_vm10, %v4522_v54  ;;  %vm5380_vm6 = vmpackc.low %vm375_vm1, %vm371_vm0  ;;  %vm363_vm0 = vcmp.eq.s32.totalorder %v5328_v46, %v4644_v51  ;;  %vm367_vm1 = vcmp.eq.s32.totalorder %v5331_v17, %v4644_v51  ;;  %v4400_v51 = vld [vmem:[%s8109_s1 + $0xc0] ss:$8 sps:$4 sm:$0xff]  }
  0x82   : > { %8431 = vst [vmem:[#allocation48_spill] sm:$0xff] %v8430_v57  ;;  %v8433_v5 = vsel %vm5380_vm6, 4294967295, %v8432_v5  ;;  %3878 = vmatpush2.bf16.msk.msra.mxu0 %vm5380_vm6, %v4522_v54  ;;  %vm5391_vm11 = vmpackc.low %vm377_vm5, %vm373_vm3  ;;  %vm365_vm3 = vcmp.eq.s32.totalorder %v5328_v46, %v4647_v52  ;;  %vm369_vm5 = vcmp.eq.s32.totalorder %v5331_v17, %v4647_v52  ;;  %v4316_v52 = vld [vmem:[%s8110_s2] ss:$8 sps:$4 sm:$0xff]   ;;  %v8443_v17 = vmov 0 }
  0x83   : > { %3942 = vmatpush2.bf16.msk.msra.mxu1 %vm5391_vm11, %v4522_v54  ;;  %vm5402_vm10 = vmpackc.low %vm368_vm8, %vm364_vm7  ;;  %v4319_v46 = vld [vmem:[%s8110_s2 + $0x14] ss:$8 sps:$4 sm:$0xff]  }
  0x84   : > { %3880 = vmatprep.subr.msk.bf16.mxu0 %vm5402_vm10, %v4522_v54  ;;  %vm5413_vm6 = vmpackc.low %vm370_vm13, %vm366_vm14  ;;  %vm8446_vm14 = vnez %v8296_v61  ;;  %vm8447_vm13 = vnez %v8300_v0  ;;  %v4375_v61 = vld [vmem:[%s8109_s1 + $0x30] ss:$8 sps:$4 sm:$0xff]  }
  0x85   : > { %3944 = vmatprep.subr.msk.bf16.mxu1 %vm5413_vm6, %v4522_v54  ;;  %vm5420_vm7 = vmpackc.low %vm367_vm1, %vm363_vm0  ;;  %vm8448_vm0 = vnez %v8302_v1  ;;  %vm8449_vm1 = vnez %v8304_v2 }
  0x86   : > { %v8441_v41 = vsel %vm5420_vm7, 4294967295, %v8440_v41  ;;  %3882 = vmatpush2.bf16.msk.msra.mxu0 %vm5420_vm7, %v4522_v54  ;;  %vm5430_vm8 = vmpackc.low %vm369_vm5, %vm365_vm3  ;;  %vm8450_vm3 = vnez %v8306_v3  ;;  %vm8451_vm5 = vnez %v8310_v6 }
  0x87   : > { %8442 = vst [vmem:[#allocation49_spill] sm:$0xff] %v8441_v41  ;;  %v8444_v17 = vsel %vm5430_vm8, 4294967295, %v8443_v17  ;;  %3946 = vmatpush2.bf16.msk.msra.mxu1 %vm5430_vm8, %v4522_v54  ;;  %3980 = vmatprep.subr.msk.bf16.mxu0 %vm4657_vm4, %v4522_v54  ;;  %v4345_v41 = vld [vmem:[%s8110_s2 + $0x90] ss:$8 sps:$4 sm:$0xff]  }
  0x88   : > { %8445 = vst [vmem:[#allocation50_spill] sm:$0xff] %v8444_v17  ;;  %4044 = vmatprep.subr.msk.bf16.mxu1 %vm4672_vm9, %v4522_v54  ;;  %v4346_v17 = vld [vmem:[%s8110_s2 + $0xa4] ss:$8 sps:$4 sm:$0xff]  }
  0x89   : > { %1452 = vmatmul.mubr.bf16.vlgmr.msra.gmra.mxu0 %v4316_v52 }
  0x8a   : > { %1645 = vmatmul.mubr.bf16.vlgmr.msra.gmra.mxu1 %v4316_v52  ;;  %3982 = vmatpush1.bf16.msk.msra.mxu0 %vm4689_vm12, %v4522_v54  ;;  %v4324_v52 = vld [vmem:[%s8110_s2 + $0x20] ss:$8 sps:$4 sm:$0xff]  }
  0x8b   : > { %4046 = vmatpush1.bf16.msk.msra.mxu1 %vm4700_vm15, %v4522_v54  ;;  %1461 = vmatprep.mubr.bf16.mxu0 %v4319_v46 }
  0x8c   : > { %1654 = vmatprep.mubr.bf16.mxu1 %v4319_v46  ;;  %3984 = vmatprep.subr.msk.bf16.mxu0 %vm4711_vm2, %v4522_v54  ;;  %v4322_v46 = vld [vmem:[%s8110_s2 + $0x24] ss:$8 sps:$4 sm:$0xff]  }
  0x8d   : > { %4048 = vmatprep.subr.msk.bf16.mxu1 %vm8446_vm14, %v4522_v54 }
  0x8e   : > { %3986 = vmatpush1.bf16.msk.msra.mxu0 %vm8447_vm13, %v4522_v54  ;;  %vm8452_vm13 = vnez %v8312_v7 }
  0x8f   : > { %4050 = vmatpush1.bf16.msk.msra.mxu1 %vm8448_vm0, %v4522_v54  ;;  %3988 = vmatprep.subr.msk.bf16.mxu0 %vm8449_vm1, %v4522_v54  ;;  %vm8453_vm0 = vnez %v8314_v8  ;;  %vm8459_vm1 = vnez %v8330_v18 }
  0x90   : > { %4052 = vmatprep.subr.msk.bf16.mxu1 %vm8450_vm3, %v4522_v54  ;;  %vm8454_vm3 = vnez %v8316_v9 }
  0x91   : > { %1462 = vmatmul.mubr.bf16.gmra.mxu0 %v4321_v55 }
  0x92   : > { %1655 = vmatmul.mubr.bf16.gmra.mxu1 %v4321_v55  ;;  %1471 = vmatprep.mubr.bf16.mxu0 %v4322_v46  ;;  %v4325_v55 = vld [vmem:[%s8110_s2 + $0x34] ss:$8 sps:$4 sm:$0xff]  }
  0x93   : > { %1664 = vmatprep.mubr.bf16.mxu1 %v4322_v46  ;;  %3990 = vmatpush1.bf16.msk.msra.mxu0 %vm8451_vm5, %v4522_v54  ;;  %vm8455_vm5 = vnez %v8320_v12  ;;  %v4327_v46 = vld [vmem:[%s8110_s2 + $0x30] ss:$8 sps:$4 sm:$0xff]  }
  0x94   : > { %4054 = vmatpush1.bf16.msk.msra.mxu1 %vm8452_vm13, %v4522_v54  ;;  %3992 = vmatprep.subr.msk.bf16.mxu0 %vm8453_vm0, %v4522_v54  ;;  %vm8456_vm13 = vnez %v8322_v13  ;;  %vm8457_vm0 = vnez %v8324_v14 }
  0x95   : > { %4056 = vmatprep.subr.msk.bf16.mxu1 %vm8454_vm3, %v4522_v54  ;;  %vm8458_vm3 = vnez %v8326_v15 }
  0x97   : > { %3994 = vmatpush1.bf16.msk.msra.mxu0 %vm8455_vm5, %v4522_v54  ;;  %vm8460_vm5 = vnez %v8332_v19 }
  0x98   : > { %4058 = vmatpush1.bf16.msk.msra.mxu1 %vm8456_vm13, %v4522_v54  ;;  %3996 = vmatprep.subr.msk.bf16.mxu0 %vm8457_vm0, %v4522_v54  ;;  %vm8461_vm13 = vnez %v8334_v20  ;;  %vm8467_vm0 = vnez %v8349_v30 }
  0x99   : > { %1472 = vmatmul.mubr.bf16.gmra.mxu0 %v4324_v52  ;;  %4060 = vmatprep.subr.msk.bf16.mxu1 %vm8458_vm3, %v4522_v54  ;;  %vm8462_vm3 = vnez %v8336_v21 }
  0x9a   : > { %1665 = vmatmul.mubr.bf16.gmra.mxu1 %v4324_v52  ;;  %1481 = vmatprep.mubr.bf16.mxu0 %v4325_v55  ;;  %v4328_v52 = vld [vmem:[%s8110_s2 + $0x44] ss:$8 sps:$4 sm:$0xff]  }
  0x9b   : > { %1674 = vmatprep.mubr.bf16.mxu1 %v4325_v55  ;;  %3998 = vmatpush1.bf16.msk.msra.mxu0 %vm8459_vm1, %v4522_v54  ;;  %vm8463_vm1 = vnez %v8339_v23  ;;  %v4330_v55 = vld [vmem:[%s8110_s2 + $0x40] ss:$8 sps:$4 sm:$0xff]  }
  0x9c   : > { %4062 = vmatpush1.bf16.msk.msra.mxu1 %vm8460_vm5, %v4522_v54  ;;  %4000 = vmatprep.subr.msk.bf16.mxu0 %vm8461_vm13, %v4522_v54  ;;  %vm8464_vm5 = vnez %v8341_v24  ;;  %vm8465_vm13 = vnez %v8343_v25 }
  0x9d   : > { %4064 = vmatprep.subr.msk.bf16.mxu1 %vm8462_vm3, %v4522_v54  ;;  %vm8466_vm3 = vnez %v8345_v26 }
  0x9f   : > { %4002 = vmatpush1.bf16.msk.msra.mxu0 %vm8463_vm1, %v4522_v54  ;;  %vm8468_vm1 = vnez %v8351_v31 }
  0xa0   : > { %4066 = vmatpush1.bf16.msk.msra.mxu1 %vm8464_vm5, %v4522_v54  ;;  %4004 = vmatprep.subr.msk.bf16.mxu0 %vm8465_vm13, %v4522_v54  ;;  %vm8469_vm5 = vnez %v8353_v32  ;;  %vm8475_vm13 = vnez %v8369_v28 }
  0xa1   : > { %1482 = vmatmul.mubr.bf16.gmra.mxu0 %v4327_v46  ;;  %4068 = vmatprep.subr.msk.bf16.mxu1 %vm8466_vm3, %v4522_v54  ;;  %vm8470_vm3 = vnez %v8355_v33 }
  0xa2   : > { %1675 = vmatmul.mubr.bf16.gmra.mxu1 %v4327_v46  ;;  %1491 = vmatprep.mubr.bf16.mxu0 %v4328_v52  ;;  %v4331_v46 = vld [vmem:[%s8110_s2 + $0x54] ss:$8 sps:$4 sm:$0xff]  }
  0xa3   : > { %1684 = vmatprep.mubr.bf16.mxu1 %v4328_v52  ;;  %4006 = vmatpush1.bf16.msk.msra.mxu0 %vm8467_vm0, %v4522_v54  ;;  %vm8471_vm0 = vnez %v8359_v40  ;;  %v4333_v52 = vld [vmem:[%s8110_s2 + $0x50] ss:$8 sps:$4 sm:$0xff]  }
  0xa4   : > { %4070 = vmatpush1.bf16.msk.msra.mxu1 %vm8468_vm1, %v4522_v54  ;;  %4008 = vmatprep.subr.msk.bf16.mxu0 %vm8469_vm5, %v4522_v54  ;;  %vm8472_vm1 = vnez %v8361_v42  ;;  %vm8473_vm5 = vnez %v8363_v44 }
  0xa5   : > { %4072 = vmatprep.subr.msk.bf16.mxu1 %vm8470_vm3, %v4522_v54  ;;  %vm8474_vm3 = vnez %v8365_v45 }
  0xa7   : > { %4010 = vmatpush1.bf16.msk.msra.mxu0 %vm8471_vm0, %v4522_v54  ;;  %vm8476_vm0 = vnez %v8371_v38 }
  0xa8   : > { %4074 = vmatpush1.bf16.msk.msra.mxu1 %vm8472_vm1, %v4522_v54  ;;  %4012 = vmatprep.subr.msk.bf16.mxu0 %vm8473_vm5, %v4522_v54  ;;  %vm8477_vm1 = vnez %v8373_v50  ;;  %vm8483_vm5 = vnez %v8389_v27 }
  0xa9   : > { %1492 = vmatmul.mubr.bf16.gmra.mxu0 %v4330_v55  ;;  %4076 = vmatprep.subr.msk.bf16.mxu1 %vm8474_vm3, %v4522_v54  ;;  %vm8478_vm3 = vnez %v8375_v49 }
  0xaa   : > { %1685 = vmatmul.mubr.bf16.gmra.mxu1 %v4330_v55  ;;  %1501 = vmatprep.mubr.bf16.mxu0 %v4331_v46  ;;  %v4334_v55 = vld [vmem:[%s8110_s2 + $0x64] ss:$8 sps:$4 sm:$0xff]  }
  0xab   : > { %1694 = vmatprep.mubr.bf16.mxu1 %v4331_v46  ;;  %4014 = vmatpush2.bf16.msk.msra.mxu0 %vm8475_vm13, %v4522_v54  ;;  %vm8479_vm13 = vnez %v8379_v36  ;;  %v4336_v46 = vld [vmem:[%s8110_s2 + $0x60] ss:$8 sps:$4 sm:$0xff]  }
  0xac   : > { %4078 = vmatpush2.bf16.msk.msra.mxu1 %vm8476_vm0, %v4522_v54  ;;  %4016 = vmatprep.subr.msk.bf16.mxu0 %vm8477_vm1, %v4522_v54  ;;  %vm8480_vm0 = vnez %v8381_v56  ;;  %vm8481_vm1 = vnez %v8383_v63 }
  0xad   : > { %4080 = vmatprep.subr.msk.bf16.mxu1 %vm8478_vm3, %v4522_v54  ;;  %vm8482_vm3 = vnez %v8385_v62 }
  0xaf   : > { %4018 = vmatpush2.bf16.msk.msra.mxu0 %vm8479_vm13, %v4522_v54  ;;  %vm8484_vm13 = vnez %v8391_v4 }
  0xb0   : > { %4082 = vmatpush2.bf16.msk.msra.mxu1 %vm8480_vm0, %v4522_v54  ;;  %4020 = vmatprep.subr.msk.bf16.mxu0 %vm8481_vm1, %v4522_v54  ;;  %vm8485_vm0 = vnez %v8393_v11  ;;  %vm8491_vm1 = vnez %v8410_v39  ;;  %v8497_v39 = vld [vmem:[#allocation47_spill] sm:$0xff] }
  0xb1   : > { %1502 = vmatmul.mubr.bf16.gmra.mxu0 %v4333_v52  ;;  %4084 = vmatprep.subr.msk.bf16.mxu1 %vm8482_vm3, %v4522_v54  ;;  %vm8486_vm3 = vnez %v8395_v10 }
  0xb2   : > { %1695 = vmatmul.mubr.bf16.gmra.mxu1 %v4333_v52  ;;  %1511 = vmatprep.mubr.bf16.mxu0 %v4334_v55  ;;  %v4337_v52 = vld [vmem:[%s8110_s2 + $0x74] ss:$8 sps:$4 sm:$0xff]  }
  0xb3   : > { %1704 = vmatprep.mubr.bf16.mxu1 %v4334_v55  ;;  %4022 = vmatpush2.bf16.msk.msra.mxu0 %vm8483_vm5, %v4522_v54  ;;  %vm8487_vm5 = vnez %v8399_v35  ;;  %v8492_v55 = vld [vmem:[#allocation43_spill] sm:$0xff] }
  0xb4   : > { %4086 = vmatpush2.bf16.msk.msra.mxu1 %vm8484_vm13, %v4522_v54  ;;  %4024 = vmatprep.subr.msk.bf16.mxu0 %vm8485_vm0, %v4522_v54  ;;  %vm8488_vm13 = vnez %v8401_v16  ;;  %vm8489_vm0 = vnez %v8403_v22 }
  0xb5   : > { %4088 = vmatprep.subr.msk.bf16.mxu1 %vm8486_vm3, %v4522_v54  ;;  %vm8490_vm3 = vnez %v8405_v43  ;;  %v4339_v43 = vld [vmem:[%s8110_s2 + $0x70] ss:$8 sps:$4 sm:$0xff]  }
  0xb7   : > { %4026 = vmatpush2.bf16.msk.msra.mxu0 %vm8487_vm5, %v4522_v54  ;;  %vm8493_vm5 = vnez %v8492_v55 }
  0xb8   : > { %4090 = vmatpush2.bf16.msk.msra.mxu1 %vm8488_vm13, %v4522_v54  ;;  %4028 = vmatprep.subr.msk.bf16.mxu0 %vm8489_vm0, %v4522_v54  ;;  %vm8494_vm13 = vnez %v8416_v37  ;;  %vm8502_vm0 = vnez %v8433_v5 }
  0xb9   : > { %1512 = vmatmul.mubr.bf16.gmra.mxu0 %v4336_v46  ;;  %4092 = vmatprep.subr.msk.bf16.mxu1 %vm8490_vm3, %v4522_v54 }
  0xba   : > { %1705 = vmatmul.mubr.bf16.gmra.mxu1 %v4336_v46  ;;  %1521 = vmatprep.mubr.bf16.mxu0 %v4337_v52  ;;  %v8495_v46 = vld [vmem:[#allocation44_spill] sm:$0xff] }
  0xbb   : > { %1714 = vmatprep.mubr.bf16.mxu1 %v4337_v52  ;;  %4030 = vmatpush2.bf16.msk.msra.mxu0 %vm8491_vm1, %v4522_v54  ;;  %vm8496_vm3 = vnez %v8495_v46  ;;  %v4340_v52 = vld [vmem:[%s8110_s2 + $0x84] ss:$8 sps:$4 sm:$0xff]   ;;  %vm8498_vm1 = vnez %v8497_v39 }
  0xbc   : > { %4094 = vmatpush2.bf16.msk.msra.mxu1 %vm8493_vm5, %v4522_v54  ;;  %4032 = vmatprep.subr.msk.bf16.mxu0 %vm8494_vm13, %v4522_v54  ;;  %vm8499_vm5 = vnez %v8426_v29  ;;  %vm8500_vm13 = vnez %v8428_v34  ;;  %v4390_v29 = vld [vmem:[%s8109_s1 + $0x80] ss:$8 sps:$4 sm:$0xff]   ;;  %v4391_v34 = vld [vmem:[%s8109_s1 + $0x94] ss:$8 sps:$4 sm:$0xff]  }
  0xbd   : > { %4096 = vmatprep.subr.msk.bf16.mxu1 %vm8496_vm3, %v4522_v54  ;;  %vm8501_vm3 = vnez %v8430_v57  ;;  %v4342_v57 = vld [vmem:[%s8110_s2 + $0x80] ss:$8 sps:$4 sm:$0xff]  }
  0xbf   : > { %4034 = vmatpush2.bf16.msk.msra.mxu0 %vm8498_vm1, %v4522_v54 }
  0xc0   : > { %4098 = vmatpush2.bf16.msk.msra.mxu1 %vm8499_vm5, %v4522_v54  ;;  %4036 = vmatprep.subr.msk.bf16.mxu0 %vm8500_vm13, %v4522_v54 }
  0xc1   : > { %1522 = vmatmul.mubr.bf16.gmra.mxu0 %v4339_v43  ;;  %4100 = vmatprep.subr.msk.bf16.mxu1 %vm8501_vm3, %v4522_v54 }
  0xc2   : > { %1715 = vmatmul.mubr.bf16.gmra.mxu1 %v4339_v43  ;;  %1531 = vmatprep.mubr.bf16.mxu0 %v4340_v52  ;;  %v4343_v43 = vld [vmem:[%s8110_s2 + $0x94] ss:$8 sps:$4 sm:$0xff]  }
  0xc3   : > { %1724 = vmatprep.mubr.bf16.mxu1 %v4340_v52  ;;  %4038 = vmatpush2.bf16.msk.msra.mxu0 %vm8502_vm0, %v4522_v54  ;;  %v4355_v52 = vld [vmem:[%s8110_s2 + $0xd4] ss:$8 sps:$4 sm:$0xff]  }
  0xc4   : > { %4102 = vmatpush2.bf16.msk.msra.mxu1 %vm5391_vm11, %v4522_v54  ;;  %4040 = vmatprep.subr.msk.bf16.mxu0 %vm5402_vm10, %v4522_v54 }
  0xc5   : > { %4104 = vmatprep.subr.msk.bf16.mxu1 %vm5413_vm6, %v4522_v54 }
  0xc7   : > { %4042 = vmatpush2.bf16.msk.msra.mxu0 %vm5420_vm7, %v4522_v54 }
  0xc8   : > { %4106 = vmatpush2.bf16.msk.msra.mxu1 %vm5430_vm8, %v4522_v54  ;;  %4140 = vmatprep.subr.msk.bf16.mxu0 %vm4657_vm4, %v4522_v54  ;;  %vm8504_vm4 = vnez %v8300_v0  ;;  %v4376_v0 = vld [vmem:[%s8109_s1 + $0x44] ss:$8 sps:$4 sm:$0xff]  }
  0xc9   : > { %1532 = vmatmul.mubr.bf16.gmra.mxu0 %v4342_v57  ;;  %4204 = vmatprep.subr.msk.bf16.mxu1 %vm4672_vm9, %v4522_v54  ;;  %vm8505_vm9 = vnez %v8302_v1  ;;  %v4378_v1 = vld [vmem:[%s8109_s1 + $0x40] ss:$8 sps:$4 sm:$0xff]  }
  0xca   : > { %1725 = vmatmul.mubr.bf16.gmra.mxu1 %v4342_v57  ;;  %1541 = vmatprep.mubr.bf16.mxu0 %v4343_v43  ;;  %v4349_v57 = vld [vmem:[%s8110_s2 + $0xb4] ss:$8 sps:$4 sm:$0xff]  }
  0xcb   : > { %1734 = vmatprep.mubr.bf16.mxu1 %v4343_v43  ;;  %v4351_v43 = vld [vmem:[%s8110_s2 + $0xb0] ss:$8 sps:$4 sm:$0xff]  }
  0xd1   : > { %1542 = vmatmul.mubr.bf16.gmra.mxu0 %v4345_v41 }
  0xd2   : > { %1735 = vmatmul.mubr.bf16.gmra.mxu1 %v4345_v41  ;;  %1551 = vmatprep.mubr.bf16.mxu0 %v4346_v17  ;;  %v4352_v41 = vld [vmem:[%s8110_s2 + $0xc4] ss:$8 sps:$4 sm:$0xff]  }
  0xd3   : > { %1744 = vmatprep.mubr.bf16.mxu1 %v4346_v17  ;;  %v4354_v17 = vld [vmem:[%s8110_s2 + $0xc0] ss:$8 sps:$4 sm:$0xff]  }
  0xd9   : > { %1552 = vmatmul.mubr.bf16.gmra.mxu0 %v4348_v53 }
  0xda   : > { %1745 = vmatmul.mubr.bf16.gmra.mxu1 %v4348_v53  ;;  %1561 = vmatprep.mubr.bf16.mxu0 %v4349_v57  ;;  %v4357_v53 = vld [vmem:[%s8110_s2 + $0xd0] ss:$8 sps:$4 sm:$0xff]  }
  0xdb   : > { %1754 = vmatprep.mubr.bf16.mxu1 %v4349_v57  ;;  %v4358_v57 = vld [vmem:[%s8110_s2 + $0xe4] ss:$8 sps:$4 sm:$0xff]  }
  0xe1   : > { %1562 = vmatmul.mubr.bf16.gmra.mxu0 %v4351_v43 }
  0xe2   : > { %1755 = vmatmul.mubr.bf16.gmra.mxu1 %v4351_v43  ;;  %1571 = vmatprep.mubr.bf16.mxu0 %v4352_v41  ;;  %v4360_v43 = vld [vmem:[%s8110_s2 + $0xe0] ss:$8 sps:$4 sm:$0xff]  }
  0xe3   : > { %1764 = vmatprep.mubr.bf16.mxu1 %v4352_v41  ;;  %v4361_v41 = vld [vmem:[%s8110_s2 + $0xf4] ss:$8 sps:$4 sm:$0xff]  }
  0xe9   : > { %1572 = vmatmul.mubr.bf16.gmra.mxu0 %v4354_v17 }
  0xea   : > { %1765 = vmatmul.mubr.bf16.gmra.mxu1 %v4354_v17  ;;  %1581 = vmatprep.mubr.bf16.mxu0 %v4355_v52  ;;  %v4363_v17 = vld [vmem:[%s8110_s2 + $0xf0] ss:$8 sps:$4 sm:$0xff]  }
  0xeb   : > { %1774 = vmatprep.mubr.bf16.mxu1 %v4355_v52  ;;  %v4366_v52 = vld [vmem:[%s8109_s1 + $0x4] ss:$8 sps:$4 sm:$0xff]  }
  0xf1   : > { %1582 = vmatmul.mubr.bf16.gmra.mxu0 %v4357_v53 }
  0xf2   : > { %1775 = vmatmul.mubr.bf16.gmra.mxu1 %v4357_v53  ;;  %1591 = vmatprep.mubr.bf16.mxu0 %v4358_v57  ;;  %v4364_v53 = vld [vmem:[%s8109_s1] ss:$8 sps:$4 sm:$0xff]  }
  0xf3   : > { %1784 = vmatprep.mubr.bf16.mxu1 %v4358_v57  ;;  %v4367_v57 = vld [vmem:[%s8109_s1 + $0x14] ss:$8 sps:$4 sm:$0xff]  }
  0xf9   : > { %1592 = vmatmul.mubr.bf16.gmra.mxu0 %v4360_v43 }
  0xfa   : > { %1785 = vmatmul.mubr.bf16.gmra.mxu1 %v4360_v43  ;;  %1601 = vmatprep.mubr.bf16.mxu0 %v4361_v41  ;;  %v4369_v43 = vld [vmem:[%s8109_s1 + $0x10] ss:$8 sps:$4 sm:$0xff]  }
  0xfb   : > { %1794 = vmatprep.mubr.bf16.mxu1 %v4361_v41 }
 0x101   : > { %1602 = vmatmul.mubr.bf16.gmra.mxu0 %v4363_v17 }
 0x102   : > { %1795 = vmatmul.mubr.bf16.gmra.mxu1 %v4363_v17  ;;  %1997 = vmatprep.mubr.bf16.mxu0 %v4366_v52 }
 0x103   : > { %2190 = vmatprep.mubr.bf16.mxu1 %v4366_v52 }
 0x109   : > { %1998 = vmatmul.mubr.bf16.vlgmr.msra.gmra.mxu0 %v4364_v53 }
 0x10a   : > { %2191 = vmatmul.mubr.bf16.vlgmr.msra.gmra.mxu1 %v4364_v53  ;;  %4142 = vmatpush1.bf16.msk.msra.mxu0 %vm4689_vm12, %v4522_v54  ;;  %vm8506_vm12 = vnez %v8304_v2  ;;  %v4379_v2 = vld [vmem:[%s8109_s1 + $0x54] ss:$8 sps:$4 sm:$0xff]  }
 0x10b   : > { %4206 = vmatpush1.bf16.msk.msra.mxu1 %vm4700_vm15, %v4522_v54  ;;  %2007 = vmatprep.mubr.bf16.mxu0 %v4367_v57  ;;  %vm8507_vm15 = vnez %v8306_v3  ;;  %v4381_v3 = vld [vmem:[%s8109_s1 + $0x50] ss:$8 sps:$4 sm:$0xff]  }
 0x10c   : > { %2200 = vmatprep.mubr.bf16.mxu1 %v4367_v57  ;;  %4144 = vmatprep.subr.msk.bf16.mxu0 %vm4711_vm2, %v4522_v54  ;;  %vm8508_vm2 = vnez %v8310_v6  ;;  %v4382_v6 = vld [vmem:[%s8109_s1 + $0x64] ss:$8 sps:$4 sm:$0xff]  }
 0x10d   : > { %4208 = vmatprep.subr.msk.bf16.mxu1 %vm8446_vm14, %v4522_v54  ;;  %vm8509_vm14 = vnez %v8312_v7 }
 0x10e   : > { %4146 = vmatpush1.bf16.msk.msra.mxu0 %vm8504_vm4, %v4522_v54  ;;  %vm8510_vm4 = vnez %v8314_v8 }
 0x10f   : > { %4210 = vmatpush1.bf16.msk.msra.mxu1 %vm8505_vm9, %v4522_v54  ;;  %4148 = vmatprep.subr.msk.bf16.mxu0 %vm8506_vm12, %v4522_v54  ;;  %vm8511_vm9 = vnez %v8316_v9  ;;  %vm8512_vm12 = vnez %v8320_v12 }
 0x110   : > { %4212 = vmatprep.subr.msk.bf16.mxu1 %vm8507_vm15, %v4522_v54  ;;  %vm8513_vm15 = vnez %v8322_v13 }
 0x111   : > { %2008 = vmatmul.mubr.bf16.gmra.mxu0 %v4369_v43 }
 0x112   : > { %2201 = vmatmul.mubr.bf16.gmra.mxu1 %v4369_v43  ;;  %2017 = vmatprep.mubr.bf16.mxu0 %v4370_v58 }
 0x113   : > { %2210 = vmatprep.mubr.bf16.mxu1 %v4370_v58  ;;  %4150 = vmatpush1.bf16.msk.msra.mxu0 %vm8508_vm2, %v4522_v54  ;;  %vm8514_vm2 = vnez %v8324_v14 }
 0x114   : > { %4214 = vmatpush1.bf16.msk.msra.mxu1 %vm8509_vm14, %v4522_v54  ;;  %4152 = vmatprep.subr.msk.bf16.mxu0 %vm8510_vm4, %v4522_v54  ;;  %vm8515_vm14 = vnez %v8326_v15  ;;  %vm8516_vm4 = vnez %v8330_v18 }
 0x115   : > { %4216 = vmatprep.subr.msk.bf16.mxu1 %vm8511_vm9, %v4522_v54  ;;  %vm8517_vm9 = vnez %v8332_v19 }
 0x117   : > { %4154 = vmatpush1.bf16.msk.msra.mxu0 %vm8512_vm12, %v4522_v54  ;;  %vm8518_vm12 = vnez %v8334_v20 }
 0x118   : > { %4218 = vmatpush1.bf16.msk.msra.mxu1 %vm8513_vm15, %v4522_v54  ;;  %4156 = vmatprep.subr.msk.bf16.mxu0 %vm8514_vm2, %v4522_v54  ;;  %vm8519_vm15 = vnez %v8336_v21  ;;  %vm8520_vm2 = vnez %v8339_v23  ;;  %v4396_v21 = vld [vmem:[%s8109_s1 + $0xa0] ss:$8 sps:$4 sm:$0xff]   ;;  %v4397_v23 = vld [vmem:[%s8109_s1 + $0xb4] ss:$8 sps:$4 sm:$0xff]  }
 0x119   : > { %2018 = vmatmul.mubr.bf16.gmra.mxu0 %v4372_v59  ;;  %4220 = vmatprep.subr.msk.bf16.mxu1 %vm8515_vm14, %v4522_v54  ;;  %vm8521_vm14 = vnez %v8341_v24 }
 0x11a   : > { %2211 = vmatmul.mubr.bf16.gmra.mxu1 %v4372_v59  ;;  %2027 = vmatprep.mubr.bf16.mxu0 %v4373_v60  ;;  %v4403_v59 = vld [vmem:[%s8109_s1 + $0xd0] ss:$8 sps:$4 sm:$0xff]  }
 0x11b   : > { %2220 = vmatprep.mubr.bf16.mxu1 %v4373_v60  ;;  %4158 = vmatpush1.bf16.msk.msra.mxu0 %vm8516_vm4, %v4522_v54  ;;  %vm8522_vm4 = vnez %v8343_v25 }
 0x11c   : > { %4222 = vmatpush1.bf16.msk.msra.mxu1 %vm8517_vm9, %v4522_v54  ;;  %4160 = vmatprep.subr.msk.bf16.mxu0 %vm8518_vm12, %v4522_v54  ;;  %vm8523_vm9 = vnez %v8345_v26  ;;  %vm8524_vm12 = vnez %v8349_v30 }
 0x11d   : > { %4224 = vmatprep.subr.msk.bf16.mxu1 %vm8519_vm15, %v4522_v54  ;;  %vm8525_vm15 = vnez %v8351_v31 }
 0x11f   : > { %4162 = vmatpush1.bf16.msk.msra.mxu0 %vm8520_vm2, %v4522_v54  ;;  %vm8526_vm2 = vnez %v8353_v32  ;;  %v4399_v32 = vld [vmem:[%s8109_s1 + $0xb0] ss:$8 sps:$4 sm:$0xff]  }
 0x120   : > { %4226 = vmatpush1.bf16.msk.msra.mxu1 %vm8521_vm14, %v4522_v54  ;;  %4164 = vmatprep.subr.msk.bf16.mxu0 %vm8522_vm4, %v4522_v54  ;;  %vm8527_vm14 = vnez %v8355_v33  ;;  %vm8528_vm4 = vnez %v8359_v40 }
 0x121   : > { %2028 = vmatmul.mubr.bf16.gmra.mxu0 %v4375_v61  ;;  %4228 = vmatprep.subr.msk.bf16.mxu1 %vm8523_vm9, %v4522_v54  ;;  %vm8529_vm9 = vnez %v8361_v42 }
 0x122   : > { %2221 = vmatmul.mubr.bf16.gmra.mxu1 %v4375_v61  ;;  %2037 = vmatprep.mubr.bf16.mxu0 %v4376_v0  ;;  %v4408_v61 = vld [vmem:[%s8109_s1 + $0xe4] ss:$8 sps:$4 sm:$0xff]  }
 0x123   : > { %2230 = vmatprep.mubr.bf16.mxu1 %v4376_v0  ;;  %4166 = vmatpush1.bf16.msk.msra.mxu0 %vm8524_vm12, %v4522_v54  ;;  %vm8530_vm12 = vnez %v8363_v44 }
 0x124   : > { %4230 = vmatpush1.bf16.msk.msra.mxu1 %vm8525_vm15, %v4522_v54  ;;  %4168 = vmatprep.subr.msk.bf16.mxu0 %vm8526_vm2, %v4522_v54  ;;  %vm8531_vm15 = vnez %v8365_v45  ;;  %vm8532_vm2 = vnez %v8369_v28 }
 0x125   : > { %4232 = vmatprep.subr.msk.bf16.mxu1 %vm8527_vm14, %v4522_v54  ;;  %vm8533_vm14 = vnez %v8371_v38  ;;  %v4384_v38 = vld [vmem:[%s8109_s1 + $0x60] ss:$8 sps:$4 sm:$0xff]  }
 0x127   : > { %4170 = vmatpush1.bf16.msk.msra.mxu0 %vm8528_vm4, %v4522_v54  ;;  %vm8534_vm4 = vnez %v8373_v50  ;;  %v8547_v50 = vld [vmem:[#allocation39_spill] sm:$0xff] }
 0x128   : > { %4234 = vmatpush1.bf16.msk.msra.mxu1 %vm8529_vm9, %v4522_v54  ;;  %4172 = vmatprep.subr.msk.bf16.mxu0 %vm8530_vm12, %v4522_v54  ;;  %vm8535_vm9 = vnez %v8375_v49  ;;  %vm8536_vm12 = vnez %v8379_v36  ;;  %v4385_v49 = vld [vmem:[%s8109_s1 + $0x74] ss:$8 sps:$4 sm:$0xff]  }
 0x129   : > { %2038 = vmatmul.mubr.bf16.gmra.mxu0 %v4378_v1  ;;  %4236 = vmatprep.subr.msk.bf16.mxu1 %vm8531_vm15, %v4522_v54  ;;  %vm8537_vm15 = vnez %v8381_v56  ;;  %v8549_v56 = vld [vmem:[#allocation42_spill] sm:$0xff] }
 0x12a   : > { %2231 = vmatmul.mubr.bf16.gmra.mxu1 %v4378_v1  ;;  %2047 = vmatprep.mubr.bf16.mxu0 %v4379_v2 }
 0x12b   : > { %2240 = vmatprep.mubr.bf16.mxu1 %v4379_v2  ;;  %4174 = vmatpush2.bf16.msk.msra.mxu0 %vm8532_vm2, %v4522_v54  ;;  %vm8538_vm2 = vnez %v8383_v63  ;;  %v4388_v63 = vld [vmem:[%s8109_s1 + $0x84] ss:$8 sps:$4 sm:$0xff]  }
 0x12c   : > { %4238 = vmatpush2.bf16.msk.msra.mxu1 %vm8533_vm14, %v4522_v54  ;;  %4176 = vmatprep.subr.msk.bf16.mxu0 %vm8534_vm4, %v4522_v54  ;;  %vm8539_vm14 = vnez %v8385_v62  ;;  %vm8540_vm4 = vnez %v8389_v27  ;;  %v4387_v62 = vld [vmem:[%s8109_s1 + $0x70] ss:$8 sps:$4 sm:$0xff]  }
 0x12d   : > { %4240 = vmatprep.subr.msk.bf16.mxu1 %vm8535_vm9, %v4522_v54  ;;  %vm8541_vm9 = vnez %v8391_v4 }
 0x12f   : > { %4178 = vmatpush2.bf16.msk.msra.mxu0 %vm8536_vm12, %v4522_v54  ;;  %vm8542_vm12 = vnez %v8393_v11  ;;  %v4393_v11 = vld [vmem:[%s8109_s1 + $0x90] ss:$8 sps:$4 sm:$0xff]  }
 0x130   : > { %4242 = vmatpush2.bf16.msk.msra.mxu1 %vm8537_vm15, %v4522_v54  ;;  %4180 = vmatprep.subr.msk.bf16.mxu0 %vm8538_vm2, %v4522_v54  ;;  %vm8543_vm15 = vnez %v8395_v10  ;;  %vm8544_vm2 = vnez %v8399_v35  ;;  %v4402_v35 = vld [vmem:[%s8109_s1 + $0xc4] ss:$8 sps:$4 sm:$0xff]  }
 0x131   : > { %2048 = vmatmul.mubr.bf16.gmra.mxu0 %v4381_v3  ;;  %4244 = vmatprep.subr.msk.bf16.mxu1 %vm8539_vm14, %v4522_v54  ;;  %vm8545_vm14 = vnez %v8401_v16 }
 0x132   : > { %2241 = vmatmul.mubr.bf16.gmra.mxu1 %v4381_v3  ;;  %2057 = vmatprep.mubr.bf16.mxu0 %v4382_v6 }
 0x133   : > { %2250 = vmatprep.mubr.bf16.mxu1 %v4382_v6  ;;  %4182 = vmatpush2.bf16.msk.msra.mxu0 %vm8540_vm4, %v4522_v54  ;;  %vm8546_vm4 = vnez %v8403_v22 }
 0x134   : > { %4246 = vmatpush2.bf16.msk.msra.mxu1 %vm8541_vm9, %v4522_v54  ;;  %4184 = vmatprep.subr.msk.bf16.mxu0 %vm8542_vm12, %v4522_v54  ;;  %vm8548_vm9 = vnez %v8547_v50  ;;  %vm8550_vm12 = vnez %v8549_v56  ;;  %v4406_v50 = vld [vmem:[%s8109_s1 + $0xe0] ss:$8 sps:$4 sm:$0xff]  }
 0x135   : > { %4248 = vmatprep.subr.msk.bf16.mxu1 %vm8543_vm15, %v4522_v54  ;;  %vm8551_vm15 = vnez %v8492_v55 }
 0x137   : > { %4186 = vmatpush2.bf16.msk.msra.mxu0 %vm8544_vm2, %v4522_v54  ;;  %vm8552_vm2 = vnez %v8416_v37 }
 0x138   : > { %4250 = vmatpush2.bf16.msk.msra.mxu1 %vm8545_vm14, %v4522_v54  ;;  %4188 = vmatprep.subr.msk.bf16.mxu0 %vm8546_vm4, %v4522_v54  ;;  %vm8553_vm14 = vnez %v8495_v46  ;;  %v4405_v46 = vld [vmem:[%s8109_s1 + $0xd4] ss:$8 sps:$4 sm:$0xff]  }
 0x139   : > { %2058 = vmatmul.mubr.bf16.gmra.mxu0 %v4384_v38  ;;  %4252 = vmatprep.subr.msk.bf16.mxu1 %vm8548_vm9, %v4522_v54 }
 0x13a   : > { %2251 = vmatmul.mubr.bf16.gmra.mxu1 %v4384_v38  ;;  %2067 = vmatprep.mubr.bf16.mxu0 %v4385_v49 }
 0x13b   : > { %2260 = vmatprep.mubr.bf16.mxu1 %v4385_v49  ;;  %4190 = vmatpush2.bf16.msk.msra.mxu0 %vm8550_vm12, %v4522_v54 }
 0x13c   : > { %4254 = vmatpush2.bf16.msk.msra.mxu1 %vm8551_vm15, %v4522_v54  ;;  %4192 = vmatprep.subr.msk.bf16.mxu0 %vm8552_vm2, %v4522_v54 }
 0x13d   : > { %4256 = vmatprep.subr.msk.bf16.mxu1 %vm8553_vm14, %v4522_v54 }
 0x13f   : > { %4194 = vmatpush2.bf16.msk.msra.mxu0 %vm8498_vm1, %v4522_v54 }
 0x140   : > { %4258 = vmatpush2.bf16.msk.msra.mxu1 %vm8499_vm5, %v4522_v54  ;;  %4196 = vmatprep.subr.msk.bf16.mxu0 %vm8500_vm13, %v4522_v54 }
 0x141   : > { %2068 = vmatmul.mubr.bf16.gmra.mxu0 %v4387_v62  ;;  %4260 = vmatprep.subr.msk.bf16.mxu1 %vm8501_vm3, %v4522_v54 }
 0x142   : > { %2261 = vmatmul.mubr.bf16.gmra.mxu1 %v4387_v62  ;;  %2077 = vmatprep.mubr.bf16.mxu0 %v4388_v63  ;;  %v4411_v62 = vld [vmem:[%s8109_s1 + $0xf4] ss:$8 sps:$4 sm:$0xff]  }
 0x143   : > { %2270 = vmatprep.mubr.bf16.mxu1 %v4388_v63  ;;  %4198 = vmatpush2.bf16.msk.msra.mxu0 %vm8502_vm0, %v4522_v54 }
 0x144   : > { %4262 = vmatpush2.bf16.msk.msra.mxu1 %vm5391_vm11, %v4522_v54  ;;  %4200 = vmatprep.subr.msk.bf16.mxu0 %vm5402_vm10, %v4522_v54 }
 0x145   : > { %4264 = vmatprep.subr.msk.bf16.mxu1 %vm5413_vm6, %v4522_v54 }
 0x147   : > { %4202 = vmatpush2.bf16.msk.msra.mxu0 %vm5420_vm7, %v4522_v54 }
 0x148   : > { %4266 = vmatpush2.bf16.msk.msra.mxu1 %vm5430_vm8, %v4522_v54  ;;  %v4394_v54 = vld [vmem:[%s8109_s1 + $0xa4] ss:$8 sps:$4 sm:$0xff]  }
 0x149   : > { %v5968_v5 = vpop.f32.mrf.mxu0  ;;  %2078 = vmatmul.mubr.bf16.gmra.mxu0 %v4390_v29 }
 0x14a   : > { %v5970_v7 = vpop.f32.mrf.mxu1  ;;  %2271 = vmatmul.mubr.bf16.gmra.mxu1 %v4390_v29  ;;  %2087 = vmatprep.mubr.bf16.mxu0 %v4391_v34 }
 0x14b   : > { %v5972_v8 = vpop.f32.mrf.mxu0  ;;  %2280 = vmatprep.mubr.bf16.mxu1 %v4391_v34 }
 0x14c   : > { %v5974_v9 = vpop.f32.mrf.mxu1 }
 0x14d   : > { %v5976_v10 = vpop.f32.mrf.mxu0 }
 0x14e   : > { %v5981_v12 = vpop.f32.mrf.mxu1 }
 0x14f   : > { %v5986_v13 = vpop.f32.mrf.mxu0 }
 0x150   : > { %v5988_v14 = vpop.f32.mrf.mxu1 }
 0x151   : > { %v5990_v15 = vpop.f32.mrf.mxu0  ;;  %2088 = vmatmul.mubr.bf16.gmra.mxu0 %v4393_v11 }
 0x152   : > { %v5992_v16 = vpop.f32.mrf.mxu1  ;;  %2281 = vmatmul.mubr.bf16.gmra.mxu1 %v4393_v11  ;;  %2097 = vmatprep.mubr.bf16.mxu0 %v4394_v54 }
 0x153   : > { %v5994_v18 = vpop.f32.mrf.mxu0  ;;  %2290 = vmatprep.mubr.bf16.mxu1 %v4394_v54  ;;  %v4409_v54 = vld [vmem:[%s8109_s1 + $0xf0] ss:$8 sps:$4 sm:$0xff]  }
 0x154   : > { %v5996_v19 = vpop.f32.mrf.mxu1 }
 0x155   : > { %v5998_v20 = vpop.f32.mrf.mxu0 }
 0x156   : > { %v6003_v22 = vpop.f32.mrf.mxu1 }
 0x157   : > { %v6008_v24 = vpop.f32.mrf.mxu0 }
 0x158   : > { %v6010_v25 = vpop.f32.mrf.mxu1 }
 0x159   : > { %v6012_v26 = vpop.f32.mrf.mxu0  ;;  %2098 = vmatmul.mubr.bf16.gmra.mxu0 %v4396_v21 }
 0x15a   : > { %v6014_v27 = vpop.f32.mrf.mxu1  ;;  %2291 = vmatmul.mubr.bf16.gmra.mxu1 %v4396_v21  ;;  %2107 = vmatprep.mubr.bf16.mxu0 %v4397_v23 }
 0x15b   : > { %v6016_v28 = vpop.f32.mrf.mxu0  ;;  %2300 = vmatprep.mubr.bf16.mxu1 %v4397_v23  ;;  %v4414_v23 = vld [vmem:[%s8111_s3 + $0x4] ss:$8 sps:$4 sm:$0xff]  }
 0x15c   : > { %v6018_v30 = vpop.f32.mrf.mxu1 }
 0x15d   : > { %v6020_v31 = vpop.f32.mrf.mxu0 }
 0x15e   : > { %v6025_v33 = vpop.f32.mrf.mxu1 }
 0x15f   : > { %v6030_v36 = vpop.f32.mrf.mxu0 }
 0x160   : > { %v6032_v40 = vpop.f32.mrf.mxu1 }
 0x161   : > { %v6034_v42 = vpop.f32.mrf.mxu0  ;;  %2108 = vmatmul.mubr.bf16.gmra.mxu0 %v4399_v32 }
 0x162   : > { %8557 = vst [vmem:[#allocation43_spill] sm:$0xff] %v6034_v42  ;;  %v6036_v44 = vpop.f32.mrf.mxu1  ;;  %2301 = vmatmul.mubr.bf16.gmra.mxu1 %v4399_v32  ;;  %2117 = vmatprep.mubr.bf16.mxu0 %v4402_v35 }
 0x163   : > { %8558 = vst [vmem:[#allocation44_spill] sm:$0xff] %v6036_v44  ;;  %v6038_v45 = vpop.f32.mrf.mxu0  ;;  %2310 = vmatprep.mubr.bf16.mxu1 %v4402_v35 }
 0x164   : > { %8559 = vst [vmem:[#allocation47_spill] sm:$0xff] %v6038_v45  ;;  %v6040_v47 = vpop.f32.mrf.mxu1 }
 0x165   : > { %8560 = vst [vmem:[#allocation15_spill] sm:$0xff] %v6040_v47  ;;  %v6042_v48 = vpop.f32.mrf.mxu0 }
 0x166   : > { %8561 = vst [vmem:[#allocation39_spill] sm:$0xff] %v6042_v48  ;;  %v6047_v55 = vpop.f32.mrf.mxu1  ;;  %v8669_v48 = vld [vmem:[#allocation6_spill] sm:$0xff] }
 0x167   : > { %8562 = vst [vmem:[#allocation42_spill] sm:$0xff] %v6047_v55  ;;  %v6052_v41 = vpop.f32.mrf.mxu0 }
 0x168   : > { %8563 = vst [vmem:[#allocation48_spill] sm:$0xff] %v6052_v41  ;;  %v6054_v17 = vpop.f32.mrf.mxu1  ;;  %v4453_v41 = vld [vmem:[%s8111_s3 + $0xd4] ss:$8 sps:$4 sm:$0xff]  }
 0x169   : > { %8564 = vst [vmem:[#allocation49_spill] sm:$0xff] %v6054_v17  ;;  %v6056_v52 = vpop.f32.mrf.mxu0  ;;  %2118 = vmatmul.mubr.bf16.gmra.mxu0 %v4400_v51 }
 0x16a   : > { %8565 = vst [vmem:[#allocation50_spill] sm:$0xff] %v6056_v52  ;;  %v6058_v53 = vpop.f32.mrf.mxu1  ;;  %2311 = vmatmul.mubr.bf16.gmra.mxu1 %v4400_v51  ;;  %2127 = vmatprep.mubr.bf16.mxu0 %v4405_v46  ;;  %v4448_v52 = vld [vmem:[%s8111_s3 + $0xc0] ss:$8 sps:$4 sm:$0xff]  }
 0x16b   : > { %8566 = vst [vmem:[#allocation51_spill] sm:$0xff] %v6058_v53  ;;  %v6060_v57 = vpop.f32.mrf.mxu0  ;;  %2320 = vmatprep.mubr.bf16.mxu1 %v4405_v46 }
 0x16c   : > { %8567 = vst [vmem:[#allocation52_spill] sm:$0xff] %v6060_v57  ;;  %v6062_v43 = vpop.f32.mrf.mxu1 }
 0x16d   : > { %8568 = vst [vmem:[#allocation53_spill] sm:$0xff] %v6062_v43  ;;  %v6064_v58 = vpop.f32.mrf.mxu0 }
 0x16e   : > { %8569 = vst [vmem:[#allocation54_spill] sm:$0xff] %v6064_v58  ;;  %v6069_v60 = vpop.f32.mrf.mxu1 }
 0x16f   : > { %8570 = vst [vmem:[#allocation55_spill] sm:$0xff] %v6069_v60  ;;  %v6074_v0 = vpop.f32.mrf.mxu0 }
 0x170   : > { %8571 = vst [vmem:[#allocation56_spill] sm:$0xff] %v6074_v0  ;;  %v6076_v1 = vpop.f32.mrf.mxu1  ;;  %v4450_v0 = vld [vmem:[%s8111_s3 + $0xc4] ss:$8 sps:$4 sm:$0xff]  }
 0x171   : > { %8572 = vst [vmem:[#allocation57_spill] sm:$0xff] %v6076_v1  ;;  %v6078_v2 = vpop.f32.mrf.mxu0  ;;  %2128 = vmatmul.mubr.bf16.gmra.mxu0 %v4403_v59 }
 0x172   : > { %8573 = vst [vmem:[#allocation58_spill] sm:$0xff] %v6078_v2  ;;  %v6080_v3 = vpop.f32.mrf.mxu1  ;;  %2321 = vmatmul.mubr.bf16.gmra.mxu1 %v4403_v59  ;;  %2137 = vmatprep.mubr.bf16.mxu0 %v4408_v61  ;;  %v4445_v2 = vld [vmem:[%s8111_s3 + $0xb0] ss:$8 sps:$4 sm:$0xff]  }
 0x173   : > { %8574 = vst [vmem:[#allocation59_spill] sm:$0xff] %v6080_v3  ;;  %v6082_v6 = vpop.f32.mrf.mxu0  ;;  %2330 = vmatprep.mubr.bf16.mxu1 %v4408_v61 }
 0x174   : > { %8575 = vst [vmem:[#allocation60_spill] sm:$0xff] %v6082_v6  ;;  %v6084_v38 = vpop.f32.mrf.mxu1 }
 0x175   : > { %8576 = vst [vmem:[#allocation61_spill] sm:$0xff] %v6084_v38  ;;  %v6086_v49 = vpop.f32.mrf.mxu0 }
 0x176   : > { %8577 = vst [vmem:[#allocation62_spill] sm:$0xff] %v6086_v49  ;;  %v6091_v56 = vpop.f32.mrf.mxu1 }
 0x177   : > { %8578 = vst [vmem:[#allocation63_spill] sm:$0xff] %v6091_v56  ;;  %v6096_v63 = vpop.f32.mrf.mxu0 }
 0x178   : > { %8579 = vst [vmem:[#allocation64_spill] sm:$0xff] %v6096_v63  ;;  %v6098_v37 = vpop.f32.mrf.mxu1  ;;  %v4447_v63 = vld [vmem:[%s8111_s3 + $0xb4] ss:$8 sps:$4 sm:$0xff]  }
 0x179   : > { %8580 = vst [vmem:[#allocation65_spill] sm:$0xff] %v6098_v37  ;;  %v6100_v29 = vpop.f32.mrf.mxu0  ;;  %2138 = vmatmul.mubr.bf16.gmra.mxu0 %v4406_v50 }
 0x17a   : > { %8581 = vst [vmem:[#allocation66_spill] sm:$0xff] %v6100_v29  ;;  %v6102_v34 = vpop.f32.mrf.mxu1  ;;  %2331 = vmatmul.mubr.bf16.gmra.mxu1 %v4406_v50  ;;  %2147 = vmatprep.mubr.bf16.mxu0 %v4411_v62  ;;  %v4442_v29 = vld [vmem:[%s8111_s3 + $0xa0] ss:$8 sps:$4 sm:$0xff]  }
 0x17b   : > { %8582 = vst [vmem:[#allocation67_spill] sm:$0xff] %v6102_v34  ;;  %v6104_v39 = vpop.f32.mrf.mxu0  ;;  %2340 = vmatprep.mubr.bf16.mxu1 %v4411_v62  ;;  %v4412_v62 = vld [vmem:[%s8111_s3] ss:$8 sps:$4 sm:$0xff]  }
 0x17c   : > { %8583 = vst [vmem:[#allocation68_spill] sm:$0xff] %v6104_v39  ;;  %v6106_v4 = vpop.f32.mrf.mxu1 }
 0x17d   : > { %8584 = vst [vmem:[#allocation69_spill] sm:$0xff] %v6106_v4  ;;  %v6108_v11 = vpop.f32.mrf.mxu0 }
 0x17e   : > { %8585 = vst [vmem:[#allocation70_spill] sm:$0xff] %v6108_v11  ;;  %v6113_v21 = vpop.f32.mrf.mxu1 }
 0x17f   : > { %8586 = vst [vmem:[#allocation71_spill] sm:$0xff] %v6113_v21  ;;  %v6118_v32 = vpop.f32.mrf.mxu0 }
 0x180   : > { %8587 = vst [vmem:[#allocation72_spill] sm:$0xff] %v6118_v32  ;;  %v6120_v35 = vpop.f32.mrf.mxu1 }
 0x181   : > { %8588 = vst [vmem:[#allocation73_spill] sm:$0xff] %v6120_v35  ;;  %v6122_v51 = vpop.f32.mrf.mxu0  ;;  %2148 = vmatmul.mubr.bf16.gmra.mxu0 %v4409_v54 }
 0x182   : > { %8589 = vst [vmem:[#allocation74_spill] sm:$0xff] %v6122_v51  ;;  %v6124_v46 = vpop.f32.mrf.mxu1  ;;  %2341 = vmatmul.mubr.bf16.gmra.mxu1 %v4409_v54  ;;  %2575 = vmatprep.mubr.bf16.mxu0 %v4414_v23  ;;  %v4417_v51 = vld [vmem:[%s8111_s3 + $0x14] ss:$8 sps:$4 sm:$0xff]  }
 0x183   : > { %8590 = vst [vmem:[#allocation75_spill] sm:$0xff] %v6124_v46  ;;  %v6126_v59 = vpop.f32.mrf.mxu0  ;;  %2768 = vmatprep.mubr.bf16.mxu1 %v4414_v23 }
 0x184   : > { %8591 = vst [vmem:[#allocation76_spill] sm:$0xff] %v6126_v59  ;;  %v6128_v61 = vpop.f32.mrf.mxu1 }
 0x185   : > { %8592 = vst [vmem:[#allocation77_spill] sm:$0xff] %v6128_v61  ;;  %v6130_v50 = vpop.f32.mrf.mxu0 }
 0x186   : > { %8593 = vst [vmem:[#allocation78_spill] sm:$0xff] %v6130_v50  ;;  %v6135_v32 = vpop.f32.mrf.mxu1 }
 0x187   : > { %8594 = vst [vmem:[#allocation79_spill] sm:$0xff] %v6135_v32  ;;  %v6140_v46 = vpop.f32.mrf.mxu0 }
 0x188   : > { %8595 = vst [vmem:[#allocation80_spill] sm:$0xff] %v6140_v46  ;;  %v6142_v54 = vpop.f32.mrf.mxu1  ;;  %v4415_v46 = vld [vmem:[%s8111_s3 + $0x10] ss:$8 sps:$4 sm:$0xff]  }
 0x189   : > { %8596 = vst [vmem:[#allocation81_spill] sm:$0xff] %v6142_v54  ;;  %v6144_v59 = vpop.f32.mrf.mxu0  ;;  %2576 = vmatmul.mubr.bf16.vlgmr.msra.gmra.mxu0 %v4412_v62 }
 0x18a   : > { %8597 = vst [vmem:[#allocation82_spill] sm:$0xff] %v6144_v59  ;;  %v6146_v23 = vpop.f32.mrf.mxu1  ;;  %2769 = vmatmul.mubr.bf16.vlgmr.msra.gmra.mxu1 %v4412_v62  ;;  %2585 = vmatprep.mubr.bf16.mxu0 %v4417_v51  ;;  %v4420_v59 = vld [vmem:[%s8111_s3 + $0x24] ss:$8 sps:$4 sm:$0xff]  }
 0x18b   : > { %8598 = vst [vmem:[#allocation83_spill] sm:$0xff] %v6146_v23  ;;  %v6148_v50 = vpop.f32.mrf.mxu0  ;;  %2778 = vmatprep.mubr.bf16.mxu1 %v4417_v51 }
 0x18c   : > { %8599 = vst [vmem:[#allocation84_spill] sm:$0xff] %v6148_v50  ;;  %v6150_v61 = vpop.f32.mrf.mxu1 }
 0x18d   : > { %8600 = vst [vmem:[#allocation85_spill] sm:$0xff] %v6150_v61  ;;  %v6152_v32 = vpop.f32.mrf.mxu0 }
 0x18e   : > { %8601 = vst [vmem:[#allocation86_spill] sm:$0xff] %v6152_v32  ;;  %v6157_v35 = vpop.f32.mrf.mxu1 }
 0x18f   : > { %8602 = vst [vmem:[#allocation87_spill] sm:$0xff] %v6157_v35  ;;  %v6162_v23 = vpop.f32.mrf.mxu0 }
 0x190   : > { %8603 = vst [vmem:[#allocation88_spill] sm:$0xff] %v6162_v23  ;;  %v6164_v62 = vpop.f32.mrf.mxu1  ;;  %v4418_v23 = vld [vmem:[%s8111_s3 + $0x20] ss:$8 sps:$4 sm:$0xff]  }
 0x191   : > { %8604 = vst [vmem:[#allocation89_spill] sm:$0xff] %v6164_v62  ;;  %v6166_v50 = vpop.f32.mrf.mxu0  ;;  %2586 = vmatmul.mubr.bf16.gmra.mxu0 %v4415_v46 }
 0x192   : > { %8605 = vst [vmem:[#allocation90_spill] sm:$0xff] %v6166_v50  ;;  %v6168_v51 = vpop.f32.mrf.mxu1  ;;  %2779 = vmatmul.mubr.bf16.gmra.mxu1 %v4415_v46  ;;  %2595 = vmatprep.mubr.bf16.mxu0 %v4420_v59  ;;  %v4423_v50 = vld [vmem:[%s8111_s3 + $0x34] ss:$8 sps:$4 sm:$0xff]  }
 0x193   : > { %8606 = vst [vmem:[#allocation91_spill] sm:$0xff] %v6168_v51  ;;  %v6170_v32 = vpop.f32.mrf.mxu0  ;;  %2788 = vmatprep.mubr.bf16.mxu1 %v4420_v59 }
 0x194   : > { %8607 = vst [vmem:[#allocation92_spill] sm:$0xff] %v6170_v32  ;;  %v6172_v61 = vpop.f32.mrf.mxu1 }
 0x195   : > { %8608 = vst [vmem:[#allocation93_spill] sm:$0xff] %v6172_v61  ;;  %v6174_v35 = vpop.f32.mrf.mxu0 }
 0x196   : > { %8609 = vst [vmem:[#allocation94_spill] sm:$0xff] %v6174_v35  ;;  %v6179_v54 = vpop.f32.mrf.mxu1 }
 0x197   : > { %8610 = vst [vmem:[#allocation95_spill] sm:$0xff] %v6179_v54  ;;  %v6184_v51 = vpop.f32.mrf.mxu0 }
 0x198   : > { %8611 = vst [vmem:[#allocation96_spill] sm:$0xff] %v6184_v51  ;;  %v6186_v46 = vpop.f32.mrf.mxu1  ;;  %v4421_v51 = vld [vmem:[%s8111_s3 + $0x30] ss:$8 sps:$4 sm:$0xff]  }
 0x199   : > { %8612 = vst [vmem:[#allocation97_spill] sm:$0xff] %v6186_v46  ;;  %v6188_v32 = vpop.f32.mrf.mxu0  ;;  %2596 = vmatmul.mubr.bf16.gmra.mxu0 %v4418_v23 }
 0x19a   : > { %8613 = vst [vmem:[#allocation98_spill] sm:$0xff] %v6188_v32  ;;  %v6190_v59 = vpop.f32.mrf.mxu1  ;;  %2789 = vmatmul.mubr.bf16.gmra.mxu1 %v4418_v23  ;;  %2605 = vmatprep.mubr.bf16.mxu0 %v4423_v50  ;;  %v4426_v32 = vld [vmem:[%s8111_s3 + $0x44] ss:$8 sps:$4 sm:$0xff]  }
 0x19b   : > { %8614 = vst [vmem:[#allocation99_spill] sm:$0xff] %v6190_v59  ;;  %v6192_v35 = vpop.f32.mrf.mxu0  ;;  %2798 = vmatprep.mubr.bf16.mxu1 %v4423_v50 }
 0x19c   : > { %8615 = vst [vmem:[#allocation100_spill] sm:$0xff] %v6192_v35  ;;  %v6194_v61 = vpop.f32.mrf.mxu1 }
 0x19d   : > { %8616 = vst [vmem:[#allocation101_spill] sm:$0xff] %v6194_v61  ;;  %v6196_v54 = vpop.f32.mrf.mxu0 }
 0x19e   : > { %8617 = vst [vmem:[#allocation102_spill] sm:$0xff] %v6196_v54  ;;  %v6201_v62 = vpop.f32.mrf.mxu1 }
 0x19f   : > { %8618 = vst [vmem:[#allocation103_spill] sm:$0xff] %v6201_v62  ;;  %v6206_v59 = vpop.f32.mrf.mxu0 }
 0x1a0   : > { %8619 = vst [vmem:[#allocation104_spill] sm:$0xff] %v6206_v59  ;;  %v6208_v23 = vpop.f32.mrf.mxu1  ;;  %v4424_v59 = vld [vmem:[%s8111_s3 + $0x40] ss:$8 sps:$4 sm:$0xff]  }
 0x1a1   : > { %8620 = vst [vmem:[#allocation105_spill] sm:$0xff] %v6208_v23  ;;  %v6210_v35 = vpop.f32.mrf.mxu0  ;;  %2606 = vmatmul.mubr.bf16.gmra.mxu0 %v4421_v51 }
 0x1a2   : > { %8621 = vst [vmem:[#allocation106_spill] sm:$0xff] %v6210_v35  ;;  %v6212_v50 = vpop.f32.mrf.mxu1  ;;  %2799 = vmatmul.mubr.bf16.gmra.mxu1 %v4421_v51  ;;  %2615 = vmatprep.mubr.bf16.mxu0 %v4426_v32  ;;  %v4429_v35 = vld [vmem:[%s8111_s3 + $0x54] ss:$8 sps:$4 sm:$0xff]  }
 0x1a3   : > { %8622 = vst [vmem:[#allocation107_spill] sm:$0xff] %v6212_v50  ;;  %v6214_v54 = vpop.f32.mrf.mxu0  ;;  %2808 = vmatprep.mubr.bf16.mxu1 %v4426_v32 }
 0x1a4   : > { %8623 = vst [vmem:[#allocation108_spill] sm:$0xff] %v6214_v54  ;;  %v6216_v61 = vpop.f32.mrf.mxu1 }
 0x1a5   : > { %8624 = vst [vmem:[#allocation109_spill] sm:$0xff] %v6216_v61  ;;  %v6218_v62 = vpop.f32.mrf.mxu0 }
 0x1a6   : > { %8625 = vst [vmem:[#allocation110_spill] sm:$0xff] %v6218_v62  ;;  %v6223_v46 = vpop.f32.mrf.mxu1 }
 0x1a7   : > { %8626 = vst [vmem:[#allocation111_spill] sm:$0xff] %v6223_v46  ;;  %v6228_v50 = vpop.f32.mrf.mxu0 }
 0x1a8   : > { %8627 = vst [vmem:[#allocation112_spill] sm:$0xff] %v6228_v50  ;;  %v6230_v51 = vpop.f32.mrf.mxu1  ;;  %v4427_v50 = vld [vmem:[%s8111_s3 + $0x50] ss:$8 sps:$4 sm:$0xff]  }
 0x1a9   : > { %8628 = vst [vmem:[#allocation113_spill] sm:$0xff] %v6230_v51  ;;  %v6232_v54 = vpop.f32.mrf.mxu0  ;;  %2616 = vmatmul.mubr.bf16.gmra.mxu0 %v4424_v59 }
 0x1aa   : > { %8629 = vst [vmem:[#allocation114_spill] sm:$0xff] %v6232_v54  ;;  %v6234_v32 = vpop.f32.mrf.mxu1  ;;  %2809 = vmatmul.mubr.bf16.gmra.mxu1 %v4424_v59  ;;  %2625 = vmatprep.mubr.bf16.mxu0 %v4429_v35  ;;  %v4432_v54 = vld [vmem:[%s8111_s3 + $0x64] ss:$8 sps:$4 sm:$0xff]  }
 0x1ab   : > { %8630 = vst [vmem:[#allocation115_spill] sm:$0xff] %v6234_v32  ;;  %v6236_v62 = vpop.f32.mrf.mxu0  ;;  %2818 = vmatprep.mubr.bf16.mxu1 %v4429_v35 }
 0x1ac   : > { %8631 = vst [vmem:[#allocation116_spill] sm:$0xff] %v6236_v62  ;;  %v6238_v61 = vpop.f32.mrf.mxu1 }
 0x1ad   : > { %8632 = vst [vmem:[#allocation117_spill] sm:$0xff] %v6238_v61  ;;  %v6240_v46 = vpop.f32.mrf.mxu0 }
 0x1ae   : > { %8633 = vst [vmem:[#allocation118_spill] sm:$0xff] %v6240_v46  ;;  %v6245_v23 = vpop.f32.mrf.mxu1 }
 0x1af   : > { %8634 = vst [vmem:[#allocation119_spill] sm:$0xff] %v6245_v23  ;;  %v6250_v32 = vpop.f32.mrf.mxu0 }
 0x1b0   : > { %8635 = vst [vmem:[#allocation120_spill] sm:$0xff] %v6250_v32  ;;  %v6252_v59 = vpop.f32.mrf.mxu1  ;;  %v4430_v32 = vld [vmem:[%s8111_s3 + $0x60] ss:$8 sps:$4 sm:$0xff]  }
 0x1b1   : > { %8636 = vst [vmem:[#allocation121_spill] sm:$0xff] %v6252_v59  ;;  %v6254_v62 = vpop.f32.mrf.mxu0  ;;  %2626 = vmatmul.mubr.bf16.gmra.mxu0 %v4427_v50 }
 0x1b2   : > { %8637 = vst [vmem:[#allocation122_spill] sm:$0xff] %v6254_v62  ;;  %v6256_v35 = vpop.f32.mrf.mxu1  ;;  %2819 = vmatmul.mubr.bf16.gmra.mxu1 %v4427_v50  ;;  %2635 = vmatprep.mubr.bf16.mxu0 %v4432_v54  ;;  %v4435_v62 = vld [vmem:[%s8111_s3 + $0x74] ss:$8 sps:$4 sm:$0xff]  }
 0x1b3   : > { %8638 = vst [vmem:[#allocation123_spill] sm:$0xff] %v6256_v35  ;;  %v6258_v46 = vpop.f32.mrf.mxu0  ;;  %2828 = vmatprep.mubr.bf16.mxu1 %v4432_v54 }
 0x1b4   : > { %8639 = vst [vmem:[#allocation124_spill] sm:$0xff] %v6258_v46  ;;  %v6260_v61 = vpop.f32.mrf.mxu1 }
 0x1b5   : > { %8640 = vst [vmem:[#allocation125_spill] sm:$0xff] %v6260_v61  ;;  %v6262_v23 = vpop.f32.mrf.mxu0 }
 0x1b6   : > { %8641 = vst [vmem:[#allocation126_spill] sm:$0xff] %v6262_v23  ;;  %v6267_v51 = vpop.f32.mrf.mxu1 }
 0x1b7   : > { %8642 = vst [vmem:[#allocation127_spill] sm:$0xff] %v6267_v51  ;;  %v6272_v35 = vpop.f32.mrf.mxu0 }
 0x1b8   : > { %8643 = vst [vmem:[#allocation128_spill] sm:$0xff] %v6272_v35  ;;  %v6274_v50 = vpop.f32.mrf.mxu1  ;;  %v4433_v35 = vld [vmem:[%s8111_s3 + $0x70] ss:$8 sps:$4 sm:$0xff]  }
 0x1b9   : > { %8644 = vst [vmem:[#allocation129_spill] sm:$0xff] %v6274_v50  ;;  %v6276_v46 = vpop.f32.mrf.mxu0  ;;  %2636 = vmatmul.mubr.bf16.gmra.mxu0 %v4430_v32 }
 0x1ba   : > { %8645 = vst [vmem:[#allocation130_spill] sm:$0xff] %v6276_v46  ;;  %v6278_v54 = vpop.f32.mrf.mxu1  ;;  %2829 = vmatmul.mubr.bf16.gmra.mxu1 %v4430_v32  ;;  %2645 = vmatprep.mubr.bf16.mxu0 %v4435_v62  ;;  %v4438_v46 = vld [vmem:[%s8111_s3 + $0x84] ss:$8 sps:$4 sm:$0xff]  }
 0x1bb   : > { %8646 = vst [vmem:[#allocation131_spill] sm:$0xff] %v6278_v54  ;;  %v6280_v23 = vpop.f32.mrf.mxu0  ;;  %2838 = vmatprep.mubr.bf16.mxu1 %v4435_v62 }
 0x1bc   : > { %8647 = vst [vmem:[#allocation132_spill] sm:$0xff] %v6280_v23  ;;  %v6282_v61 = vpop.f32.mrf.mxu1 }
 0x1bd   : > { %8648 = vst [vmem:[#allocation133_spill] sm:$0xff] %v6282_v61  ;;  %v6284_v51 = vpop.f32.mrf.mxu0 }
 0x1be   : > { %8649 = vst [vmem:[#allocation134_spill] sm:$0xff] %v6284_v51  ;;  %v6289_v59 = vpop.f32.mrf.mxu1 }
 0x1bf   : > { %8650 = vst [vmem:[#allocation135_spill] sm:$0xff] %v6289_v59  ;;  %v6294_v54 = vpop.f32.mrf.mxu0 }
 0x1c0   : > { %8651 = vst [vmem:[#allocation136_spill] sm:$0xff] %v6294_v54  ;;  %v6296_v32 = vpop.f32.mrf.mxu1  ;;  %v4436_v54 = vld [vmem:[%s8111_s3 + $0x80] ss:$8 sps:$4 sm:$0xff]  }
 0x1c1   : > { %8652 = vst [vmem:[#allocation137_spill] sm:$0xff] %v6296_v32  ;;  %v6298_v23 = vpop.f32.mrf.mxu0  ;;  %2646 = vmatmul.mubr.bf16.gmra.mxu0 %v4433_v35 }
 0x1c2   : > { %8653 = vst [vmem:[#allocation138_spill] sm:$0xff] %v6298_v23  ;;  %v6300_v62 = vpop.f32.mrf.mxu1  ;;  %2839 = vmatmul.mubr.bf16.gmra.mxu1 %v4433_v35  ;;  %2655 = vmatprep.mubr.bf16.mxu0 %v4438_v46  ;;  %v4441_v23 = vld [vmem:[%s8111_s3 + $0x94] ss:$8 sps:$4 sm:$0xff]  }
 0x1c3   : > { %8654 = vst [vmem:[#allocation139_spill] sm:$0xff] %v6300_v62  ;;  %v6302_v51 = vpop.f32.mrf.mxu0  ;;  %2848 = vmatprep.mubr.bf16.mxu1 %v4438_v46 }
 0x1c4   : > { %8655 = vst [vmem:[#allocation140_spill] sm:$0xff] %v6302_v51  ;;  %v6304_v61 = vpop.f32.mrf.mxu1 }
 0x1c5   : > { %8656 = vst [vmem:[#allocation141_spill] sm:$0xff] %v6304_v61  ;;  %v6306_v59 = vpop.f32.mrf.mxu0 }
 0x1c6   : > { %8657 = vst [vmem:[#allocation142_spill] sm:$0xff] %v6306_v59  ;;  %v6311_v50 = vpop.f32.mrf.mxu1 }
 0x1c7   : > { %8658 = vst [vmem:[#allocation143_spill] sm:$0xff] %v6311_v50  ;;  %v6316_v62 = vpop.f32.mrf.mxu0 }
 0x1c8   : > { %8659 = vst [vmem:[#allocation144_spill] sm:$0xff] %v6316_v62  ;;  %v6318_v35 = vpop.f32.mrf.mxu1  ;;  %v4439_v62 = vld [vmem:[%s8111_s3 + $0x90] ss:$8 sps:$4 sm:$0xff]  }
 0x1c9   : > { %8660 = vst [vmem:[#allocation145_spill] sm:$0xff] %v6318_v35  ;;  %v6320_v51 = vpop.f32.mrf.mxu0  ;;  %2656 = vmatmul.mubr.bf16.gmra.mxu0 %v4436_v54  ;;  %v4444_v35 = vld [vmem:[%s8111_s3 + $0xa4] ss:$8 sps:$4 sm:$0xff]  }
 0x1ca   : > { %v6322_v46 = vpop.f32.mrf.mxu1  ;;  %2849 = vmatmul.mubr.bf16.gmra.mxu1 %v4436_v54  ;;  %2665 = vmatprep.mubr.bf16.mxu0 %v4441_v23 }
 0x1cb   : > { %v6324_v59 = vpop.f32.mrf.mxu0  ;;  %2858 = vmatprep.mubr.bf16.mxu1 %v4441_v23 }
 0x1cc   : > { %v6326_v61 = vpop.f32.mrf.mxu1 }
 0x1cd   : > { %v6328_v50 = vpop.f32.mrf.mxu0 }
 0x1ce   : > { %v6333_v32 = vpop.f32.mrf.mxu1 }
 0x1cf   : > { %v6338_v21 = vpop.f32.mrf.mxu0 }
 0x1d0   : > { %v6340_v54 = vpop.f32.mrf.mxu1 }
 0x1d1   : > { %v6342_v11 = vpop.f32.mrf.mxu0  ;;  %2666 = vmatmul.mubr.bf16.gmra.mxu0 %v4439_v62 }
 0x1d2   : > { %v6344_v23 = vpop.f32.mrf.mxu1  ;;  %2859 = vmatmul.mubr.bf16.gmra.mxu1 %v4439_v62  ;;  %2675 = vmatprep.mubr.bf16.mxu0 %v4444_v35 }
 0x1d3   : > { %v6346_v4 = vpop.f32.mrf.mxu0  ;;  %2868 = vmatprep.mubr.bf16.mxu1 %v4444_v35 }
 0x1d4   : > { %v6348_v39 = vpop.f32.mrf.mxu1 }
 0x1d5   : > { %v6350_v34 = vpop.f32.mrf.mxu0 }
 0x1d6   : > { %v6355_v37 = vpop.f32.mrf.mxu1 }
 0x1d7   : > { %v6360_v56 = vpop.f32.mrf.mxu0 }
 0x1d8   : > { %v6362_v62 = vpop.f32.mrf.mxu1 }
 0x1d9   : > { %v6364_v49 = vpop.f32.mrf.mxu0  ;;  %2676 = vmatmul.mubr.bf16.gmra.mxu0 %v4442_v29 }
 0x1da   : > { %v6366_v35 = vpop.f32.mrf.mxu1  ;;  %2869 = vmatmul.mubr.bf16.gmra.mxu1 %v4442_v29  ;;  %2685 = vmatprep.mubr.bf16.mxu0 %v4447_v63 }
 0x1db   : > { %v6368_v38 = vpop.f32.mrf.mxu0  ;;  %2878 = vmatprep.mubr.bf16.mxu1 %v4447_v63 }
 0x1dc   : > { %v6370_v6 = vpop.f32.mrf.mxu1 }
 0x1dd   : > { %v6372_v3 = vpop.f32.mrf.mxu0 }
 0x1de   : > { %v6377_v1 = vpop.f32.mrf.mxu1 }
 0x1df   : > { %v6382_v60 = vpop.f32.mrf.mxu0 }
 0x1e0   : > { %v6384_v29 = vpop.f32.mrf.mxu1 }
 0x1e1   : > { %v6386_v58 = vpop.f32.mrf.mxu0  ;;  %2686 = vmatmul.mubr.bf16.gmra.mxu0 %v4445_v2 }
 0x1e2   : > { %8661 = vst [vmem:[#allocation146_spill] sm:$0xff] %v6386_v58  ;;  %v6388_v63 = vpop.f32.mrf.mxu1  ;;  %2879 = vmatmul.mubr.bf16.gmra.mxu1 %v4445_v2  ;;  %2695 = vmatprep.mubr.bf16.mxu0 %v4450_v0 }
 0x1e3   : > { %8662 = vst [vmem:[#allocation147_spill] sm:$0xff] %v6388_v63  ;;  %v6390_v43 = vpop.f32.mrf.mxu0  ;;  %2888 = vmatprep.mubr.bf16.mxu1 %v4450_v0  ;;  %v8670_v0 = vld [vmem:[#allocation7_spill] sm:$0xff] }
 0x1e4   : > { %8663 = vst [vmem:[#allocation148_spill] sm:$0xff] %v6390_v43  ;;  %v6392_v57 = vpop.f32.mrf.mxu1  ;;  %v782_v47 = vrot.slane %v8670_v0, %v8669_v48 }
 0x1e5   : > { %8664 = vst [vmem:[#allocation149_spill] sm:$0xff] %v6392_v57  ;;  %v6394_v53 = vpop.f32.mrf.mxu0 }
 0x1e6   : > { %8665 = vst [vmem:[#allocation150_spill] sm:$0xff] %v6394_v53  ;;  %v6399_v17 = vpop.f32.mrf.mxu1 }
 0x1e7   : > { %8666 = vst [vmem:[#allocation151_spill] sm:$0xff] %v6399_v17  ;;  %v6404_v55 = vpop.f32.mrf.mxu0 }
 0x1e8   : > { %8667 = vst [vmem:[#allocation152_spill] sm:$0xff] %v6404_v55  ;;  %v6406_v2 = vpop.f32.mrf.mxu1  ;;  %v8676_v55 = vld [vmem:[#allocation5_spill] sm:$0xff] }
 0x1e9   : > { %8668 = vst [vmem:[#allocation153_spill] sm:$0xff] %v6406_v2  ;;  %v6410_v57 = vpop.f32.mrf.mxu0  ;;  %2696 = vmatmul.mubr.bf16.gmra.mxu0 %v4448_v52  ;;  %v4451_v2 = vld [vmem:[%s8111_s3 + $0xd0] ss:$8 sps:$4 sm:$0xff]   ;;  %v747_v0 = vand.u32 63, %v8676_v55 }
 0x1ea   : > { %8671 = vst [vmem:[#allocation6_spill] sm:$0xff] %v6410_v57  ;;  %v6412_v53 = vpop.f32.mrf.mxu1  ;;  %2889 = vmatmul.mubr.bf16.gmra.mxu1 %v4448_v52  ;;  %2705 = vmatprep.mubr.bf16.mxu0 %v4453_v41  ;;  %v6425_v57 = vrot.slane %v782_v47, %v8669_v48  ;;  %v4456_v52 = vld [vmem:[%s8111_s3 + $0xe4] ss:$8 sps:$4 sm:$0xff]   ;;  %v8680_v47 = vld [vmem:[#allocation11_spill] sm:$0xff] }
 0x1eb   : > { %8672 = vst [vmem:[#allocation7_spill] sm:$0xff] %v6412_v53  ;;  %v6414_v43 = vpop.f32.mrf.mxu0  ;;  %2898 = vmatprep.mubr.bf16.mxu1 %v4453_v41  ;;  %v8678_v41 = vld [vmem:[#allocation12_spill] sm:$0xff]  ;;  %v6446_v44 = vrot.slane %v8680_v47, %v8669_v48 }
 0x1ec   : > { %8673 = vst [vmem:[#allocation154_spill] sm:$0xff] %v6414_v43  ;;  %v6416_v17 = vpop.f32.mrf.mxu1  ;;  %v8679_v43 = vld [vmem:[#allocation10_spill] sm:$0xff]  ;;  %vm811_vm6 = vcmp.eq.s32.totalorder %v747_v0, %v6425_v57 }
 0x1ed   : > { %8674 = vst [vmem:[#allocation155_spill] sm:$0xff] %v6416_v17  ;;  %v6418_v45 = vpop.f32.mrf.mxu0  ;;  %v6434_v17 = vrot.slane %v8678_v41, %v8669_v48  ;;  %v6440_v53 = vrot.slane %v8679_v43, %v8669_v48  ;;  %v6457_v43 = vadd.f32 %v6320_v51, %v5968_v5  ;;  %v6461_v48 = vadd.f32 %v6322_v46, %v5970_v7  ;;  %v8684_v5 = vld [vmem:[#allocation24_spill] sm:$0xff]  ;;  %v4454_v46 = vld [vmem:[%s8111_s3 + $0xe0] ss:$8 sps:$4 sm:$0xff]  }
 0x1ee   : > { %8675 = vst [vmem:[#allocation156_spill] sm:$0xff] %v6418_v45  ;;  %v6427_v63 = vpop.f32.mrf.mxu1  ;;  %vm814_vm7 = vcmp.eq.s32.totalorder %v747_v0, %v6446_v44  ;;  %v749_v7 = vand.u32 63, %v8684_v5  ;;  %v6484_v51 = vadd.f32 %v6328_v50, %v5976_v10  ;;  %v4459_v10 = vld [vmem:[%s8111_s3 + $0xf4] ss:$8 sps:$4 sm:$0xff]   ;;  %v6515_v5 = vadd.f32 %v6338_v21, %v5986_v13 }
 0x1ef   : > { %8677 = vst [vmem:[#allocation5_spill] sm:$0xff] %v6427_v63  ;;  %v6436_v45 = vpop.f32.mrf.mxu0  ;;  %v8681_v63 = vld [vmem:[#allocation26_spill] sm:$0xff]  ;;  %vm813_vm11 = vcmp.eq.s32.totalorder %v747_v0, %v6434_v17  ;;  %vm812_vm10 = vcmp.eq.s32.totalorder %v747_v0, %v6440_v53 }
 0x1f0   : > { %v6442_v55 = vpop.f32.mrf.mxu1  ;;  %v748_v58 = vand.u32 63, %v8681_v63  ;;  %v6465_v63 = vadd.f32 %v6324_v59, %v5972_v8  ;;  %v6480_v8 = vadd.f32 %v6326_v61, %v5974_v9  ;;  %8686 = vst [vmem:[#allocation26_spill] sm:$0xff] %v6484_v51  ;;  %v6499_v9 = vadd.f32 %v6333_v32, %v5981_v12  ;;  %v8689_v51 = vld [vmem:[#allocation25_spill] sm:$0xff] }
 0x1f1   : > { %v6449_v42 = vpop.f32.mrf.mxu0  ;;  %2706 = vmatmul.mubr.bf16.gmra.mxu0 %v4451_v2  ;;  %vm819_vm3 = vcmp.eq.s32.totalorder %v749_v7, %v6425_v57  ;;  %vm821_vm5 = vcmp.eq.s32.totalorder %v749_v7, %v6434_v17  ;;  %vm820_vm4 = vcmp.eq.s32.totalorder %v749_v7, %v6440_v53  ;;  %vm822_vm9 = vcmp.eq.s32.totalorder %v749_v7, %v6446_v44 }
 0x1f2   : > { %8682 = vst [vmem:[#allocation12_spill] sm:$0xff] %v6449_v42  ;;  %v6452_v41 = vpop.f32.mrf.mxu1  ;;  %2899 = vmatmul.mubr.bf16.gmra.mxu1 %v4451_v2  ;;  %2715 = vmatprep.mubr.bf16.mxu0 %v4456_v52  ;;  %vm815_vm8 = vcmp.eq.s32.totalorder %v748_v58, %v6425_v57  ;;  %8685 = vst [vmem:[#allocation11_spill] sm:$0xff] %v6480_v8  ;;  %vm817_vm13 = vcmp.eq.s32.totalorder %v748_v58, %v6434_v17 }
 0x1f3   : > { %8683 = vst [vmem:[#allocation10_spill] sm:$0xff] %v6452_v41  ;;  %v6467_v47 = vpop.f32.mrf.mxu0  ;;  %2908 = vmatprep.mubr.bf16.mxu1 %v4456_v52  ;;  %v8268_v41 = vmov 0.0   ;;  %8687 = vst [vmem:[#allocation24_spill] sm:$0xff] %v6499_v9  ;;  %vm816_vm0 = vcmp.eq.s32.totalorder %v748_v58, %v6440_v53  ;;  %vm818_vm1 = vcmp.eq.s32.totalorder %v748_v58, %v6446_v44  ;;  %v6532_v8 = vadd.f32 %v6340_v54, %v5988_v14 }
 0x1f4   : > { %v6470_v2 = vpop.f32.mrf.mxu1  ;;  %v6473_v42 = vsel %vm811_vm6, 1.0, %v8268_v41  ;;  %v6494_v52 = vsel %vm813_vm11, 1.0, %v8268_v41  ;;  %v6509_v50 = vsel %vm812_vm10, 1.0, %v8268_v41  ;;  %v6522_v32 = vsel %vm814_vm7, 1.0, %v8268_v41 }
 0x1f5   : > { %v6486_v59 = vpop.f32.mrf.mxu0  ;;  %8688 = vst [vmem:[#allocation157_spill] sm:$0xff] %v6509_v50  ;;  %v6527_v9 = vsel %vm815_vm8, 1.0, %v8268_v41  ;;  %v750_v50 = vand.u32 63, %v8689_v51  ;;  %8690 = vst [vmem:[#allocation25_spill] sm:$0xff] %v6532_v8  ;;  %v6537_v21 = vsel %vm817_vm13, 1.0, %v8268_v41  ;;  %v6543_v58 = vadd.f32 %v6342_v11, %v5990_v15  ;;  %v8693_v11 = vld [vmem:[#allocation22_spill] sm:$0xff] }
 0x1f6   : > { %v6501_v61 = vpop.f32.mrf.mxu1  ;;  %v6548_v51 = vsel %vm816_vm0, 1.0, %v8268_v41  ;;  %v6551_v14 = vsel %vm818_vm1, 1.0, %v8268_v41  ;;  %v6556_v54 = vadd.f32 %v6344_v23, %v5992_v16  ;;  %v6560_v8 = vadd.f32 %v6346_v4, %v5994_v18 }
 0x1f7   : > { %v6517_v12 = vpop.f32.mrf.mxu0  ;;  %8691 = vst [vmem:[#allocation158_spill] sm:$0xff] %v6543_v58  ;;  %8692 = vst [vmem:[#allocation159_spill] sm:$0xff] %v6551_v14  ;;  %v751_v58 = vand.u32 63, %v8693_v11  ;;  %v8694_v14 = vmov 0.0   ;;  %vm823_vm12 = vcmp.eq.s32.totalorder %v750_v50, %v6425_v57  ;;  %vm825_vm15 = vcmp.eq.s32.totalorder %v750_v50, %v6434_v17 }
 0x1f8   : > { %v6534_v13 = vpop.f32.mrf.mxu1  ;;  %v6571_v16 = vsel %vm819_vm3, 1.0, %v8694_v14  ;;  %v6576_v18 = vsel %vm821_vm5, 1.0, %v8694_v14  ;;  %v6582_v4 = vadd.f32 %v6348_v39, %v5996_v19  ;;  %v6586_v23 = vadd.f32 %v6350_v34, %v5998_v20  ;;  %v4457_v19 = vld [vmem:[%s8111_s3 + $0xf0] ss:$8 sps:$4 sm:$0xff]  }
 0x1f9   : > { %v6545_v0 = vpop.f32.mrf.mxu0  ;;  %2716 = vmatmul.mubr.bf16.gmra.mxu0 %v4454_v46  ;;  %8695 = vst [vmem:[#allocation22_spill] sm:$0xff] %v6576_v18  ;;  %vm824_vm2 = vcmp.eq.s32.totalorder %v750_v50, %v6440_v53  ;;  %v6598_v11 = vadd.f32 %v6355_v37, %v6003_v22  ;;  %v6608_v20 = vsel %vm822_vm9, 1.0, %v8694_v14  ;;  %vm826_vm14 = vcmp.eq.s32.totalorder %v750_v50, %v6446_v44  ;;  %v8701_v34 = vld [vmem:[#allocation23_spill] sm:$0xff] }
 0x1fa   : > { %v6562_v15 = vpop.f32.mrf.mxu1  ;;  %2909 = vmatmul.mubr.bf16.gmra.mxu1 %v4454_v46  ;;  %2725 = vmatprep.mubr.bf16.mxu0 %v4459_v10  ;;  %8696 = vst [vmem:[#allocation160_spill] sm:$0xff] %v6582_v4  ;;  %8697 = vst [vmem:[#allocation161_spill] sm:$0xff] %v6586_v23  ;;  %v752_v39 = vand.u32 63, %v8701_v34  ;;  %v6614_v23 = vadd.f32 %v6360_v56, %v6008_v24  ;;  %v6619_v37 = vsel %vm823_vm12, 1.0, %v8694_v14  ;;  %v6636_v56 = vsel %vm824_vm2, 1.0, %v8694_v14 }
 0x1fb   : > { %v6566_v41 = vpop.f32.mrf.mxu0  ;;  %2918 = vmatprep.mubr.bf16.mxu1 %v4459_v10  ;;  %v6593_v10 = vsel %vm820_vm4, 1.0, %v8694_v14  ;;  %8699 = vst [vmem:[#allocation163_spill] sm:$0xff] %v6598_v11  ;;  %8700 = vst [vmem:[#allocation164_spill] sm:$0xff] %v6608_v20  ;;  %v6622_v11 = vsel %vm825_vm15, 1.0, %v8694_v14  ;;  %vm827_vm6 = vcmp.eq.s32.totalorder %v751_v58, %v6425_v57  ;;  %v6627_v7 = vadd.f32 %v6362_v62, %v6010_v25  ;;  %v8786_v20 = vld [vmem:[#allocation57_spill] sm:$0xff] }
 0x1fc   : > { %v6588_v46 = vpop.f32.mrf.mxu1  ;;  %8698 = vst [vmem:[#allocation162_spill] sm:$0xff] %v6593_v10  ;;  %8702 = vst [vmem:[#allocation23_spill] sm:$0xff] %v6614_v23  ;;  %v6631_v50 = vadd.f32 %v6364_v49, %v6012_v26  ;;  %vm829_vm11 = vcmp.eq.s32.totalorder %v751_v58, %v6434_v17  ;;  %v6641_v34 = vadd.f32 %v6366_v35, %v6014_v27  ;;  %v6646_v25 = vsel %vm826_vm14, 1.0, %v8694_v14  ;;  %v8712_v27 = vld [vmem:[#allocation20_spill] sm:$0xff] }
 0x1fd   : > { %v6600_v18 = vpop.f32.mrf.mxu0  ;;  %8703 = vst [vmem:[#allocation165_spill] sm:$0xff] %v6619_v37  ;;  %8704 = vst [vmem:[#allocation166_spill] sm:$0xff] %v6622_v11  ;;  %vm828_vm10 = vcmp.eq.s32.totalorder %v751_v58, %v6440_v53  ;;  %vm830_vm7 = vcmp.eq.s32.totalorder %v751_v58, %v6446_v44  ;;  %v6652_v26 = vadd.f32 %v6368_v38, %v6016_v28  ;;  %v6657_v62 = vsel %vm827_vm6, 1.0, %v8694_v14  ;;  %v8773_v37 = vld [vmem:[#allocation155_spill] sm:$0xff] }
 0x1fe   : > { %v6616_v22 = vpop.f32.mrf.mxu1  ;;  %8705 = vst [vmem:[#allocation167_spill] sm:$0xff] %v6627_v7  ;;  %8706 = vst [vmem:[#allocation168_spill] sm:$0xff] %v6631_v50  ;;  %vm831_vm8 = vcmp.eq.s32.totalorder %v752_v39, %v6425_v57  ;;  %v753_v35 = vand.u32 63, %v8712_v27  ;;  %v6674_v38 = vsel %vm829_vm11, 1.0, %v8694_v14  ;;  %vm833_vm13 = vcmp.eq.s32.totalorder %v752_v39, %v6434_v17 }
 0x1ff   : > { %v6633_v24 = vpop.f32.mrf.mxu0  ;;  %8707 = vst [vmem:[#allocation169_spill] sm:$0xff] %v6636_v56  ;;  %8708 = vst [vmem:[#allocation170_spill] sm:$0xff] %v6641_v34  ;;  %v6663_v34 = vadd.f32 %v6370_v6, %v6018_v30  ;;  %v6680_v27 = vsel %vm828_vm10, 1.0, %v8694_v14  ;;  %v6683_v30 = vsel %vm830_vm7, 1.0, %v8694_v14  ;;  %vm832_vm0 = vcmp.eq.s32.totalorder %v752_v39, %v6440_v53 }
 0x200   : > { %v6643_v11 = vpop.f32.mrf.mxu1  ;;  %8709 = vst [vmem:[#allocation171_spill] sm:$0xff] %v6646_v25  ;;  %8710 = vst [vmem:[#allocation172_spill] sm:$0xff] %v6652_v26  ;;  %v6667_v25 = vadd.f32 %v6372_v3, %v6020_v31  ;;  %vm834_vm1 = vcmp.eq.s32.totalorder %v752_v39, %v6446_v44  ;;  %v6689_v31 = vadd.f32 %v6377_v1, %v6025_v33  ;;  %v6700_v58 = vsel %vm831_vm8, 1.0, %v8694_v14 }
 0x201   : > { %v6654_v49 = vpop.f32.mrf.mxu0  ;;  %2726 = vmatmul.mubr.bf16.gmra.mxu0 %v4457_v19  ;;  %8711 = vst [vmem:[#allocation173_spill] sm:$0xff] %v6657_v62  ;;  %8713 = vst [vmem:[#allocation20_spill] sm:$0xff] %v6663_v34  ;;  %v6693_v3 = vadd.f32 %v6382_v60, %v6030_v36  ;;  %v6710_v33 = vsel %vm833_vm13, 1.0, %v8694_v14  ;;  %vm835_vm3 = vcmp.eq.s32.totalorder %v753_v35, %v6425_v57  ;;  %v8724_v36 = vld [vmem:[#allocation43_spill] sm:$0xff]  ;;  %v8725_v60 = vld [vmem:[#allocation146_spill] sm:$0xff] }
 0x202   : > { %8714 = vst [vmem:[#allocation174_spill] sm:$0xff] %v6667_v25  ;;  %v6669_v28 = vpop.f32.mrf.mxu1  ;;  %2919 = vmatmul.mubr.bf16.gmra.mxu1 %v4457_v19  ;;  %8715 = vst [vmem:[#allocation175_spill] sm:$0xff] %v6674_v38  ;;  %v8721_v19 = vld [vmem:[#allocation21_spill] sm:$0xff]  ;;  %v6705_v25 = vadd.f32 %v6384_v29, %v6032_v40  ;;  %vm837_vm5 = vcmp.eq.s32.totalorder %v753_v35, %v6434_v17  ;;  %v6716_v1 = vadd.f32 %v8725_v60, %v8724_v36  ;;  %v8729_v29 = vld [vmem:[#allocation44_spill] sm:$0xff] }
 0x203   : > { %v6677_v26 = vpop.f32.mrf.mxu0  ;;  %8716 = vst [vmem:[#allocation176_spill] sm:$0xff] %v6680_v27  ;;  %8717 = vst [vmem:[#allocation177_spill] sm:$0xff] %v6683_v30  ;;  %v754_v30 = vand.u32 63, %v8721_v19  ;;  %v6721_v19 = vsel %vm832_vm0, 1.0, %v8694_v14  ;;  %v6724_v40 = vsel %vm834_vm1, 1.0, %v8694_v14  ;;  %vm836_vm4 = vcmp.eq.s32.totalorder %v753_v35, %v6440_v53  ;;  %v8735_v60 = vld [vmem:[#allocation18_spill] sm:$0xff] }
 0x204   : > { %8718 = vst [vmem:[#allocation178_spill] sm:$0xff] %v6689_v31  ;;  %8719 = vst [vmem:[#allocation179_spill] sm:$0xff] %v6693_v3  ;;  %v6695_v6 = vpop.f32.mrf.mxu1  ;;  %v8732_v3 = vld [vmem:[#allocation47_spill] sm:$0xff]  ;;  %vm838_vm9 = vcmp.eq.s32.totalorder %v753_v35, %v6446_v44  ;;  %v8737_v34 = vld [vmem:[#allocation149_spill] sm:$0xff]  ;;  %v6746_v62 = vsel %vm835_vm3, 1.0, %v8694_v14 }
 0x205   : > { %8720 = vst [vmem:[#allocation180_spill] sm:$0xff] %v6700_v58  ;;  %8722 = vst [vmem:[#allocation21_spill] sm:$0xff] %v6705_v25  ;;  %v6707_v27 = vpop.f32.mrf.mxu0  ;;  %v8730_v25 = vld [vmem:[#allocation147_spill] sm:$0xff]  ;;  %v8733_v58 = vld [vmem:[#allocation148_spill] sm:$0xff]  ;;  %vm839_vm12 = vcmp.eq.s32.totalorder %v754_v30, %v6425_v57  ;;  %vm841_vm15 = vcmp.eq.s32.totalorder %v754_v30, %v6434_v17  ;;  %vm840_vm2 = vcmp.eq.s32.totalorder %v754_v30, %v6440_v53 }
 0x206   : > { %8723 = vst [vmem:[#allocation181_spill] sm:$0xff] %v6710_v33  ;;  %8726 = vst [vmem:[#allocation43_spill] sm:$0xff] %v6716_v1  ;;  %v6718_v39 = vpop.f32.mrf.mxu1  ;;  %v6729_v33 = vadd.f32 %v8730_v25, %v8729_v29  ;;  %v6733_v31 = vadd.f32 %v8733_v58, %v8732_v3  ;;  %v755_v1 = vand.u32 63, %v8735_v60  ;;  %v6749_v25 = vsel %vm837_vm5, 1.0, %v8694_v14  ;;  %v8741_v3 = vld [vmem:[#allocation39_spill] sm:$0xff]  ;;  %v8742_v58 = vld [vmem:[#allocation150_spill] sm:$0xff] }
 0x207   : > { %8727 = vst [vmem:[#allocation146_spill] sm:$0xff] %v6721_v19  ;;  %8728 = vst [vmem:[#allocation182_spill] sm:$0xff] %v6724_v40  ;;  %v6735_v36 = vpop.f32.mrf.mxu0  ;;  %v8736_v19 = vld [vmem:[#allocation15_spill] sm:$0xff]  ;;  %v6754_v29 = vadd.f32 %v8742_v58, %v8741_v3  ;;  %v6759_v60 = vsel %vm836_vm4, 1.0, %v8694_v14  ;;  %v6774_v3 = vsel %vm838_vm9, 1.0, %v8694_v14  ;;  %vm842_vm14 = vcmp.eq.s32.totalorder %v754_v30, %v6446_v44 }
 0x208   : > { %8731 = vst [vmem:[#allocation44_spill] sm:$0xff] %v6729_v33  ;;  %8734 = vst [vmem:[#allocation147_spill] sm:$0xff] %v6733_v31  ;;  %v6741_v38 = vadd.f32 %v8737_v34, %v8736_v19  ;;  %v6743_v40 = vpop.f32.mrf.mxu1  ;;  %v8745_v34 = vld [vmem:[#allocation42_spill] sm:$0xff]  ;;  %v8746_v19 = vld [vmem:[#allocation151_spill] sm:$0xff]  ;;  %vm843_vm6 = vcmp.eq.s32.totalorder %v755_v1, %v6425_v57  ;;  %vm845_vm11 = vcmp.eq.s32.totalorder %v755_v1, %v6434_v17  ;;  %v6796_v50 = vsel %vm841_vm15, 1.0, %v8694_v14 }
 0x209   : > { %8739 = vst [vmem:[#allocation148_spill] sm:$0xff] %v6746_v62  ;;  %8740 = vst [vmem:[#allocation18_spill] sm:$0xff] %v6749_v25  ;;  %v6756_v35 = vpop.f32.mrf.mxu0  ;;  %v8748_v25 = vld [vmem:[#allocation48_spill] sm:$0xff]  ;;  %vm844_vm10 = vcmp.eq.s32.totalorder %v755_v1, %v6440_v53  ;;  %vm846_vm7 = vcmp.eq.s32.totalorder %v755_v1, %v6446_v44  ;;  %v6827_v23 = vsel %vm845_vm11, 1.0, %v8694_v14 }
 0x20a   : > { %8738 = vst [vmem:[#allocation47_spill] sm:$0xff] %v6741_v38  ;;  %8743 = vst [vmem:[#allocation15_spill] sm:$0xff] %v6754_v29  ;;  %v6765_v38 = vadd.f32 %v8746_v19, %v8745_v34  ;;  %v8749_v31 = vld [vmem:[#allocation152_spill] sm:$0xff]  ;;  %v6771_v33 = vpop.f32.mrf.mxu1  ;;  %v6780_v29 = vsel %vm839_vm12, 1.0, %v8694_v14  ;;  %v8753_v34 = vld [vmem:[#allocation19_spill] sm:$0xff]  ;;  %v6844_v1 = vsel %vm844_vm10, 1.0, %v8694_v14 }
 0x20b   : > { %8744 = vst [vmem:[#allocation149_spill] sm:$0xff] %v6759_v60  ;;  %v6769_v62 = vadd.f32 %v8749_v31, %v8748_v25  ;;  %8751 = vst [vmem:[#allocation42_spill] sm:$0xff] %v6774_v3  ;;  %v6777_v58 = vpop.f32.mrf.mxu0  ;;  %v756_v19 = vand.u32 63, %v8753_v34  ;;  %v8754_v31 = vld [vmem:[#allocation49_spill] sm:$0xff]  ;;  %v8758_v60 = vld [vmem:[#allocation6_spill] sm:$0xff]  ;;  %v6804_v34 = vsel %vm842_vm14, 1.0, %v8694_v14 }
 0x20c   : > { %8747 = vst [vmem:[#allocation39_spill] sm:$0xff] %v6765_v38  ;;  %8752 = vst [vmem:[#allocation151_spill] sm:$0xff] %v6780_v29  ;;  %v8755_v25 = vld [vmem:[#allocation153_spill] sm:$0xff]  ;;  %v8757_v38 = vld [vmem:[#allocation50_spill] sm:$0xff]  ;;  %v6793_v30 = vpop.f32.mrf.mxu1  ;;  %v6799_v29 = vsel %vm840_vm2, 1.0, %v8694_v14 }
 0x20d   : > { %8750 = vst [vmem:[#allocation150_spill] sm:$0xff] %v6769_v62  ;;  %v6787_v62 = vadd.f32 %v8755_v25, %v8754_v31  ;;  %v6791_v3 = vadd.f32 %v8758_v60, %v8757_v38  ;;  %8760 = vst [vmem:[#allocation19_spill] sm:$0xff] %v6796_v50  ;;  %v6801_v56 = vpop.f32.mrf.mxu0  ;;  %v8763_v31 = vld [vmem:[#allocation16_spill] sm:$0xff]  ;;  %v8764_v60 = vld [vmem:[#allocation51_spill] sm:$0xff]  ;;  %vm847_vm8 = vcmp.eq.s32.totalorder %v756_v19, %v6425_v57 }
 0x20e   : > { %8761 = vst [vmem:[#allocation49_spill] sm:$0xff] %v6799_v29  ;;  %8762 = vst [vmem:[#allocation153_spill] sm:$0xff] %v6804_v34  ;;  %v757_v38 = vand.u32 63, %v8763_v31  ;;  %v8765_v25 = vld [vmem:[#allocation7_spill] sm:$0xff]  ;;  %v8768_v50 = vld [vmem:[#allocation154_spill] sm:$0xff]  ;;  %v6817_v29 = vpop.f32.mrf.mxu1  ;;  %v6822_v34 = vsel %vm843_vm6, 1.0, %v8694_v14  ;;  %vm849_vm13 = vcmp.eq.s32.totalorder %v756_v19, %v6434_v17  ;;  %vm848_vm0 = vcmp.eq.s32.totalorder %v756_v19, %v6440_v53 }
 0x20f   : > { %8756 = vst [vmem:[#allocation48_spill] sm:$0xff] %v6787_v62  ;;  %8759 = vst [vmem:[#allocation152_spill] sm:$0xff] %v6791_v3  ;;  %v6811_v3 = vadd.f32 %v8765_v25, %v8764_v60  ;;  %v8767_v62 = vld [vmem:[#allocation52_spill] sm:$0xff]  ;;  %v8772_v31 = vld [vmem:[#allocation53_spill] sm:$0xff]  ;;  %vm850_vm1 = vcmp.eq.s32.totalorder %v756_v19, %v6446_v44  ;;  %v6870_v19 = vsel %vm847_vm8, 1.0, %v8694_v14 }
 0x210   : > { %v6815_v7 = vadd.f32 %v8768_v50, %v8767_v62  ;;  %8770 = vst [vmem:[#allocation16_spill] sm:$0xff] %v6822_v34  ;;  %8771 = vst [vmem:[#allocation51_spill] sm:$0xff] %v6827_v23  ;;  %v6831_v60 = vadd.f32 %v8773_v37, %v8772_v31  ;;  %v8775_v25 = vld [vmem:[#allocation54_spill] sm:$0xff]  ;;  %v6837_v62 = vpop.f32.mrf.mxu0  ;;  %v6847_v23 = vsel %vm846_vm7, 1.0, %v8694_v14  ;;  %v8780_v37 = vld [vmem:[#allocation55_spill] sm:$0xff]  ;;  %vm851_vm3 = vcmp.eq.s32.totalorder %v757_v38, %v6425_v57 }
 0x211   : > { %8766 = vst [vmem:[#allocation50_spill] sm:$0xff] %v6811_v3  ;;  %v8776_v3 = vld [vmem:[#allocation156_spill] sm:$0xff]  ;;  %8778 = vst [vmem:[#allocation154_spill] sm:$0xff] %v6844_v1  ;;  %v8785_v1 = vld [vmem:[#allocation17_spill] sm:$0xff]  ;;  %vm853_vm5 = vcmp.eq.s32.totalorder %v757_v38, %v6434_v17  ;;  %vm852_vm4 = vcmp.eq.s32.totalorder %v757_v38, %v6440_v53  ;;  %vm854_vm9 = vcmp.eq.s32.totalorder %v757_v38, %v6446_v44 }
 0x212   : > { %8769 = vst [vmem:[#allocation6_spill] sm:$0xff] %v6815_v7  ;;  %8774 = vst [vmem:[#allocation7_spill] sm:$0xff] %v6831_v60  ;;  %v6835_v50 = vadd.f32 %v8776_v3, %v8775_v25  ;;  %v6841_v7 = vpop.f32.mrf.mxu1  ;;  %v8781_v3 = vld [vmem:[#allocation5_spill] sm:$0xff]  ;;  %v8783_v25 = vld [vmem:[#allocation56_spill] sm:$0xff]  ;;  %v6859_v60 = vpop.f32.mrf.mxu0  ;;  %v758_v34 = vand.u32 63, %v8785_v1 }
 0x213   : > { %8779 = vst [vmem:[#allocation53_spill] sm:$0xff] %v6847_v23  ;;  %v6853_v31 = vadd.f32 %v8781_v3, %v8780_v37  ;;  %v6865_v23 = vadd.f32 %v6442_v55, %v8786_v20  ;;  %8788 = vst [vmem:[#allocation55_spill] sm:$0xff] %v6870_v19  ;;  %v6873_v37 = vsel %vm849_vm13, 1.0, %v8694_v14  ;;  %v8791_v3 = vld [vmem:[#allocation12_spill] sm:$0xff]  ;;  %v8794_v1 = vld [vmem:[#allocation10_spill] sm:$0xff]  ;;  %v6887_v20 = vsel %vm848_vm0, 1.0, %v8694_v14 }
 0x214   : > { %8777 = vst [vmem:[#allocation52_spill] sm:$0xff] %v6835_v50  ;;  %v6857_v50 = vadd.f32 %v6436_v45, %v8783_v25  ;;  %v6867_v10 = vpop.f32.mrf.mxu1  ;;  %8789 = vst [vmem:[#allocation5_spill] sm:$0xff] %v6873_v37  ;;  %v8790_v45 = vld [vmem:[#allocation58_spill] sm:$0xff]  ;;  %v6884_v55 = vpop.f32.mrf.mxu0  ;;  %v8797_v19 = vld [vmem:[#allocation60_spill] sm:$0xff]  ;;  %vm855_vm12 = vcmp.eq.s32.totalorder %v758_v34, %v6425_v57  ;;  %vm857_vm15 = vcmp.eq.s32.totalorder %v758_v34, %v6434_v17 }
 0x215   : > { %8782 = vst [vmem:[#allocation155_spill] sm:$0xff] %v6853_v31  ;;  %8787 = vst [vmem:[#allocation156_spill] sm:$0xff] %v6865_v23  ;;  %v6878_v25 = vadd.f32 %v8791_v3, %v8790_v45  ;;  %v6890_v23 = vsel %vm850_vm1, 1.0, %v8694_v14  ;;  %v6894_v37 = vadd.f32 %v6467_v47, %v8797_v19  ;;  %v6899_v45 = vsel %vm851_vm3, 1.0, %v8694_v14  ;;  %v8802_v47 = vld [vmem:[#allocation13_spill] sm:$0xff] }
 0x216   : > { %8784 = vst [vmem:[#allocation54_spill] sm:$0xff] %v6857_v50  ;;  %v8793_v50 = vld [vmem:[#allocation59_spill] sm:$0xff]  ;;  %8796 = vst [vmem:[#allocation57_spill] sm:$0xff] %v6890_v23  ;;  %v6896_v4 = vpop.f32.mrf.mxu1  ;;  %v759_v19 = vand.u32 63, %v8802_v47  ;;  %v8807_v23 = vld [vmem:[#allocation64_spill] sm:$0xff]  ;;  %v6932_v47 = vsel %vm852_vm4, 1.0, %v8694_v14  ;;  %vm856_vm2 = vcmp.eq.s32.totalorder %v758_v34, %v6440_v53  ;;  %vm858_vm14 = vcmp.eq.s32.totalorder %v758_v34, %v6446_v44 }
 0x217   : > { %8792 = vst [vmem:[#allocation56_spill] sm:$0xff] %v6878_v25  ;;  %v6882_v31 = vadd.f32 %v8794_v1, %v8793_v50  ;;  %8798 = vst [vmem:[#allocation58_spill] sm:$0xff] %v6894_v37  ;;  %v8800_v50 = vld [vmem:[#allocation61_spill] sm:$0xff]  ;;  %v6907_v1 = vpop.f32.mrf.mxu0  ;;  %v8803_v37 = vld [vmem:[#allocation62_spill] sm:$0xff] }
 0x218   : > { %8799 = vst [vmem:[#allocation12_spill] sm:$0xff] %v6899_v45  ;;  %v6905_v3 = vadd.f32 %v6470_v2, %v8800_v50  ;;  %v6916_v45 = vadd.f32 %v6486_v59, %v8803_v37  ;;  %v8805_v25 = vld [vmem:[#allocation63_spill] sm:$0xff]  ;;  %v6924_v2 = vadd.f32 %v6517_v12, %v8807_v23  ;;  %v6926_v50 = vpop.f32.mrf.mxu1  ;;  %8809 = vst [vmem:[#allocation13_spill] sm:$0xff] %v6932_v47  ;;  %v6935_v59 = vsel %vm854_vm9, 1.0, %v8694_v14  ;;  %v8813_v23 = vld [vmem:[#allocation66_spill] sm:$0xff] }
 0x219   : > { %8795 = vst [vmem:[#allocation17_spill] sm:$0xff] %v6882_v31  ;;  %v6910_v31 = vsel %vm853_vm5, 1.0, %v8694_v14  ;;  %v6920_v38 = vadd.f32 %v6501_v61, %v8805_v25  ;;  %8810 = vst [vmem:[#allocation62_spill] sm:$0xff] %v6935_v59  ;;  %v8811_v61 = vld [vmem:[#allocation65_spill] sm:$0xff]  ;;  %v6945_v37 = vadd.f32 %v6545_v0, %v8813_v23  ;;  %v8816_v59 = vld [vmem:[#allocation67_spill] sm:$0xff]  ;;  %vm859_vm6 = vcmp.eq.s32.totalorder %v759_v19, %v6425_v57 }
 0x21a   : > { %8801 = vst [vmem:[#allocation59_spill] sm:$0xff] %v6905_v3  ;;  %8804 = vst [vmem:[#allocation10_spill] sm:$0xff] %v6916_v45  ;;  %v6929_v3 = vpop.f32.mrf.mxu0  ;;  %v6941_v12 = vadd.f32 %v6534_v13, %v8811_v61  ;;  %v6947_v25 = vpop.f32.mrf.mxu1  ;;  %v6955_v47 = vadd.f32 %v6562_v15, %v8816_v59  ;;  %v6960_v13 = vsel %vm857_vm15, 1.0, %v8694_v14  ;;  %vm861_vm11 = vcmp.eq.s32.totalorder %v759_v19, %v6434_v17  ;;  %v8819_v0 = vld [vmem:[#allocation68_spill] sm:$0xff]  ;;  %v8823_v59 = vld [vmem:[#allocation69_spill] sm:$0xff] }
 0x21b   : > { %8806 = vst [vmem:[#allocation60_spill] sm:$0xff] %v6920_v38  ;;  %8808 = vst [vmem:[#allocation61_spill] sm:$0xff] %v6924_v2  ;;  %v6950_v2 = vsel %vm855_vm12, 1.0, %v8694_v14  ;;  %v8815_v38 = vld [vmem:[#allocation14_spill] sm:$0xff]  ;;  %v6966_v61 = vadd.f32 %v6566_v41, %v8819_v0  ;;  %v6974_v15 = vsel %vm858_vm14, 1.0, %v8694_v14  ;;  %vm860_vm10 = vcmp.eq.s32.totalorder %v759_v19, %v6440_v53  ;;  %v8826_v0 = vld [vmem:[#allocation8_spill] sm:$0xff] }
 0x21c   : > { %8812 = vst [vmem:[#allocation63_spill] sm:$0xff] %v6941_v12  ;;  %8814 = vst [vmem:[#allocation64_spill] sm:$0xff] %v6945_v37  ;;  %v760_v45 = vand.u32 63, %v8815_v38  ;;  %v6957_v34 = vpop.f32.mrf.mxu0  ;;  %v6968_v23 = vpop.f32.mrf.mxu1  ;;  %v6971_v38 = vsel %vm856_vm2, 1.0, %v8694_v14  ;;  %v8824_v37 = vld [vmem:[#allocation70_spill] sm:$0xff]  ;;  %vm862_vm7 = vcmp.eq.s32.totalorder %v759_v19, %v6446_v44 }
 0x21d   : > { %8817 = vst [vmem:[#allocation65_spill] sm:$0xff] %v6955_v47  ;;  %8818 = vst [vmem:[#allocation66_spill] sm:$0xff] %v6960_v13  ;;  %v6979_v47 = vadd.f32 %v6588_v46, %v8823_v59  ;;  %v6983_v12 = vadd.f32 %v6600_v18, %v8824_v37  ;;  %v6995_v13 = vsel %vm861_vm11, 1.0, %v8694_v14  ;;  %v8829_v18 = vld [vmem:[#allocation71_spill] sm:$0xff]  ;;  %v8831_v37 = vld [vmem:[#allocation72_spill] sm:$0xff] }
 0x21e   : > { %8820 = vst [vmem:[#allocation14_spill] sm:$0xff] %v6966_v61  ;;  %8821 = vst [vmem:[#allocation67_spill] sm:$0xff] %v6971_v38  ;;  %v6985_v41 = vpop.f32.mrf.mxu0  ;;  %v761_v61 = vand.u32 63, %v8826_v0  ;;  %v6989_v38 = vpop.f32.mrf.mxu1  ;;  %vm863_vm8 = vcmp.eq.s32.totalorder %v760_v45, %v6425_v57  ;;  %vm865_vm13 = vcmp.eq.s32.totalorder %v760_v45, %v6434_v17  ;;  %v7001_v46 = vadd.f32 %v6616_v22, %v8829_v18 }
 0x21f   : > { %8822 = vst [vmem:[#allocation68_spill] sm:$0xff] %v6974_v15  ;;  %8825 = vst [vmem:[#allocation69_spill] sm:$0xff] %v6983_v12  ;;  %v6992_v15 = vsel %vm859_vm6, 1.0, %v8694_v14  ;;  %v7005_v19 = vadd.f32 %v6633_v24, %v8831_v37  ;;  %v7010_v0 = vsel %vm860_vm10, 1.0, %v8694_v14  ;;  %vm864_vm0 = vcmp.eq.s32.totalorder %v760_v45, %v6440_v53  ;;  %v8834_v12 = vld [vmem:[#allocation73_spill] sm:$0xff]  ;;  %v8837_v37 = vld [vmem:[#allocation74_spill] sm:$0xff] }
 0x220   : > { %8827 = vst [vmem:[#allocation70_spill] sm:$0xff] %v6992_v15  ;;  %8828 = vst [vmem:[#allocation8_spill] sm:$0xff] %v6995_v13  ;;  %v7007_v59 = vpop.f32.mrf.mxu0  ;;  %v7015_v13 = vadd.f32 %v6643_v11, %v8834_v12  ;;  %v7017_v15 = vpop.f32.mrf.mxu1  ;;  %v7020_v22 = vsel %vm862_vm7, 1.0, %v8694_v14  ;;  %vm866_vm1 = vcmp.eq.s32.totalorder %v760_v45, %v6446_v44  ;;  %v8836_v24 = vld [vmem:[#allocation9_spill] sm:$0xff]  ;;  %v7034_v11 = vsel %vm865_vm13, 1.0, %v8694_v14  ;;  %v8841_v12 = vld [vmem:[#allocation75_spill] sm:$0xff] }
 0x221   : > { %8830 = vst [vmem:[#allocation71_spill] sm:$0xff] %v7001_v46  ;;  %8832 = vst [vmem:[#allocation72_spill] sm:$0xff] %v7005_v19  ;;  %v762_v18 = vand.u32 63, %v8836_v24  ;;  %v7026_v19 = vadd.f32 %v6654_v49, %v8837_v37  ;;  %vm867_vm3 = vcmp.eq.s32.totalorder %v761_v61, %v6425_v57  ;;  %v8843_v45 = vld [vmem:[#allocation76_spill] sm:$0xff]  ;;  %v7048_v37 = vsel %vm864_vm0, 1.0, %v8694_v14 }
 0x222   : > { %8833 = vst [vmem:[#allocation183_spill] sm:$0xff] %v7010_v0  ;;  %8835 = vst [vmem:[#allocation73_spill] sm:$0xff] %v7015_v13  ;;  %v7028_v46 = vpop.f32.mrf.mxu0  ;;  %v7031_v0 = vsel %vm863_vm8, 1.0, %v8694_v14  ;;  %v7039_v13 = vadd.f32 %v6669_v28, %v8841_v12  ;;  %v7043_v24 = vadd.f32 %v6677_v26, %v8843_v45  ;;  %v7045_v49 = vpop.f32.mrf.mxu1  ;;  %vm869_vm5 = vcmp.eq.s32.totalorder %v761_v61, %v6434_v17  ;;  %v8849_v26 = vld [vmem:[#allocation78_spill] sm:$0xff] }
 0x223   : > { %8838 = vst [vmem:[#allocation9_spill] sm:$0xff] %v7026_v19  ;;  %8839 = vst [vmem:[#allocation74_spill] sm:$0xff] %v7031_v0  ;;  %v8846_v19 = vld [vmem:[#allocation77_spill] sm:$0xff]  ;;  %v7058_v28 = vsel %vm866_vm1, 1.0, %v8694_v14  ;;  %vm868_vm4 = vcmp.eq.s32.totalorder %v761_v61, %v6440_v53  ;;  %vm870_vm9 = vcmp.eq.s32.totalorder %v761_v61, %v6446_v44  ;;  %v7064_v12 = vadd.f32 %v6707_v27, %v8849_v26 }
 0x224   : > { %8840 = vst [vmem:[#allocation184_spill] sm:$0xff] %v7034_v11  ;;  %8842 = vst [vmem:[#allocation75_spill] sm:$0xff] %v7039_v13  ;;  %v7053_v11 = vadd.f32 %v6695_v6, %v8846_v19  ;;  %v7055_v0 = vpop.f32.mrf.mxu0  ;;  %v7066_v45 = vpop.f32.mrf.mxu1  ;;  %vm871_vm12 = vcmp.eq.s32.totalorder %v762_v18, %v6425_v57  ;;  %v8852_v6 = vld [vmem:[#allocation45_spill] sm:$0xff]  ;;  %v7084_v27 = vsel %vm869_vm5, 1.0, %v8694_v14  ;;  %vm873_vm15 = vcmp.eq.s32.totalorder %v762_v18, %v6434_v17 }
 0x225   : > { %8844 = vst [vmem:[#allocation76_spill] sm:$0xff] %v7043_v24  ;;  %8845 = vst [vmem:[#allocation185_spill] sm:$0xff] %v7048_v37  ;;  %v7069_v24 = vsel %vm867_vm3, 1.0, %v8694_v14  ;;  %v763_v19 = vand.u32 63, %v8852_v6  ;;  %v7093_v6 = vsel %vm870_vm9, 1.0, %v8694_v14  ;;  %vm872_vm2 = vcmp.eq.s32.totalorder %v762_v18, %v6440_v53 }
 0x226   : > { %8847 = vst [vmem:[#allocation77_spill] sm:$0xff] %v7053_v11  ;;  %8848 = vst [vmem:[#allocation186_spill] sm:$0xff] %v7058_v28  ;;  %v8853_v11 = vld [vmem:[#allocation79_spill] sm:$0xff]  ;;  %v8855_v28 = vld [vmem:[#allocation80_spill] sm:$0xff]  ;;  %v7081_v37 = vpop.f32.mrf.mxu0  ;;  %v7087_v26 = vpop.f32.mrf.mxu1  ;;  %vm874_vm14 = vcmp.eq.s32.totalorder %v762_v18, %v6446_v44 }
 0x227   : > { %8850 = vst [vmem:[#allocation78_spill] sm:$0xff] %v7064_v12  ;;  %8851 = vst [vmem:[#allocation187_spill] sm:$0xff] %v7069_v24  ;;  %v7075_v13 = vadd.f32 %v6718_v39, %v8853_v11  ;;  %v7079_v61 = vadd.f32 %v6735_v36, %v8855_v28  ;;  %v7090_v12 = vsel %vm868_vm4, 1.0, %v8694_v14  ;;  %v8860_v39 = vld [vmem:[#allocation81_spill] sm:$0xff]  ;;  %v8862_v11 = vld [vmem:[#allocation82_spill] sm:$0xff]  ;;  %vm875_vm6 = vcmp.eq.s32.totalorder %v763_v19, %v6425_v57 }
 0x228   : > { %8857 = vst [vmem:[#allocation80_spill] sm:$0xff] %v7084_v27  ;;  %8858 = vst [vmem:[#allocation188_spill] sm:$0xff] %v7090_v12  ;;  %v7099_v36 = vadd.f32 %v6743_v40, %v8860_v39  ;;  %v7103_v28 = vadd.f32 %v6756_v35, %v8862_v11  ;;  %v8864_v12 = vld [vmem:[#allocation46_spill] sm:$0xff]  ;;  %v7115_v18 = vpop.f32.mrf.mxu1  ;;  %v7118_v40 = vsel %vm873_vm15, 1.0, %v8694_v14  ;;  %vm877_vm11 = vcmp.eq.s32.totalorder %v763_v19, %v6434_v17  ;;  %v8868_v35 = vld [vmem:[#allocation84_spill] sm:$0xff] }
 0x229   : > { %8854 = vst [vmem:[#allocation45_spill] sm:$0xff] %v7075_v13  ;;  %8856 = vst [vmem:[#allocation79_spill] sm:$0xff] %v7079_v61  ;;  %v7105_v61 = vpop.f32.mrf.mxu0  ;;  %v7108_v13 = vsel %vm871_vm12, 1.0, %v8694_v14  ;;  %v764_v27 = vand.u32 63, %v8864_v12  ;;  %v7124_v39 = vadd.f32 %v6777_v58, %v8868_v35  ;;  %v7129_v12 = vsel %vm872_vm2, 1.0, %v8694_v14  ;;  %v8876_v35 = vld [vmem:[#allocation40_spill] sm:$0xff] }
 0x22a   : > { %8859 = vst [vmem:[#allocation189_spill] sm:$0xff] %v7093_v6  ;;  %8861 = vst [vmem:[#allocation81_spill] sm:$0xff] %v7099_v36  ;;  %v8865_v6 = vld [vmem:[#allocation83_spill] sm:$0xff]  ;;  %vm876_vm10 = vcmp.eq.s32.totalorder %v763_v19, %v6440_v53  ;;  %v7143_v58 = vpop.f32.mrf.mxu1  ;;  %vm878_vm7 = vcmp.eq.s32.totalorder %v763_v19, %v6446_v44 }
 0x22b   : > { %8863 = vst [vmem:[#allocation82_spill] sm:$0xff] %v7103_v28  ;;  %v7113_v24 = vadd.f32 %v6771_v33, %v8865_v6  ;;  %8867 = vst [vmem:[#allocation83_spill] sm:$0xff] %v7118_v40  ;;  %v7126_v11 = vpop.f32.mrf.mxu0  ;;  %v7132_v33 = vsel %vm874_vm14, 1.0, %v8694_v14  ;;  %v8872_v6 = vld [vmem:[#allocation85_spill] sm:$0xff]  ;;  %v8874_v28 = vld [vmem:[#allocation86_spill] sm:$0xff]  ;;  %v7153_v40 = vsel %vm877_vm11, 1.0, %v8694_v14  ;;  %vm879_vm8 = vcmp.eq.s32.totalorder %v764_v27, %v6425_v57 }
 0x22c   : > { %8869 = vst [vmem:[#allocation84_spill] sm:$0xff] %v7124_v39  ;;  %8870 = vst [vmem:[#allocation190_spill] sm:$0xff] %v7129_v12  ;;  %v7141_v36 = vadd.f32 %v6801_v56, %v8874_v28  ;;  %v765_v39 = vand.u32 63, %v8876_v35  ;;  %vm881_vm13 = vcmp.eq.s32.totalorder %v764_v27, %v6434_v17  ;;  %v8878_v56 = vld [vmem:[#allocation87_spill] sm:$0xff]  ;;  %v8880_v28 = vld [vmem:[#allocation88_spill] sm:$0xff]  ;;  %v7168_v35 = vsel %vm876_vm10, 1.0, %v8694_v14 }
 0x22d   : > { %8866 = vst [vmem:[#allocation46_spill] sm:$0xff] %v7113_v24  ;;  %8871 = vst [vmem:[#allocation191_spill] sm:$0xff] %v7132_v33  ;;  %v7137_v24 = vadd.f32 %v6793_v30, %v8872_v6  ;;  %v7147_v12 = vpop.f32.mrf.mxu0  ;;  %v7150_v33 = vsel %vm875_vm6, 1.0, %v8694_v14  ;;  %v7159_v30 = vadd.f32 %v6817_v29, %v8878_v56  ;;  %v7163_v19 = vadd.f32 %v6837_v62, %v8880_v28  ;;  %v7165_v6 = vpop.f32.mrf.mxu1  ;;  %v8885_v62 = vld [vmem:[#allocation41_spill] sm:$0xff]  ;;  %v8886_v28 = vld [vmem:[#allocation90_spill] sm:$0xff] }
 0x22e   : > { %8875 = vst [vmem:[#allocation86_spill] sm:$0xff] %v7141_v36  ;;  %8877 = vst [vmem:[#allocation40_spill] sm:$0xff] %v7153_v40  ;;  %vm880_vm0 = vcmp.eq.s32.totalorder %v764_v27, %v6440_v53  ;;  %v8883_v36 = vld [vmem:[#allocation89_spill] sm:$0xff]  ;;  %v7178_v29 = vsel %vm878_vm7, 1.0, %v8694_v14  ;;  %vm882_vm1 = vcmp.eq.s32.totalorder %v764_v27, %v6446_v44  ;;  %v766_v56 = vand.u32 63, %v8885_v62  ;;  %v8892_v27 = vld [vmem:[#allocation92_spill] sm:$0xff] }
 0x22f   : > { %8873 = vst [vmem:[#allocation85_spill] sm:$0xff] %v7137_v24  ;;  %8879 = vst [vmem:[#allocation87_spill] sm:$0xff] %v7159_v30  ;;  %v7173_v24 = vadd.f32 %v6841_v7, %v8883_v36  ;;  %v7175_v40 = vpop.f32.mrf.mxu0  ;;  %v7186_v30 = vpop.f32.mrf.mxu1  ;;  %v7192_v7 = vsel %vm881_vm13, 1.0, %v8694_v14  ;;  %vm883_vm3 = vcmp.eq.s32.totalorder %v765_v39, %v6425_v57  ;;  %v8890_v36 = vld [vmem:[#allocation91_spill] sm:$0xff]  ;;  %v7201_v62 = vadd.f32 %v6884_v55, %v8892_v27  ;;  %v8898_v55 = vld [vmem:[#allocation94_spill] sm:$0xff] }
 0x230   : > { %8881 = vst [vmem:[#allocation88_spill] sm:$0xff] %v7163_v19  ;;  %8882 = vst [vmem:[#allocation192_spill] sm:$0xff] %v7168_v35  ;;  %v7184_v19 = vadd.f32 %v6859_v60, %v8886_v28  ;;  %v7189_v35 = vsel %vm879_vm8, 1.0, %v8694_v14  ;;  %v7206_v28 = vsel %vm880_vm0, 1.0, %v8694_v14  ;;  %vm885_vm5 = vcmp.eq.s32.totalorder %v765_v39, %v6434_v17 }
 0x231   : > { %8884 = vst [vmem:[#allocation89_spill] sm:$0xff] %v7173_v24  ;;  %8888 = vst [vmem:[#allocation90_spill] sm:$0xff] %v7189_v35  ;;  %v7197_v24 = vadd.f32 %v6867_v10, %v8890_v36  ;;  %v7203_v60 = vpop.f32.mrf.mxu0  ;;  %v7213_v35 = vpop.f32.mrf.mxu1  ;;  %v7216_v10 = vsel %vm882_vm1, 1.0, %v8694_v14  ;;  %vm884_vm4 = vcmp.eq.s32.totalorder %v765_v39, %v6440_v53  ;;  %vm886_vm9 = vcmp.eq.s32.totalorder %v765_v39, %v6446_v44 }
 0x232   : > { %8887 = vst [vmem:[#allocation41_spill] sm:$0xff] %v7184_v19  ;;  %8889 = vst [vmem:[#allocation193_spill] sm:$0xff] %v7192_v7  ;;  %v8895_v19 = vld [vmem:[#allocation93_spill] sm:$0xff]  ;;  %v7222_v36 = vadd.f32 %v6907_v1, %v8898_v55  ;;  %vm887_vm12 = vcmp.eq.s32.totalorder %v766_v56, %v6425_v57  ;;  %v7242_v1 = vsel %vm885_vm5, 1.0, %v8694_v14  ;;  %vm889_vm15 = vcmp.eq.s32.totalorder %v766_v56, %v6434_v17 }
 0x233   : > { %8891 = vst [vmem:[#allocation91_spill] sm:$0xff] %v7197_v24  ;;  %8893 = vst [vmem:[#allocation92_spill] sm:$0xff] %v7201_v62  ;;  %v7211_v7 = vadd.f32 %v6896_v4, %v8895_v19  ;;  %v7224_v27 = vpop.f32.mrf.mxu0  ;;  %v7227_v62 = vsel %vm883_vm3, 1.0, %v8694_v14  ;;  %v8901_v4 = vld [vmem:[#allocation37_spill] sm:$0xff]  ;;  %vm888_vm2 = vcmp.eq.s32.totalorder %v766_v56, %v6440_v53  ;;  %vm890_vm14 = vcmp.eq.s32.totalorder %v766_v56, %v6446_v44 }
 0x234   : > { %8894 = vst [vmem:[#allocation194_spill] sm:$0xff] %v7206_v28  ;;  %8897 = vst [vmem:[#allocation195_spill] sm:$0xff] %v7216_v10  ;;  %v767_v19 = vand.u32 63, %v8901_v4  ;;  %v8904_v10 = vld [vmem:[#allocation96_spill] sm:$0xff]  ;;  %v7239_v28 = vpop.f32.mrf.mxu1  ;;  %v7251_v4 = vsel %vm886_vm9, 1.0, %v8694_v14 }
 0x235   : > { %8896 = vst [vmem:[#allocation93_spill] sm:$0xff] %v7211_v7  ;;  %8899 = vst [vmem:[#allocation94_spill] sm:$0xff] %v7222_v36  ;;  %v8902_v7 = vld [vmem:[#allocation95_spill] sm:$0xff]  ;;  %v7237_v39 = vadd.f32 %v6929_v3, %v8904_v10  ;;  %v7245_v55 = vpop.f32.mrf.mxu0  ;;  %v7248_v36 = vsel %vm884_vm4, 1.0, %v8694_v14  ;;  %v8909_v3 = vld [vmem:[#allocation97_spill] sm:$0xff] }
 0x236   : > { %8900 = vst [vmem:[#allocation196_spill] sm:$0xff] %v7227_v62  ;;  %v7233_v24 = vadd.f32 %v6926_v50, %v8902_v7  ;;  %8906 = vst [vmem:[#allocation96_spill] sm:$0xff] %v7242_v1  ;;  %v7257_v50 = vadd.f32 %v6947_v25, %v8909_v3  ;;  %v8911_v7 = vld [vmem:[#allocation98_spill] sm:$0xff]  ;;  %v7276_v25 = vsel %vm889_vm15, 1.0, %v8694_v14  ;;  %vm891_vm6 = vcmp.eq.s32.totalorder %v767_v19, %v6425_v57 }
 0x237   : > { %8905 = vst [vmem:[#allocation95_spill] sm:$0xff] %v7237_v39  ;;  %8907 = vst [vmem:[#allocation197_spill] sm:$0xff] %v7248_v36  ;;  %v7261_v10 = vadd.f32 %v6957_v34, %v8911_v7  ;;  %v7263_v39 = vpop.f32.mrf.mxu1  ;;  %v8913_v36 = vld [vmem:[#allocation38_spill] sm:$0xff]  ;;  %v7273_v56 = vpop.f32.mrf.mxu0  ;;  %vm893_vm11 = vcmp.eq.s32.totalorder %v767_v19, %v6434_v17  ;;  %v8917_v34 = vld [vmem:[#allocation100_spill] sm:$0xff]  ;;  %vm892_vm10 = vcmp.eq.s32.totalorder %v767_v19, %v6440_v53 }
 0x238   : > { %8903 = vst [vmem:[#allocation37_spill] sm:$0xff] %v7233_v24  ;;  %8908 = vst [vmem:[#allocation198_spill] sm:$0xff] %v7251_v4  ;;  %v7266_v24 = vsel %vm887_vm12, 1.0, %v8694_v14  ;;  %v768_v1 = vand.u32 63, %v8913_v36  ;;  %v8914_v4 = vld [vmem:[#allocation99_spill] sm:$0xff]  ;;  %v7282_v3 = vadd.f32 %v6985_v41, %v8917_v34  ;;  %v7287_v36 = vsel %vm888_vm2, 1.0, %v8694_v14 }
 0x239   : > { %8910 = vst [vmem:[#allocation97_spill] sm:$0xff] %v7257_v50  ;;  %8912 = vst [vmem:[#allocation98_spill] sm:$0xff] %v7261_v10  ;;  %v7271_v62 = vadd.f32 %v6968_v23, %v8914_v4  ;;  %v7284_v7 = vpop.f32.mrf.mxu1  ;;  %v7290_v23 = vsel %vm890_vm14, 1.0, %v8694_v14  ;;  %v8921_v4 = vld [vmem:[#allocation101_spill] sm:$0xff]  ;;  %v8923_v10 = vld [vmem:[#allocation102_spill] sm:$0xff]  ;;  %v7301_v41 = vpop.f32.mrf.mxu0  ;;  %vm894_vm7 = vcmp.eq.s32.totalorder %v767_v19, %v6446_v44 }
 0x23a   : > { %8916 = vst [vmem:[#allocation99_spill] sm:$0xff] %v7276_v25  ;;  %8918 = vst [vmem:[#allocation100_spill] sm:$0xff] %v7282_v3  ;;  %v7299_v50 = vadd.f32 %v7007_v59, %v8923_v10  ;;  %v8925_v34 = vld [vmem:[#allocation35_spill] sm:$0xff]  ;;  %v7311_v25 = vsel %vm893_vm11, 1.0, %v8694_v14  ;;  %vm895_vm8 = vcmp.eq.s32.totalorder %v768_v1, %v6425_v57  ;;  %vm897_vm13 = vcmp.eq.s32.totalorder %v768_v1, %v6434_v17  ;;  %v8929_v10 = vld [vmem:[#allocation104_spill] sm:$0xff] }
 0x23b   : > { %8915 = vst [vmem:[#allocation38_spill] sm:$0xff] %v7271_v62  ;;  %8919 = vst [vmem:[#allocation199_spill] sm:$0xff] %v7287_v36  ;;  %v7295_v62 = vadd.f32 %v6989_v38, %v8921_v4  ;;  %v769_v3 = vand.u32 63, %v8925_v34  ;;  %v7305_v36 = vpop.f32.mrf.mxu1  ;;  %v8927_v38 = vld [vmem:[#allocation103_spill] sm:$0xff]  ;;  %v7321_v19 = vadd.f32 %v7028_v46, %v8929_v10  ;;  %v7323_v4 = vpop.f32.mrf.mxu0  ;;  %v7326_v34 = vsel %vm892_vm10, 1.0, %v8694_v14  ;;  %v8934_v46 = vld [vmem:[#allocation36_spill] sm:$0xff] }
 0x23c   : > { %8920 = vst [vmem:[#allocation200_spill] sm:$0xff] %v7290_v23  ;;  %8924 = vst [vmem:[#allocation102_spill] sm:$0xff] %v7299_v50  ;;  %v7308_v23 = vsel %vm891_vm6, 1.0, %v8694_v14  ;;  %v7317_v59 = vadd.f32 %v7017_v15, %v8927_v38  ;;  %vm896_vm0 = vcmp.eq.s32.totalorder %v768_v1, %v6440_v53  ;;  %v8932_v50 = vld [vmem:[#allocation105_spill] sm:$0xff]  ;;  %v7336_v15 = vsel %vm894_vm7, 1.0, %v8694_v14  ;;  %v8935_v10 = vld [vmem:[#allocation106_spill] sm:$0xff] }
 0x23d   : > { %8922 = vst [vmem:[#allocation101_spill] sm:$0xff] %v7295_v62  ;;  %8926 = vst [vmem:[#allocation35_spill] sm:$0xff] %v7311_v25  ;;  %v7331_v62 = vadd.f32 %v7045_v49, %v8932_v50  ;;  %v7333_v25 = vpop.f32.mrf.mxu1  ;;  %vm898_vm1 = vcmp.eq.s32.totalorder %v768_v1, %v6446_v44  ;;  %v770_v38 = vand.u32 63, %v8934_v46  ;;  %v7350_v49 = vsel %vm897_vm13, 1.0, %v8694_v14  ;;  %v8939_v50 = vld [vmem:[#allocation107_spill] sm:$0xff]  ;;  %v8941_v1 = vld [vmem:[#allocation108_spill] sm:$0xff] }
 0x23e   : > { %8928 = vst [vmem:[#allocation103_spill] sm:$0xff] %v7317_v59  ;;  %8930 = vst [vmem:[#allocation104_spill] sm:$0xff] %v7321_v19  ;;  %v7342_v19 = vadd.f32 %v7055_v0, %v8935_v10  ;;  %v7344_v59 = vpop.f32.mrf.mxu0  ;;  %vm899_vm3 = vcmp.eq.s32.totalorder %v769_v3, %v6425_v57  ;;  %v7359_v46 = vadd.f32 %v7081_v37, %v8941_v1  ;;  %v7364_v10 = vsel %vm896_vm0, 1.0, %v8694_v14  ;;  %v8947_v37 = vld [vmem:[#allocation110_spill] sm:$0xff] }
 0x23f   : > { %8931 = vst [vmem:[#allocation201_spill] sm:$0xff] %v7326_v34  ;;  %8933 = vst [vmem:[#allocation105_spill] sm:$0xff] %v7331_v62  ;;  %v7347_v34 = vsel %vm895_vm8, 1.0, %v8694_v14  ;;  %v7355_v62 = vadd.f32 %v7066_v45, %v8939_v50  ;;  %v7361_v0 = vpop.f32.mrf.mxu1  ;;  %vm901_vm5 = vcmp.eq.s32.totalorder %v769_v3, %v6434_v17  ;;  %v7374_v45 = vsel %vm898_vm1, 1.0, %v8694_v14 }
 0x240   : > { %8936 = vst [vmem:[#allocation36_spill] sm:$0xff] %v7342_v19  ;;  %8937 = vst [vmem:[#allocation106_spill] sm:$0xff] %v7347_v34  ;;  %v8944_v19 = vld [vmem:[#allocation109_spill] sm:$0xff]  ;;  %v7371_v34 = vpop.f32.mrf.mxu0  ;;  %vm900_vm4 = vcmp.eq.s32.totalorder %v769_v3, %v6440_v53  ;;  %vm902_vm9 = vcmp.eq.s32.totalorder %v769_v3, %v6446_v44  ;;  %v7380_v50 = vadd.f32 %v7105_v61, %v8947_v37  ;;  %v7400_v61 = vsel %vm901_vm5, 1.0, %v8694_v14 }
 0x241   : > { %8938 = vst [vmem:[#allocation202_spill] sm:$0xff] %v7350_v49  ;;  %8940 = vst [vmem:[#allocation107_spill] sm:$0xff] %v7355_v62  ;;  %v7369_v49 = vadd.f32 %v7087_v26, %v8944_v19  ;;  %v7382_v1 = vpop.f32.mrf.mxu1  ;;  %vm903_vm12 = vcmp.eq.s32.totalorder %v770_v38, %v6425_v57  ;;  %v8949_v26 = vld [vmem:[#allocation33_spill] sm:$0xff]  ;;  %vm905_vm15 = vcmp.eq.s32.totalorder %v770_v38, %v6434_v17 }
 0x242   : > { %8942 = vst [vmem:[#allocation108_spill] sm:$0xff] %v7359_v46  ;;  %8943 = vst [vmem:[#allocation203_spill] sm:$0xff] %v7364_v10  ;;  %v7385_v46 = vsel %vm899_vm3, 1.0, %v8694_v14  ;;  %v771_v19 = vand.u32 63, %v8949_v26  ;;  %v7397_v10 = vpop.f32.mrf.mxu0  ;;  %v8955_v37 = vld [vmem:[#allocation113_spill] sm:$0xff]  ;;  %vm904_vm2 = vcmp.eq.s32.totalorder %v770_v38, %v6440_v53  ;;  %vm906_vm14 = vcmp.eq.s32.totalorder %v770_v38, %v6446_v44 }
 0x243   : > { %8945 = vst [vmem:[#allocation109_spill] sm:$0xff] %v7369_v49  ;;  %8946 = vst [vmem:[#allocation204_spill] sm:$0xff] %v7374_v45  ;;  %v8950_v49 = vld [vmem:[#allocation111_spill] sm:$0xff]  ;;  %v8952_v45 = vld [vmem:[#allocation112_spill] sm:$0xff]  ;;  %v7407_v26 = vpop.f32.mrf.mxu1 }
 0x244   : > { %8948 = vst [vmem:[#allocation110_spill] sm:$0xff] %v7380_v50  ;;  %v7391_v62 = vadd.f32 %v7115_v18, %v8950_v49  ;;  %v7395_v3 = vadd.f32 %v7126_v11, %v8952_v45  ;;  %8954 = vst [vmem:[#allocation112_spill] sm:$0xff] %v7400_v61  ;;  %v7405_v50 = vadd.f32 %v7143_v58, %v8955_v37  ;;  %v7410_v18 = vsel %vm900_vm4, 1.0, %v8694_v14  ;;  %v8959_v11 = vld [vmem:[#allocation114_spill] sm:$0xff] }
 0x245   : > { %8957 = vst [vmem:[#allocation205_spill] sm:$0xff] %v7410_v18  ;;  %v7413_v49 = vsel %vm902_vm9, 1.0, %v8694_v14  ;;  %v7418_v45 = vadd.f32 %v7147_v12, %v8959_v11  ;;  %v8962_v58 = vld [vmem:[#allocation34_spill] sm:$0xff]  ;;  %v7434_v61 = vsel %vm905_vm15, 1.0, %v8694_v14  ;;  %vm907_vm6 = vcmp.eq.s32.totalorder %v771_v19, %v6425_v57  ;;  %v8966_v12 = vld [vmem:[#allocation116_spill] sm:$0xff] }
 0x246   : > { %8951 = vst [vmem:[#allocation33_spill] sm:$0xff] %v7391_v62  ;;  %8953 = vst [vmem:[#allocation111_spill] sm:$0xff] %v7395_v3  ;;  %v7420_v3 = vpop.f32.mrf.mxu0  ;;  %v7423_v62 = vsel %vm903_vm12, 1.0, %v8694_v14  ;;  %v772_v37 = vand.u32 63, %v8962_v58  ;;  %vm909_vm11 = vcmp.eq.s32.totalorder %v771_v19, %v6434_v17  ;;  %v7440_v11 = vadd.f32 %v7175_v40, %v8966_v12  ;;  %v8974_v12 = vld [vmem:[#allocation31_spill] sm:$0xff] }
 0x247   : > { %8956 = vst [vmem:[#allocation113_spill] sm:$0xff] %v7405_v50  ;;  %8958 = vst [vmem:[#allocation206_spill] sm:$0xff] %v7413_v49  ;;  %v8963_v50 = vld [vmem:[#allocation115_spill] sm:$0xff]  ;;  %v7431_v49 = vpop.f32.mrf.mxu1  ;;  %v7445_v58 = vsel %vm904_vm2, 1.0, %v8694_v14  ;;  %vm908_vm10 = vcmp.eq.s32.totalorder %v771_v19, %v6440_v53  ;;  %vm910_vm7 = vcmp.eq.s32.totalorder %v771_v19, %v6446_v44  ;;  %v7460_v40 = vsel %vm906_vm14, 1.0, %v8694_v14 }
 0x248   : > { %8960 = vst [vmem:[#allocation114_spill] sm:$0xff] %v7418_v45  ;;  %8961 = vst [vmem:[#allocation207_spill] sm:$0xff] %v7423_v62  ;;  %v7429_v18 = vadd.f32 %v7165_v6, %v8963_v50  ;;  %v7442_v38 = vpop.f32.mrf.mxu0  ;;  %v8969_v6 = vld [vmem:[#allocation117_spill] sm:$0xff]  ;;  %v7466_v62 = vsel %vm907_vm6, 1.0, %v8694_v14  ;;  %v7469_v19 = vsel %vm909_vm11, 1.0, %v8694_v14  ;;  %vm911_vm8 = vcmp.eq.s32.totalorder %v772_v37, %v6425_v57 }
 0x249   : > { %8965 = vst [vmem:[#allocation115_spill] sm:$0xff] %v7434_v61  ;;  %8967 = vst [vmem:[#allocation116_spill] sm:$0xff] %v7440_v11  ;;  %v7451_v50 = vadd.f32 %v7186_v30, %v8969_v6  ;;  %v7457_v61 = vpop.f32.mrf.mxu1  ;;  %v773_v11 = vand.u32 63, %v8974_v12  ;;  %vm913_vm13 = vcmp.eq.s32.totalorder %v772_v37, %v6434_v17  ;;  %v8977_v30 = vld [vmem:[#allocation119_spill] sm:$0xff]  ;;  %vm912_vm0 = vcmp.eq.s32.totalorder %v772_v37, %v6440_v53 }
 0x24a   : > { %8964 = vst [vmem:[#allocation34_spill] sm:$0xff] %v7429_v18  ;;  %8968 = vst [vmem:[#allocation208_spill] sm:$0xff] %v7445_v58  ;;  %v8971_v18 = vld [vmem:[#allocation118_spill] sm:$0xff]  ;;  %v7463_v58 = vpop.f32.mrf.mxu0  ;;  %vm914_vm1 = vcmp.eq.s32.totalorder %v772_v37, %v6446_v44  ;;  %v8990_v37 = vld [vmem:[#allocation32_spill] sm:$0xff] }
 0x24b   : > { %8970 = vst [vmem:[#allocation117_spill] sm:$0xff] %v7451_v50  ;;  %v7455_v45 = vadd.f32 %v7203_v60, %v8971_v18  ;;  %8973 = vst [vmem:[#allocation209_spill] sm:$0xff] %v7460_v40  ;;  %v7475_v60 = vadd.f32 %v7213_v35, %v8977_v30  ;;  %v8979_v18 = vld [vmem:[#allocation120_spill] sm:$0xff]  ;;  %v7481_v12 = vpop.f32.mrf.mxu1  ;;  %v7487_v50 = vsel %vm910_vm7, 1.0, %v8694_v14  ;;  %v8984_v40 = vld [vmem:[#allocation122_spill] sm:$0xff]  ;;  %vm915_vm3 = vcmp.eq.s32.totalorder %v773_v11, %v6425_v57 }
 0x24c   : > { %8975 = vst [vmem:[#allocation31_spill] sm:$0xff] %v7466_v62  ;;  %8976 = vst [vmem:[#allocation210_spill] sm:$0xff] %v7469_v19  ;;  %v7479_v6 = vadd.f32 %v7224_v27, %v8979_v18  ;;  %v8982_v19 = vld [vmem:[#allocation121_spill] sm:$0xff]  ;;  %v7495_v35 = vadd.f32 %v7245_v55, %v8984_v40  ;;  %v7497_v30 = vpop.f32.mrf.mxu0  ;;  %v7504_v18 = vsel %vm911_vm8, 1.0, %v8694_v14  ;;  %vm917_vm5 = vcmp.eq.s32.totalorder %v773_v11, %v6434_v17 }
 0x24d   : > { %8972 = vst [vmem:[#allocation118_spill] sm:$0xff] %v7455_v45  ;;  %8978 = vst [vmem:[#allocation119_spill] sm:$0xff] %v7475_v60  ;;  %v7484_v45 = vsel %vm908_vm10, 1.0, %v8694_v14  ;;  %v7491_v62 = vadd.f32 %v7239_v28, %v8982_v19  ;;  %v7501_v27 = vpop.f32.mrf.mxu1  ;;  %v8988_v28 = vld [vmem:[#allocation123_spill] sm:$0xff]  ;;  %vm916_vm4 = vcmp.eq.s32.totalorder %v773_v11, %v6440_v53  ;;  %vm918_vm9 = vcmp.eq.s32.totalorder %v773_v11, %v6446_v44 }
 0x24e   : > { %8980 = vst [vmem:[#allocation120_spill] sm:$0xff] %v7479_v6  ;;  %8981 = vst [vmem:[#allocation211_spill] sm:$0xff] %v7487_v50  ;;  %v7507_v6 = vsel %vm913_vm13, 1.0, %v8694_v14  ;;  %v7513_v55 = vadd.f32 %v7263_v39, %v8988_v28  ;;  %v7515_v40 = vpop.f32.mrf.mxu0  ;;  %v774_v19 = vand.u32 63, %v8990_v37  ;;  %v7531_v39 = vsel %vm912_vm0, 1.0, %v8694_v14  ;;  %v8999_v37 = vld [vmem:[#allocation127_spill] sm:$0xff] }
 0x24f   : > { %8983 = vst [vmem:[#allocation121_spill] sm:$0xff] %v7491_v62  ;;  %8985 = vst [vmem:[#allocation122_spill] sm:$0xff] %v7495_v35  ;;  %v8991_v35 = vld [vmem:[#allocation124_spill] sm:$0xff]  ;;  %v7528_v60 = vpop.f32.mrf.mxu1  ;;  %v7534_v28 = vsel %vm914_vm1, 1.0, %v8694_v14 }
 0x250   : > { %8986 = vst [vmem:[#allocation212_spill] sm:$0xff] %v7504_v18  ;;  %8987 = vst [vmem:[#allocation213_spill] sm:$0xff] %v7507_v6  ;;  %v7522_v62 = vadd.f32 %v7273_v56, %v8991_v35  ;;  %v8993_v6 = vld [vmem:[#allocation125_spill] sm:$0xff]  ;;  %v7542_v56 = vadd.f32 %v7305_v36, %v8999_v37  ;;  %v2577_v35 = vpop.f32.mrf.mxu0  ;;  %v7563_v36 = vsel %vm918_vm9, 1.0, %v8694_v14  ;;  %vm919_vm12 = vcmp.eq.s32.totalorder %v774_v19, %v6425_v57 }
 0x251   : > { %8989 = vst [vmem:[#allocation123_spill] sm:$0xff] %v7513_v55  ;;  %v7526_v18 = vadd.f32 %v7284_v7, %v8993_v6  ;;  %8995 = vst [vmem:[#allocation125_spill] sm:$0xff] %v7531_v39  ;;  %v8997_v55 = vld [vmem:[#allocation126_spill] sm:$0xff]  ;;  %v7545_v7 = vsel %vm915_vm3, 1.0, %v8694_v14  ;;  %v7548_v6 = vsel %vm917_vm5, 1.0, %v8694_v14  ;;  %v2770_v39 = vpop.f32.mrf.mxu1  ;;  %vm921_vm15 = vcmp.eq.s32.totalorder %v774_v19, %v6434_v17 }
 0x252   : > { %8992 = vst [vmem:[#allocation32_spill] sm:$0xff] %v7522_v62  ;;  %8996 = vst [vmem:[#allocation214_spill] sm:$0xff] %v7534_v28  ;;  %v7538_v50 = vadd.f32 %v7301_v41, %v8997_v55  ;;  %v2929_v28 = vadd.f32 %v2577_v35, %v6457_v43  ;;  %v7558_v41 = vsel %vm916_vm4, 1.0, %v8694_v14  ;;  %v9004_v55 = vld [vmem:[#allocation129_spill] sm:$0xff]  ;;  %v9006_v43 = vld [vmem:[#allocation130_spill] sm:$0xff]  ;;  %vm920_vm2 = vcmp.eq.s32.totalorder %v774_v19, %v6440_v53 }
 0x253   : > { %8994 = vst [vmem:[#allocation124_spill] sm:$0xff] %v7526_v18  ;;  %9000 = vst [vmem:[#allocation127_spill] sm:$0xff] %v7542_v56  ;;  %v9001_v18 = vld [vmem:[#allocation128_spill] sm:$0xff]  ;;  %v7567_v37 = vadd.f32 %v7333_v25, %v9004_v55  ;;  %v7574_v35 = vadd.f32 %v7344_v59, %v9006_v43  ;;  %v2772_v56 = vpop.f32.mrf.mxu1  ;;  %v9008_v55 = vld [vmem:[#allocation11_spill] sm:$0xff]  ;;  %vm922_vm14 = vcmp.eq.s32.totalorder %v774_v19, %v6446_v44 }
 0x254   : > { %8998 = vst [vmem:[#allocation126_spill] sm:$0xff] %v7538_v50  ;;  %v7552_v62 = vadd.f32 %v7323_v4, %v9001_v18  ;;  %9003 = vst [vmem:[#allocation215_spill] sm:$0xff] %v7563_v36  ;;  %v2931_v4 = vadd.f32 %v2770_v39, %v6461_v48  ;;  %v2579_v18 = vpop.f32.mrf.mxu0  ;;  %v2932_v48 = vadd.f32 %v2772_v56, %v9008_v55  ;;  %v9010_v50 = vld [vmem:[#allocation157_spill] sm:$0xff]  ;;  %v9011_v43 = vld [vmem:[#allocation26_spill] sm:$0xff] }
 0x255   : > { %9005 = vst [vmem:[#allocation129_spill] sm:$0xff] %v7567_v37  ;;  %9007 = vst [vmem:[#allocation130_spill] sm:$0xff] %v7574_v35  ;;  %v2930_v11 = vadd.f32 %v2579_v18, %v6465_v63  ;;  %v9009_v37 = vld [vmem:[#allocation29_spill] sm:$0xff]  ;;  %v7588_v63 = vsel %vm919_vm12, 1.0, %v8694_v14  ;;  %vm3418_vm12 = vcmask 1041409  }
 0x256   : > { %9002 = vst [vmem:[#allocation128_spill] sm:$0xff] %v7552_v62  ;;  %v3057_v62 = vmul.f32 %v6473_v42, %v2929_v28  ;;  %v3059_v25 = vmul.f32 %v6494_v52, %v2931_v4  ;;  %v2581_v39 = vpop.f32.mrf.mxu0  ;;  %v7583_v36 = vand.u32 63, %v9009_v37  ;;  %v2774_v42 = vpop.f32.mrf.mxu1  ;;  %9012 = vst [vmem:[#allocation11_spill] sm:$0xff] %v7588_v63  ;;  %v7591_v28 = vsel %vm921_vm15, 1.0, %v8694_v14  ;;  %v9014_v52 = vld [vmem:[#allocation131_spill] sm:$0xff]  ;;  %v9015_v4 = vld [vmem:[#allocation132_spill] sm:$0xff] }
 0x257   : > { %v3058_v59 = vmul.f32 %v9010_v50, %v2930_v11  ;;  %v2933_v35 = vadd.f32 %v2581_v39, %v9011_v43  ;;  %9013 = vst [vmem:[#allocation29_spill] sm:$0xff] %v7591_v28  ;;  %v7595_v56 = vadd.f32 %v7361_v0, %v9014_v52  ;;  %v7599_v18 = vadd.f32 %v7371_v34, %v9015_v4  ;;  %v9017_v50 = vld [vmem:[#allocation24_spill] sm:$0xff]  ;;  %v9018_v0 = vld [vmem:[#allocation133_spill] sm:$0xff]  ;;  %v9021_v4 = vld [vmem:[#allocation158_spill] sm:$0xff] }
 0x258   : > { %v3060_v37 = vmul.f32 %v6522_v32, %v2932_v48  ;;  %v2935_v11 = vadd.f32 %v2774_v42, %v9017_v50  ;;  %v2583_v55 = vpop.f32.mrf.mxu0  ;;  %v2776_v63 = vpop.f32.mrf.mxu1  ;;  %v7608_v28 = vsel %vm920_vm2, 1.0, %v8694_v14  ;;  %v7613_v34 = vsel %vm922_vm14, 1.0, %v8694_v14 }
 0x259   : > { %9016 = vst [vmem:[#allocation157_spill] sm:$0xff] %v7599_v18  ;;  %v3061_v39 = vmul.f32 %v6527_v9, %v2933_v35  ;;  %v2934_v43 = vadd.f32 %v2583_v55, %v6515_v5  ;;  %v7617_v32 = vadd.f32 %v7382_v1, %v9018_v0  ;;  %v9020_v9 = vld [vmem:[#allocation25_spill] sm:$0xff]  ;;  %vm923_vm6 = vcmp.eq.s32.totalorder %v7583_v36, %v6425_v57  ;;  %v9022_v55 = vld [vmem:[#allocation134_spill] sm:$0xff] }
 0x25a   : > { %v3063_v48 = vmul.f32 %v6537_v21, %v2935_v11  ;;  %v2936_v35 = vadd.f32 %v2776_v63, %v9020_v9  ;;  %v2587_v5 = vpop.f32.mrf.mxu0  ;;  %v2780_v19 = vpop.f32.mrf.mxu1  ;;  %vm925_vm11 = vcmp.eq.s32.totalorder %v7583_v36, %v6434_v17  ;;  %v7629_v1 = vadd.f32 %v7397_v10, %v9022_v55  ;;  %v9024_v11 = vld [vmem:[#allocation159_spill] sm:$0xff]  ;;  %v9026_v10 = vld [vmem:[#allocation160_spill] sm:$0xff] }
 0x25b   : > { %9019 = vst [vmem:[#allocation26_spill] sm:$0xff] %v7617_v32  ;;  %v3185_v42 = vadd.f32 %v3061_v39, %v3057_v62  ;;  %v3062_v52 = vmul.f32 %v6548_v51, %v2934_v43  ;;  %v2937_v50 = vadd.f32 %v2587_v5, %v9021_v4  ;;  %v2939_v0 = vadd.f32 %v2780_v19, %v6556_v54  ;;  %v9025_v4 = vld [vmem:[#allocation22_spill] sm:$0xff]  ;;  %v9027_v54 = vld [vmem:[#allocation135_spill] sm:$0xff] }
 0x25c   : > { %9023 = vst [vmem:[#allocation131_spill] sm:$0xff] %v7629_v1  ;;  %v3211_v21 = vadd.f32 %v3063_v48, %v3059_v25  ;;  %v3064_v63 = vmul.f32 %v9024_v11, %v2936_v35  ;;  %v2589_v9 = vpop.f32.mrf.mxu0  ;;  %v2782_v39 = vpop.f32.mrf.mxu1  ;;  %v7636_v43 = vsel %vm923_vm6, 1.0, %v8694_v14  ;;  %v7641_v48 = vsel %vm925_vm11, 1.0, %v8694_v14  ;;  %v9029_v35 = vld [vmem:[#allocation162_spill] sm:$0xff] }
 0x25d   : > { %v3198_v32 = vadd.f32 %v3062_v52, %v3058_v59  ;;  %v3065_v62 = vmul.f32 %v6571_v16, %v2937_v50  ;;  %v2938_v51 = vadd.f32 %v2589_v9, %v6560_v8  ;;  %v3067_v18 = vmul.f32 %v9025_v4, %v2939_v0  ;;  %v9030_v52 = vld [vmem:[#allocation161_spill] sm:$0xff]  ;;  %v9032_v0 = vld [vmem:[#allocation163_spill] sm:$0xff] }
 0x25e   : > { %v3224_v5 = vadd.f32 %v3064_v63, %v3060_v37  ;;  %v2940_v55 = vadd.f32 %v2782_v39, %v9026_v10  ;;  %v2591_v25 = vpop.f32.mrf.mxu0  ;;  %v7645_v59 = vadd.f32 %v7407_v26, %v9027_v54  ;;  %v2784_v19 = vpop.f32.mrf.mxu1  ;;  %v9031_v37 = vld [vmem:[#allocation164_spill] sm:$0xff]  ;;  %vm924_vm10 = vcmp.eq.s32.totalorder %v7583_v36, %v6440_v53  ;;  %v9033_v10 = vld [vmem:[#allocation165_spill] sm:$0xff]  ;;  %v9034_v26 = vld [vmem:[#allocation23_spill] sm:$0xff] }
 0x25f   : > { %v3186_v16 = vadd.f32 %v3185_v42, %v3065_v62  ;;  %v3066_v8 = vmul.f32 %v9029_v35, %v2938_v51  ;;  %v2941_v50 = vadd.f32 %v2591_v25, %v9030_v52  ;;  %v3212_v11 = vadd.f32 %v3211_v21, %v3067_v18  ;;  %v9035_v51 = vld [vmem:[#allocation166_spill] sm:$0xff]  ;;  %v9036_v21 = vld [vmem:[#allocation167_spill] sm:$0xff] }
 0x260   : > { %9028 = vst [vmem:[#allocation132_spill] sm:$0xff] %v7645_v59  ;;  %v3068_v63 = vmul.f32 %v9031_v37, %v2940_v55  ;;  %v2943_v9 = vadd.f32 %v2784_v19, %v9032_v0  ;;  %v2593_v39 = vpop.f32.mrf.mxu0  ;;  %v2786_v42 = vpop.f32.mrf.mxu1  ;;  %vm926_vm7 = vcmp.eq.s32.totalorder %v7583_v36, %v6446_v44  ;;  %v9037_v35 = vld [vmem:[#allocation30_spill] sm:$0xff]  ;;  %v9038_v19 = vld [vmem:[#allocation136_spill] sm:$0xff]  ;;  %vm3420_vm15 = vcmask 1045509  }
 0x261   : > { %v3199_v4 = vadd.f32 %v3198_v32, %v3066_v8  ;;  %v3069_v1 = vmul.f32 %v9033_v10, %v2941_v50  ;;  %v2942_v54 = vadd.f32 %v2593_v39, %v9034_v26  ;;  %v2944_v55 = vadd.f32 %v2786_v42, %v9036_v21  ;;  %v9040_v50 = vld [vmem:[#allocation169_spill] sm:$0xff]  ;;  %v9041_v0 = vld [vmem:[#allocation168_spill] sm:$0xff] }
 0x262   : > { %v3225_v62 = vadd.f32 %v3224_v5, %v3068_v63  ;;  %v3071_v18 = vmul.f32 %v9035_v51, %v2943_v9  ;;  %v2597_v25 = vpop.f32.mrf.mxu0  ;;  %v7660_v52 = vand.u32 63, %v9037_v35  ;;  %v7664_v32 = vadd.f32 %v7420_v3, %v9038_v19  ;;  %v2790_v10 = vpop.f32.mrf.mxu1  ;;  %v9042_v5 = vld [vmem:[#allocation171_spill] sm:$0xff]  ;;  %v9043_v9 = vld [vmem:[#allocation170_spill] sm:$0xff]  ;;  %v9045_v35 = vld [vmem:[#allocation173_spill] sm:$0xff] }
 0x263   : > { %v3187_v8 = vadd.f32 %v3186_v16, %v3069_v1  ;;  %v3070_v37 = vmul.f32 %v9040_v50, %v2942_v54  ;;  %v2945_v39 = vadd.f32 %v2597_v25, %v9041_v0  ;;  %v3072_v63 = vmul.f32 %v9042_v5, %v2944_v55  ;;  %v9046_v16 = vld [vmem:[#allocation172_spill] sm:$0xff]  ;;  %v9050_v50 = vld [vmem:[#allocation175_spill] sm:$0xff] }
 0x264   : > { %9039 = vst [vmem:[#allocation24_spill] sm:$0xff] %v7664_v32  ;;  %v3213_v26 = vadd.f32 %v3212_v11, %v3071_v18  ;;  %v2947_v51 = vadd.f32 %v2790_v10, %v9043_v9  ;;  %v2599_v42 = vpop.f32.mrf.mxu0  ;;  %v7674_v21 = vsel %vm924_vm10, 1.0, %v8694_v14  ;;  %v2792_v19 = vpop.f32.mrf.mxu1  ;;  %v7682_v11 = vsel %vm926_vm7, 1.0, %v8694_v14  ;;  %v9048_v18 = vld [vmem:[#allocation137_spill] sm:$0xff]  ;;  %v9051_v10 = vld [vmem:[#allocation20_spill] sm:$0xff] }
 0x265   : > { %9044 = vst [vmem:[#allocation133_spill] sm:$0xff] %v7674_v21  ;;  %v3200_v3 = vadd.f32 %v3199_v4, %v3070_v37  ;;  %v3073_v1 = vmul.f32 %v9045_v35, %v2945_v39  ;;  %v2946_v54 = vadd.f32 %v2599_v42, %v9046_v16  ;;  %9047 = vst [vmem:[#allocation25_spill] sm:$0xff] %v7682_v11  ;;  %v9052_v5 = vld [vmem:[#allocation176_spill] sm:$0xff]  ;;  %v9053_v42 = vld [vmem:[#allocation174_spill] sm:$0xff]  ;;  %vm3423_vm11 = vcmask 1042434  }
 0x266   : > { %v7686_v55 = vadd.f32 %v7431_v49, %v9048_v18  ;;  %v3226_v25 = vadd.f32 %v3225_v62, %v3072_v63  ;;  %v3075_v0 = vmul.f32 %v9050_v50, %v2947_v51  ;;  %v2948_v4 = vadd.f32 %v2792_v19, %v9051_v10  ;;  %v2601_v37 = vpop.f32.mrf.mxu0  ;;  %v2794_v16 = vpop.f32.mrf.mxu1  ;;  %v9054_v32 = vld [vmem:[#allocation177_spill] sm:$0xff]  ;;  %v9055_v49 = vld [vmem:[#allocation178_spill] sm:$0xff]  ;;  %v9059_v19 = vld [vmem:[#allocation179_spill] sm:$0xff] }
 0x267   : > { %v3188_v39 = vadd.f32 %v3187_v8, %v3073_v1  ;;  %v3074_v9 = vmul.f32 %v9052_v5, %v2946_v54  ;;  %v2949_v35 = vadd.f32 %v2601_v37, %v9053_v42  ;;  %vm927_vm8 = vcmp.eq.s32.totalorder %v7660_v52, %v6425_v57  ;;  %v9056_v63 = vld [vmem:[#allocation138_spill] sm:$0xff]  ;;  %v9058_v1 = vld [vmem:[#allocation180_spill] sm:$0xff] }
 0x268   : > { %9049 = vst [vmem:[#allocation158_spill] sm:$0xff] %v7686_v55  ;;  %v3214_v36 = vadd.f32 %v3213_v26, %v3075_v0  ;;  %v3076_v11 = vmul.f32 %v9054_v32, %v2948_v4  ;;  %v2951_v18 = vadd.f32 %v2794_v16, %v9055_v49  ;;  %v2603_v62 = vpop.f32.mrf.mxu0  ;;  %vm929_vm13 = vcmp.eq.s32.totalorder %v7660_v52, %v6434_v17  ;;  %v2796_v10 = vpop.f32.mrf.mxu1  ;;  %v9060_v26 = vld [vmem:[#allocation181_spill] sm:$0xff]  ;;  %v9063_v49 = vld [vmem:[#allocation146_spill] sm:$0xff] }
 0x269   : > { %v7700_v8 = vadd.f32 %v7442_v38, %v9056_v63  ;;  %v3201_v51 = vadd.f32 %v3200_v3, %v3074_v9  ;;  %v3077_v54 = vmul.f32 %v9058_v1, %v2949_v35  ;;  %v2950_v50 = vadd.f32 %v2603_v62, %v9059_v19  ;;  %v9061_v32 = vld [vmem:[#allocation21_spill] sm:$0xff]  ;;  %v9064_v38 = vld [vmem:[#allocation43_spill] sm:$0xff]  ;;  %v9069_v1 = vld [vmem:[#allocation44_spill] sm:$0xff] }
 0x26a   : > { %v3227_v37 = vadd.f32 %v3226_v25, %v3076_v11  ;;  %v3079_v0 = vmul.f32 %v9060_v26, %v2951_v18  ;;  %v2952_v4 = vadd.f32 %v2796_v10, %v9061_v32  ;;  %v2607_v5 = vpop.f32.mrf.mxu0  ;;  %v7707_v42 = vsel %vm927_vm8, 1.0, %v8694_v14  ;;  %v2800_v3 = vpop.f32.mrf.mxu1  ;;  %v9066_v35 = vld [vmem:[#allocation139_spill] sm:$0xff]  ;;  %v9068_v18 = vld [vmem:[#allocation182_spill] sm:$0xff] }
 0x26b   : > { %9057 = vst [vmem:[#allocation134_spill] sm:$0xff] %v7700_v8  ;;  %9062 = vst [vmem:[#allocation159_spill] sm:$0xff] %v7707_v42  ;;  %v3189_v16 = vadd.f32 %v3188_v39, %v3077_v54  ;;  %v3078_v55 = vmul.f32 %v9063_v49, %v2950_v50  ;;  %v2953_v63 = vadd.f32 %v2607_v5, %v9064_v38  ;;  %v7712_v9 = vsel %vm929_vm13, 1.0, %v8694_v14  ;;  %v9070_v39 = vld [vmem:[#allocation148_spill] sm:$0xff]  ;;  %v9071_v50 = vld [vmem:[#allocation147_spill] sm:$0xff] }
 0x26c   : > { %9065 = vst [vmem:[#allocation22_spill] sm:$0xff] %v7712_v9  ;;  %v7716_v11 = vadd.f32 %v7457_v61, %v9066_v35  ;;  %v3215_v25 = vadd.f32 %v3214_v36, %v3079_v0  ;;  %v3080_v62 = vmul.f32 %v9068_v18, %v2952_v4  ;;  %v2955_v19 = vadd.f32 %v2800_v3, %v9069_v1  ;;  %v2609_v10 = vpop.f32.mrf.mxu0  ;;  %v2802_v5 = vpop.f32.mrf.mxu1  ;;  %v9072_v38 = vld [vmem:[#allocation18_spill] sm:$0xff]  ;;  %v9073_v61 = vld [vmem:[#allocation47_spill] sm:$0xff]  ;;  %v9074_v4 = vld [vmem:[#allocation149_spill] sm:$0xff] }
 0x26d   : > { %v3202_v26 = vadd.f32 %v3201_v51, %v3078_v55  ;;  %v3081_v54 = vmul.f32 %v9070_v39, %v2953_v63  ;;  %v2954_v32 = vadd.f32 %v2609_v10, %v9071_v50  ;;  %vm928_vm0 = vcmp.eq.s32.totalorder %v7660_v52, %v6440_v53  ;;  %v9075_v51 = vld [vmem:[#allocation15_spill] sm:$0xff]  ;;  %v9077_v10 = vld [vmem:[#allocation140_spill] sm:$0xff] }
 0x26e   : > { %9067 = vst [vmem:[#allocation160_spill] sm:$0xff] %v7716_v11  ;;  %v3228_v49 = vadd.f32 %v3227_v37, %v3080_v62  ;;  %v3083_v8 = vmul.f32 %v9072_v38, %v2955_v19  ;;  %v2956_v35 = vadd.f32 %v2802_v5, %v9073_v61  ;;  %v2611_v36 = vpop.f32.mrf.mxu0  ;;  %vm930_vm1 = vcmp.eq.s32.totalorder %v7660_v52, %v6446_v44  ;;  %v2804_v3 = vpop.f32.mrf.mxu1  ;;  %v9076_v18 = vld [vmem:[#allocation27_spill] sm:$0xff]  ;;  %v9079_v19 = vld [vmem:[#allocation42_spill] sm:$0xff] }
 0x26f   : > { %v3190_v0 = vadd.f32 %v3189_v16, %v3081_v54  ;;  %v3082_v55 = vmul.f32 %v9074_v4, %v2954_v32  ;;  %v2957_v63 = vadd.f32 %v2611_v36, %v9075_v51  ;;  %v7731_v1 = vand.u32 63, %v9076_v18  ;;  %v9080_v50 = vld [vmem:[#allocation39_spill] sm:$0xff]  ;;  %v9082_v32 = vld [vmem:[#allocation150_spill] sm:$0xff] }
 0x270   : > { %v7735_v37 = vadd.f32 %v7463_v58, %v9077_v10  ;;  %v3216_v62 = vadd.f32 %v3215_v25, %v3083_v8  ;;  %v3084_v39 = vmul.f32 %v9079_v19, %v2956_v35  ;;  %v2959_v5 = vadd.f32 %v2804_v3, %v9080_v50  ;;  %v2613_v38 = vpop.f32.mrf.mxu0  ;;  %v9081_v16 = vld [vmem:[#allocation151_spill] sm:$0xff]  ;;  %v2806_v36 = vpop.f32.mrf.mxu1  ;;  %v9085_v25 = vld [vmem:[#allocation48_spill] sm:$0xff]  ;;  %v9089_v19 = vld [vmem:[#allocation49_spill] sm:$0xff] }
 0x271   : > { %v3203_v61 = vadd.f32 %v3202_v26, %v3082_v55  ;;  %v3085_v54 = vmul.f32 %v9081_v16, %v2957_v63  ;;  %v2958_v4 = vadd.f32 %v2613_v38, %v9082_v32  ;;  %v7745_v51 = vsel %vm928_vm0, 1.0, %v8694_v14  ;;  %v9084_v18 = vld [vmem:[#allocation19_spill] sm:$0xff]  ;;  %v9087_v55 = vld [vmem:[#allocation141_spill] sm:$0xff]  ;;  %v9090_v38 = vld [vmem:[#allocation152_spill] sm:$0xff] }
 0x272   : > { %9078 = vst [vmem:[#allocation135_spill] sm:$0xff] %v7735_v37  ;;  %9083 = vst [vmem:[#allocation162_spill] sm:$0xff] %v7745_v51  ;;  %v3229_v58 = vadd.f32 %v3228_v49, %v3084_v39  ;;  %v3087_v8 = vmul.f32 %v9084_v18, %v2959_v5  ;;  %v2960_v35 = vadd.f32 %v2806_v36, %v9085_v25  ;;  %v2617_v10 = vpop.f32.mrf.mxu0  ;;  %v7753_v26 = vsel %vm930_vm1, 1.0, %v8694_v14  ;;  %v2810_v39 = vpop.f32.mrf.mxu1  ;;  %v9091_v5 = vld [vmem:[#allocation142_spill] sm:$0xff]  ;;  %v9093_v36 = vld [vmem:[#allocation153_spill] sm:$0xff] }
 0x273   : > { %9086 = vst [vmem:[#allocation161_spill] sm:$0xff] %v7753_v26  ;;  %v7757_v63 = vadd.f32 %v7481_v12, %v9087_v55  ;;  %v3191_v3 = vadd.f32 %v3190_v0, %v3085_v54  ;;  %v3086_v50 = vmul.f32 %v9089_v19, %v2958_v4  ;;  %v2961_v49 = vadd.f32 %v2617_v10, %v9090_v38  ;;  %v9094_v52 = vld [vmem:[#allocation50_spill] sm:$0xff]  ;;  %v9095_v12 = vld [vmem:[#allocation16_spill] sm:$0xff]  ;;  %v9097_v38 = vld [vmem:[#allocation51_spill] sm:$0xff] }
 0x274   : > { %v7763_v16 = vadd.f32 %v7497_v30, %v9091_v5  ;;  %v3217_v32 = vadd.f32 %v3216_v62, %v3087_v8  ;;  %v3088_v18 = vmul.f32 %v9093_v36, %v2960_v35  ;;  %v2963_v25 = vadd.f32 %v2810_v39, %v9094_v52  ;;  %v2619_v37 = vpop.f32.mrf.mxu0  ;;  %v9096_v0 = vld [vmem:[#allocation6_spill] sm:$0xff]  ;;  %v2812_v4 = vpop.f32.mrf.mxu1  ;;  %v9098_v51 = vld [vmem:[#allocation7_spill] sm:$0xff]  ;;  %v9100_v39 = vld [vmem:[#allocation52_spill] sm:$0xff] }
 0x275   : > { %9088 = vst [vmem:[#allocation164_spill] sm:$0xff] %v7757_v63  ;;  %v3192_v11 = vrot.slane %v3191_v3, 4  ;;  %v3204_v26 = vadd.f32 %v3203_v61, %v3086_v50  ;;  %v3089_v55 = vmul.f32 %v9095_v12, %v2961_v49  ;;  %v2962_v54 = vadd.f32 %v2619_v37, %v9096_v0  ;;  %v9099_v35 = vld [vmem:[#allocation154_spill] sm:$0xff]  ;;  %v9101_v49 = vld [vmem:[#allocation53_spill] sm:$0xff]  ;;  %v9102_v37 = vld [vmem:[#allocation155_spill] sm:$0xff] }
 0x276   : > { %9092 = vst [vmem:[#allocation163_spill] sm:$0xff] %v7763_v16  ;;  %v3218_v19 = vrot.slane %v3217_v32, 4  ;;  %v3230_v10 = vadd.f32 %v3229_v58, %v3088_v18  ;;  %v3091_v63 = vmul.f32 %v9097_v38, %v2963_v25  ;;  %v2964_v30 = vadd.f32 %v2812_v4, %v9098_v51  ;;  %v2621_v5 = vpop.f32.mrf.mxu0  ;;  %v2814_v16 = vpop.f32.mrf.mxu1  ;;  %v9103_v25 = vld [vmem:[#allocation55_spill] sm:$0xff]  ;;  %v9104_v51 = vld [vmem:[#allocation54_spill] sm:$0xff] }
 0x277   : > { %v3193_v62 = vadd.f32 %v3192_v11, %v3191_v3  ;;  %v3205_v8 = vrot.slane %v3204_v26, 4  ;;  %v3090_v36 = vmul.f32 %v9099_v35, %v2962_v54  ;;  %v2965_v52 = vadd.f32 %v2621_v5, %v9100_v39  ;;  %v9105_v54 = vld [vmem:[#allocation5_spill] sm:$0xff]  ;;  %v9106_v5 = vld [vmem:[#allocation156_spill] sm:$0xff] }
 0x278   : > { %v3219_v61 = vadd.f32 %v3218_v19, %v3217_v32  ;;  %v3231_v50 = vrot.slane %v3230_v10, 4  ;;  %v3092_v12 = vmul.f32 %v9101_v49, %v2964_v30  ;;  %v2967_v0 = vadd.f32 %v2814_v16, %v9102_v37  ;;  %v2623_v9 = vpop.f32.mrf.mxu0  ;;  %v2816_v11 = vpop.f32.mrf.mxu1 }
 0x279   : > { %v3194_v58 = vrot.slane %v3193_v62, 2  ;;  %v3206_v18 = vadd.f32 %v3205_v8, %v3204_v26  ;;  %v3093_v38 = vmul.f32 %v9103_v25, %v2965_v52  ;;  %v2966_v4 = vadd.f32 %v2623_v9, %v9104_v51  ;;  %v9107_v52 = vld [vmem:[#allocation57_spill] sm:$0xff] }
 0x27a   : > { %v3220_v3 = vrot.slane %v3219_v61, 2  ;;  %v3232_v42 = vadd.f32 %v3231_v50, %v3230_v10  ;;  %v3095_v35 = vmul.f32 %v9105_v54, %v2967_v0  ;;  %v2968_v39 = vadd.f32 %v2816_v11, %v9106_v5  ;;  %v2627_v32 = vpop.f32.mrf.mxu0  ;;  %v2820_v49 = vpop.f32.mrf.mxu1  ;;  %v9108_v50 = vld [vmem:[#allocation56_spill] sm:$0xff] }
 0x27b   : > { %v3195_v19 = vadd.f32 %v3194_v58, %v3193_v62  ;;  %v3207_v21 = vrot.slane %v3206_v18, 2  ;;  %v3237_v30 = vadd.f32 %v3093_v38, %v3089_v55  ;;  %v3094_v16 = vmul.f32 %v6887_v20, %v2966_v4  ;;  %v9109_v58 = vld [vmem:[#allocation17_spill] sm:$0xff]  ;;  %v9110_v4 = vld [vmem:[#allocation12_spill] sm:$0xff] }
 0x27c   : > { %v3221_v37 = vadd.f32 %v3220_v3, %v3219_v61  ;;  %v3233_v26 = vrot.slane %v3232_v42, 2  ;;  %v3263_v8 = vadd.f32 %v3095_v35, %v3091_v63  ;;  %v3096_v25 = vmul.f32 %v9107_v52, %v2968_v39  ;;  %v2629_v9 = vpop.f32.mrf.mxu0  ;;  %v2822_v54 = vpop.f32.mrf.mxu1  ;;  %v9111_v3 = vld [vmem:[#allocation58_spill] sm:$0xff] }
 0x27d   : > { %v3196_v51 = vrot.slane %v3195_v19, 1  ;;  %v3208_v59 = vadd.f32 %v3207_v21, %v3206_v18  ;;  %v3250_v10 = vadd.f32 %v3094_v16, %v3090_v36  ;;  %v2969_v0 = vadd.f32 %v2627_v32, %v9108_v50  ;;  %v9112_v18 = vld [vmem:[#allocation59_spill] sm:$0xff]  ;;  %v9113_v16 = vld [vmem:[#allocation13_spill] sm:$0xff] }
 0x27e   : > { %v3222_v11 = vrot.slane %v3221_v37, 1  ;;  %v3234_v5 = vadd.f32 %v3233_v26, %v3232_v42  ;;  %v3276_v62 = vadd.f32 %v3096_v25, %v3092_v12  ;;  %v2971_v55 = vadd.f32 %v2820_v49, %v9109_v58  ;;  %v2631_v38 = vpop.f32.mrf.mxu0  ;;  %v2824_v39 = vpop.f32.mrf.mxu1  ;;  %v9114_v26 = vld [vmem:[#allocation10_spill] sm:$0xff] }
 0x27f   : > { %v7783_v20 = vadd.f32 %v3196_v51, %v3195_v19  ;;  %v3209_v61 = vrot.slane %v3208_v59, 1  ;;  %v3097_v63 = vmul.f32 %v9110_v4, %v2969_v0  ;;  %v2970_v35 = vadd.f32 %v2629_v9, %v9111_v3  ;;  %v9115_v51 = vld [vmem:[#allocation62_spill] sm:$0xff]  ;;  %v9116_v0 = vld [vmem:[#allocation60_spill] sm:$0xff]  ;;  %v9119_v3 = vld [vmem:[#allocation63_spill] sm:$0xff] }
 0x280   : > { %v7787_v52 = vadd.f32 %v3222_v11, %v3221_v37  ;;  %v3235_v21 = vrot.slane %v3234_v5, 1  ;;  %v3099_v36 = vmul.f32 %v6910_v31, %v2971_v55  ;;  %v2972_v32 = vadd.f32 %v2822_v54, %v9112_v18  ;;  %v2633_v42 = vpop.f32.mrf.mxu0  ;;  %v2826_v9 = vpop.f32.mrf.mxu1  ;;  %v9117_v55 = vld [vmem:[#allocation61_spill] sm:$0xff] }
 0x281   : > { %vm931_vm3 = vcmp.eq.s32.totalorder %v7731_v1, %v6425_v57  ;;  %v7793_v12 = vadd.f32 %v3209_v61, %v3208_v59  ;;  %v3238_v19 = vadd.f32 %v3237_v30, %v3097_v63  ;;  %v3098_v49 = vmul.f32 %v9113_v16, %v2970_v35  ;;  %v9118_v63 = vld [vmem:[#allocation66_spill] sm:$0xff] }
 0x282   : > { %v2973_v25 = vadd.f32 %v2631_v38, %v9114_v26  ;;  %vm933_vm5 = vcmp.eq.s32.totalorder %v7731_v1, %v6434_v17  ;;  %v7799_v37 = vadd.f32 %v3235_v21, %v3234_v5  ;;  %v3264_v31 = vadd.f32 %v3263_v8, %v3099_v36  ;;  %v2637_v11 = vpop.f32.mrf.mxu0  ;;  %v2830_v61 = vpop.f32.mrf.mxu1  ;;  %v9120_v36 = vld [vmem:[#allocation67_spill] sm:$0xff] }
 0x283   : > { %v3100_v50 = vmul.f32 %v9115_v51, %v2972_v32  ;;  %v2975_v54 = vadd.f32 %v2824_v39, %v9116_v0  ;;  %v3251_v30 = vadd.f32 %v3250_v10, %v3098_v49  ;;  %v2974_v38 = vadd.f32 %v2633_v42, %v9117_v55  ;;  %v9121_v32 = vld [vmem:[#allocation64_spill] sm:$0xff]  ;;  %v9122_v10 = vld [vmem:[#allocation65_spill] sm:$0xff]  ;;  %v9124_v51 = vld [vmem:[#allocation14_spill] sm:$0xff] }
 0x284   : > { %v3101_v58 = vmul.f32 %v6950_v2, %v2973_v25  ;;  %v2976_v35 = vadd.f32 %v2826_v9, %v9119_v3  ;;  %v2639_v21 = vpop.f32.mrf.mxu0  ;;  %v2977_v16 = vadd.f32 %v2637_v11, %v9121_v32  ;;  %v2979_v49 = vadd.f32 %v2830_v61, %v9122_v10  ;;  %v2832_v2 = vpop.f32.mrf.mxu1  ;;  %v9123_v42 = vld [vmem:[#allocation68_spill] sm:$0xff]  ;;  %v9125_v55 = vld [vmem:[#allocation70_spill] sm:$0xff] }
 0x285   : > { %v3277_v5 = vadd.f32 %v3276_v62, %v3100_v50  ;;  %v3103_v8 = vmul.f32 %v9118_v63, %v2975_v54  ;;  %v3102_v18 = vmul.f32 %v9120_v36, %v2974_v38  ;;  %v2978_v0 = vadd.f32 %v2639_v21, %v9124_v51  ;;  %v9126_v63 = vld [vmem:[#allocation8_spill] sm:$0xff]  ;;  %v9128_v36 = vld [vmem:[#allocation183_spill] sm:$0xff] }
 0x286   : > { %v3239_v39 = vadd.f32 %v3238_v19, %v3101_v58  ;;  %v3104_v25 = vmul.f32 %v9123_v42, %v2976_v35  ;;  %v2980_v62 = vadd.f32 %v2832_v2, %v6979_v47  ;;  %v2641_v50 = vpop.f32.mrf.mxu0  ;;  %v3105_v9 = vmul.f32 %v9125_v55, %v2977_v16  ;;  %v9127_v58 = vld [vmem:[#allocation69_spill] sm:$0xff]  ;;  %v2834_v3 = vpop.f32.mrf.mxu1  ;;  %v9130_v47 = vld [vmem:[#allocation74_spill] sm:$0xff]  ;;  %v9132_v51 = vld [vmem:[#allocation184_spill] sm:$0xff] }
 0x287   : > { %v3265_v26 = vadd.f32 %v3264_v31, %v3103_v8  ;;  %v3252_v54 = vadd.f32 %v3251_v30, %v3102_v18  ;;  %v3107_v19 = vmul.f32 %v9126_v63, %v2979_v49  ;;  %v2981_v38 = vadd.f32 %v2641_v50, %v9127_v58  ;;  %v9129_v8 = vld [vmem:[#allocation71_spill] sm:$0xff]  ;;  %v9131_v30 = vld [vmem:[#allocation72_spill] sm:$0xff]  ;;  %v9133_v55 = vld [vmem:[#allocation73_spill] sm:$0xff] }
 0x288   : > { %v3278_v11 = vadd.f32 %v3277_v5, %v3104_v25  ;;  %v3106_v61 = vmul.f32 %v9128_v36, %v2978_v0  ;;  %v3108_v31 = vmul.f32 %v7020_v22, %v2980_v62  ;;  %v2983_v35 = vadd.f32 %v2834_v3, %v9129_v8  ;;  %v2643_v32 = vpop.f32.mrf.mxu0  ;;  %v2836_v16 = vpop.f32.mrf.mxu1  ;;  %v9134_v63 = vld [vmem:[#allocation185_spill] sm:$0xff] }
 0x289   : > { %v3240_v21 = vadd.f32 %v3239_v39, %v3105_v9  ;;  %v3266_v10 = vadd.f32 %v3265_v26, %v3107_v19  ;;  %v3109_v2 = vmul.f32 %v9130_v47, %v2981_v38  ;;  %v2982_v18 = vadd.f32 %v2643_v32, %v9131_v30  ;;  %v9135_v62 = vld [vmem:[#allocation9_spill] sm:$0xff]  ;;  %v9137_v19 = vld [vmem:[#allocation75_spill] sm:$0xff]  ;;  %v9142_v30 = vld [vmem:[#allocation80_spill] sm:$0xff] }
 0x28a   : > { %v3253_v42 = vadd.f32 %v3252_v54, %v3106_v61  ;;  %v3279_v49 = vadd.f32 %v3278_v11, %v3108_v31  ;;  %v3111_v50 = vmul.f32 %v9132_v51, %v2983_v35  ;;  %v2984_v5 = vadd.f32 %v2836_v16, %v9133_v55  ;;  %v2647_v25 = vpop.f32.mrf.mxu0  ;;  %v2840_v3 = vpop.f32.mrf.mxu1  ;;  %v9136_v54 = vld [vmem:[#allocation186_spill] sm:$0xff]  ;;  %v9138_v61 = vld [vmem:[#allocation143_spill] sm:$0xff]  ;;  %v9143_v16 = vld [vmem:[#allocation77_spill] sm:$0xff] }
 0x28b   : > { %v3241_v0 = vadd.f32 %v3240_v21, %v3109_v2  ;;  %v3110_v22 = vmul.f32 %v9134_v63, %v2982_v18  ;;  %v2985_v58 = vadd.f32 %v2647_v25, %v9135_v62  ;;  %v7833_v39 = vsel %vm931_vm3, 1.0, %v8694_v14  ;;  %v9140_v35 = vld [vmem:[#allocation187_spill] sm:$0xff]  ;;  %v9141_v21 = vld [vmem:[#allocation76_spill] sm:$0xff]  ;;  %v9146_v62 = vld [vmem:[#allocation189_spill] sm:$0xff] }
 0x28c   : > { %v3267_v26 = vadd.f32 %v3266_v10, %v3111_v50  ;;  %v3112_v9 = vmul.f32 %v9136_v54, %v2984_v5  ;;  %v2987_v38 = vadd.f32 %v2840_v3, %v9137_v19  ;;  %v2649_v11 = vpop.f32.mrf.mxu0  ;;  %v7841_v36 = vsel %vm933_vm5, 1.0, %v8694_v14  ;;  %v2842_v47 = vpop.f32.mrf.mxu1  ;;  %v9144_v5 = vld [vmem:[#allocation188_spill] sm:$0xff] }
 0x28d   : > { %v7845_v31 = vadd.f32 %v7501_v27, %v9138_v61  ;;  %v3254_v8 = vadd.f32 %v3253_v42, %v3110_v22  ;;  %v3113_v32 = vmul.f32 %v9140_v35, %v2985_v58  ;;  %v2986_v10 = vadd.f32 %v2649_v11, %v9141_v21  ;;  %v9145_v27 = vld [vmem:[#allocation78_spill] sm:$0xff]  ;;  %v9147_v58 = vld [vmem:[#allocation45_spill] sm:$0xff]  ;;  %v9151_v35 = vld [vmem:[#allocation79_spill] sm:$0xff] }
 0x28e   : > { %v3280_v2 = vadd.f32 %v3279_v49, %v3112_v9  ;;  %v3115_v18 = vmul.f32 %v9142_v30, %v2987_v38  ;;  %v2988_v51 = vadd.f32 %v2842_v47, %v9143_v16  ;;  %v2651_v50 = vpop.f32.mrf.mxu0  ;;  %vm932_vm4 = vcmp.eq.s32.totalorder %v7731_v1, %v6440_v53  ;;  %v2844_v42 = vpop.f32.mrf.mxu1  ;;  %v9148_v9 = vld [vmem:[#allocation28_spill] sm:$0xff]  ;;  %v9153_v30 = vld [vmem:[#allocation81_spill] sm:$0xff] }
 0x28f   : > { %9139 = vst [vmem:[#allocation165_spill] sm:$0xff] %v7845_v31  ;;  %v3242_v55 = vadd.f32 %v3241_v0, %v3113_v32  ;;  %v3114_v25 = vmul.f32 %v9144_v5, %v2986_v10  ;;  %v2989_v63 = vadd.f32 %v2651_v50, %v9145_v27  ;;  %vm934_vm9 = vcmp.eq.s32.totalorder %v7731_v1, %v6446_v44  ;;  %v9149_v38 = vld [vmem:[#allocation144_spill] sm:$0xff]  ;;  %v9154_v50 = vld [vmem:[#allocation190_spill] sm:$0xff]  ;;  %v9156_v27 = vld [vmem:[#allocation145_spill] sm:$0xff] }
 0x290   : > { %v3268_v22 = vadd.f32 %v3267_v26, %v3115_v18  ;;  %v3116_v49 = vmul.f32 %v9146_v62, %v2988_v51  ;;  %v2991_v3 = vadd.f32 %v2844_v42, %v9147_v58  ;;  %v2653_v54 = vpop.f32.mrf.mxu0  ;;  %v7860_v19 = vand.u32 63, %v9148_v9  ;;  %v2846_v21 = vpop.f32.mrf.mxu1  ;;  %v9152_v26 = vld [vmem:[#allocation83_spill] sm:$0xff]  ;;  %v9155_v5 = vld [vmem:[#allocation82_spill] sm:$0xff] }
 0x291   : > { %v7864_v0 = vadd.f32 %v7515_v40, %v9149_v38  ;;  %v3255_v11 = vadd.f32 %v3254_v8, %v3114_v25  ;;  %v3117_v61 = vmul.f32 %v7108_v13, %v2989_v63  ;;  %v2990_v32 = vadd.f32 %v2653_v54, %v9151_v35  ;;  %v9158_v62 = vld [vmem:[#allocation191_spill] sm:$0xff]  ;;  %v9159_v58 = vld [vmem:[#allocation46_spill] sm:$0xff] }
 0x292   : > { %v3281_v10 = vadd.f32 %v3280_v2, %v3116_v49  ;;  %v3119_v47 = vmul.f32 %v9152_v26, %v2991_v3  ;;  %v2992_v18 = vadd.f32 %v2846_v21, %v9153_v30  ;;  %v2657_v16 = vpop.f32.mrf.mxu0  ;;  %v7874_v51 = vsel %vm932_vm4, 1.0, %v8694_v14  ;;  %v2850_v25 = vpop.f32.mrf.mxu1  ;;  %v9161_v26 = vld [vmem:[#allocation40_spill] sm:$0xff] }
 0x293   : > { %9150 = vst [vmem:[#allocation23_spill] sm:$0xff] %v7864_v0  ;;  %v3243_v40 = vadd.f32 %v3242_v55, %v3117_v61  ;;  %v3118_v8 = vmul.f32 %v9154_v50, %v2990_v32  ;;  %v2993_v13 = vadd.f32 %v2657_v16, %v9155_v5  ;;  %v7882_v2 = vsel %vm934_vm9, 1.0, %v8694_v14  ;;  %v9160_v61 = vld [vmem:[#allocation84_spill] sm:$0xff]  ;;  %v9162_v16 = vld [vmem:[#allocation85_spill] sm:$0xff] }
 0x294   : > { %v7886_v63 = vadd.f32 %v7528_v60, %v9156_v27  ;;  %v3269_v42 = vadd.f32 %v3268_v22, %v3119_v47  ;;  %v3120_v49 = vmul.f32 %v9158_v62, %v2992_v18  ;;  %v2995_v55 = vadd.f32 %v2850_v25, %v9159_v58  ;;  %v2659_v3 = vpop.f32.mrf.mxu0  ;;  %v2852_v32 = vpop.f32.mrf.mxu1  ;;  %v9163_v18 = vld [vmem:[#allocation192_spill] sm:$0xff]  ;;  %v9164_v25 = vld [vmem:[#allocation86_spill] sm:$0xff] }
 0x295   : > { %v3244_v54 = vrot.slane %v3243_v40, 4  ;;  %v3256_v9 = vadd.f32 %v3255_v11, %v3118_v8  ;;  %v3121_v38 = vmul.f32 %v7150_v33, %v2993_v13  ;;  %v2994_v35 = vadd.f32 %v2659_v3, %v9160_v61  ;;  %v9165_v13 = vld [vmem:[#allocation87_spill] sm:$0xff] }
 0x296   : > { %9157 = vst [vmem:[#allocation166_spill] sm:$0xff] %v7886_v63  ;;  %v3270_v1 = vrot.slane %v3269_v42, 4  ;;  %v3282_v21 = vadd.f32 %v3281_v10, %v3120_v49  ;;  %v3123_v30 = vmul.f32 %v9161_v26, %v2995_v55  ;;  %v2996_v60 = vadd.f32 %v2852_v32, %v9162_v16  ;;  %v2661_v50 = vpop.f32.mrf.mxu0  ;;  %v2854_v62 = vpop.f32.mrf.mxu1  ;;  %v9166_v55 = vld [vmem:[#allocation90_spill] sm:$0xff]  ;;  %v9167_v32 = vld [vmem:[#allocation88_spill] sm:$0xff] }
 0x297   : > { %v3245_v22 = vadd.f32 %v3244_v54, %v3243_v40  ;;  %v3257_v47 = vrot.slane %v3256_v9, 4  ;;  %v3122_v5 = vmul.f32 %v9163_v18, %v2994_v35  ;;  %v2997_v27 = vadd.f32 %v2661_v50, %v9164_v25  ;;  %v9168_v35 = vld [vmem:[#allocation193_spill] sm:$0xff] }
 0x298   : > { %v3271_v11 = vadd.f32 %v3270_v1, %v3269_v42  ;;  %v3283_v8 = vrot.slane %v3282_v21, 4  ;;  %v3124_v33 = vmul.f32 %v7178_v29, %v2996_v60  ;;  %v2999_v58 = vadd.f32 %v2854_v62, %v9165_v13  ;;  %v2663_v3 = vpop.f32.mrf.mxu0  ;;  %v2856_v40 = vpop.f32.mrf.mxu1  ;;  %v9169_v50 = vld [vmem:[#allocation89_spill] sm:$0xff]  ;;  %v9170_v60 = vld [vmem:[#allocation194_spill] sm:$0xff] }
 0x299   : > { %v3246_v10 = vrot.slane %v3245_v22, 2  ;;  %v3258_v49 = vadd.f32 %v3257_v47, %v3256_v9  ;;  %v3125_v61 = vmul.f32 %v9166_v55, %v2997_v27  ;;  %v2998_v26 = vadd.f32 %v2663_v3, %v9167_v32  ;;  %v9171_v27 = vld [vmem:[#allocation195_spill] sm:$0xff] }
 0x29a   : > { %v3272_v54 = vrot.slane %v3271_v11, 2  ;;  %v3284_v16 = vadd.f32 %v3283_v8, %v3282_v21  ;;  %v3127_v18 = vmul.f32 %v9168_v35, %v2999_v58  ;;  %v3000_v25 = vadd.f32 %v2856_v40, %v9169_v50  ;;  %v2667_v42 = vpop.f32.mrf.mxu0  ;;  %v2860_v13 = vpop.f32.mrf.mxu1  ;;  %v9172_v58 = vld [vmem:[#allocation41_spill] sm:$0xff] }
 0x29b   : > { %v3247_v1 = vadd.f32 %v3246_v10, %v3245_v22  ;;  %v3259_v4 = vrot.slane %v3258_v49, 2  ;;  %v3289_v29 = vadd.f32 %v3125_v61, %v3121_v38  ;;  %v3126_v62 = vmul.f32 %v9170_v60, %v2998_v26  ;;  %v9173_v38 = vld [vmem:[#allocation91_spill] sm:$0xff] }
 0x29c   : > { %v3273_v59 = vadd.f32 %v3272_v54, %v3271_v11  ;;  %v3285_v9 = vrot.slane %v3284_v16, 2  ;;  %v3315_v47 = vadd.f32 %v3127_v18, %v3123_v30  ;;  %v3128_v3 = vmul.f32 %v9171_v27, %v3000_v25  ;;  %v2669_v55 = vpop.f32.mrf.mxu0  ;;  %v2862_v40 = vpop.f32.mrf.mxu1  ;;  %v9174_v54 = vld [vmem:[#allocation196_spill] sm:$0xff] }
 0x29d   : > { %v3248_v32 = vrot.slane %v3247_v1, 1  ;;  %v3260_v21 = vadd.f32 %v3259_v4, %v3258_v49  ;;  %v3302_v8 = vadd.f32 %v3126_v62, %v3122_v5  ;;  %v3001_v35 = vadd.f32 %v2667_v42, %v9172_v58  ;;  %v9175_v30 = vld [vmem:[#allocation92_spill] sm:$0xff]  ;;  %v9177_v49 = vld [vmem:[#allocation93_spill] sm:$0xff] }
 0x29e   : > { %v3274_v50 = vrot.slane %v3273_v59, 1  ;;  %v3286_v22 = vadd.f32 %v3285_v9, %v3284_v16  ;;  %v3328_v10 = vadd.f32 %v3128_v3, %v3124_v33  ;;  %v3003_v61 = vadd.f32 %v2860_v13, %v9173_v38  ;;  %v2671_v26 = vpop.f32.mrf.mxu0  ;;  %v2864_v25 = vpop.f32.mrf.mxu1  ;;  %v9176_v4 = vld [vmem:[#allocation96_spill] sm:$0xff]  ;;  %v9178_v33 = vld [vmem:[#allocation197_spill] sm:$0xff]  ;;  %v9179_v13 = vld [vmem:[#allocation94_spill] sm:$0xff] }
 0x29f   : > { %v3249_v60 = vadd.f32 %v3248_v32, %v3247_v1  ;;  %v3261_v11 = vrot.slane %v3260_v21, 1  ;;  %v3129_v63 = vmul.f32 %v9174_v54, %v3001_v35  ;;  %v3002_v18 = vadd.f32 %v2669_v55, %v9175_v30  ;;  %v9180_v35 = vld [vmem:[#allocation198_spill] sm:$0xff]  ;;  %v9181_v55 = vld [vmem:[#allocation37_spill] sm:$0xff] }
 0x2a0   : > { %v3275_v27 = vadd.f32 %v3274_v50, %v3273_v59  ;;  %v3287_v0 = vrot.slane %v3286_v22, 1  ;;  %v3131_v5 = vmul.f32 %v9176_v4, %v3003_v61  ;;  %v3004_v42 = vadd.f32 %v2862_v40, %v9177_v49  ;;  %v2673_v62 = vpop.f32.mrf.mxu0  ;;  %v2866_v1 = vpop.f32.mrf.mxu1  ;;  %v9182_v40 = vld [vmem:[#allocation95_spill] sm:$0xff] }
 0x2a1   : > { %v3262_v58 = vadd.f32 %v3261_v11, %v3260_v21  ;;  %v3290_v16 = vadd.f32 %v3289_v29, %v3129_v63  ;;  %v3130_v9 = vmul.f32 %v9178_v33, %v3002_v18  ;;  %v3005_v3 = vadd.f32 %v2671_v26, %v9179_v13  ;;  %v9183_v11 = vld [vmem:[#allocation99_spill] sm:$0xff]  ;;  %v9184_v26 = vld [vmem:[#allocation97_spill] sm:$0xff]  ;;  %v9187_v33 = vld [vmem:[#allocation200_spill] sm:$0xff] }
 0x2a2   : > { %v3288_v32 = vadd.f32 %v3287_v0, %v3286_v22  ;;  %v3316_v38 = vadd.f32 %v3315_v47, %v3131_v5  ;;  %v3132_v54 = vmul.f32 %v9180_v35, %v3004_v42  ;;  %v3007_v30 = vadd.f32 %v2864_v25, %v9181_v55  ;;  %v2677_v59 = vpop.f32.mrf.mxu0  ;;  %v2870_v21 = vpop.f32.mrf.mxu1  ;;  %v9185_v5 = vld [vmem:[#allocation199_spill] sm:$0xff]  ;;  %v9186_v42 = vld [vmem:[#allocation98_spill] sm:$0xff] }
 0x2a3   : > { %v3411_v50 = vcombine.low %v3249_v60, %v3262_v58  ;;  %v3303_v31 = vadd.f32 %v3302_v8, %v3130_v9  ;;  %v3133_v61 = vmul.f32 %v7266_v24, %v3005_v3  ;;  %v3006_v4 = vadd.f32 %v2673_v62, %v9182_v40  ;;  %v9188_v9 = vld [vmem:[#allocation38_spill] sm:$0xff] }
 0x2a4   : > { %v3412_v63 = vcombine.low %v3275_v27, %v3288_v32  ;;  %v3329_v29 = vadd.f32 %v3328_v10, %v3132_v54  ;;  %v3135_v18 = vmul.f32 %v9183_v11, %v3007_v30  ;;  %v3008_v49 = vadd.f32 %v2866_v1, %v9184_v26  ;;  %v2679_v0 = vpop.f32.mrf.mxu0  ;;  %v2872_v8 = vpop.f32.mrf.mxu1  ;;  %v9190_v32 = vld [vmem:[#allocation100_spill] sm:$0xff] }
 0x2a5   : > { %v3417_v47 = vrot.slane %v3411_v50, 7  ;;  %v3291_v22 = vadd.f32 %v3290_v16, %v3133_v61  ;;  %v3134_v25 = vmul.f32 %v9185_v5, %v3006_v4  ;;  %v3009_v60 = vadd.f32 %v2677_v59, %v9186_v42  ;;  %v9192_v59 = vld [vmem:[#allocation35_spill] sm:$0xff]  ;;  %v9195_v4 = vld [vmem:[#allocation102_spill] sm:$0xff] }
 0x2a6   : > { %v3432_v58 = vrot.slane %v3412_v63, 7  ;;  %v3317_v24 = vadd.f32 %v3316_v38, %v3135_v18  ;;  %v3136_v62 = vmul.f32 %v9187_v33, %v3008_v49  ;;  %v3011_v27 = vadd.f32 %v2870_v21, %v9188_v9  ;;  %v2681_v10 = vpop.f32.mrf.mxu0  ;;  %v2874_v54 = vpop.f32.mrf.mxu1  ;;  %v9196_v63 = vld [vmem:[#allocation103_spill] sm:$0xff]  ;;  %v9198_v49 = vld [vmem:[#allocation105_spill] sm:$0xff]  ;;  %v9199_v42 = vld [vmem:[#allocation106_spill] sm:$0xff] }
 0x2a7   : > { %v9189_v13 = vcombine.low %v7783_v20, %v7793_v12  ;;  %v3304_v1 = vadd.f32 %v3303_v31, %v3134_v25  ;;  %v3137_v16 = vmul.f32 %v7308_v23, %v3009_v60  ;;  %v3010_v35 = vadd.f32 %v2679_v0, %v9190_v32  ;;  %v9193_v20 = vld [vmem:[#allocation101_spill] sm:$0xff]  ;;  %v9201_v33 = vld [vmem:[#allocation36_spill] sm:$0xff]  ;;  %v9204_v32 = vld [vmem:[#allocation107_spill] sm:$0xff] }
 0x2a8   : > { %vm935_vm2 = vcmp.eq.s32.totalorder %v7860_v19, %v6425_v57  ;;  %v9191_v38 = vcombine.low %v7787_v52, %v7799_v37  ;;  %v3330_v30 = vadd.f32 %v3329_v29, %v3136_v62  ;;  %v3139_v50 = vmul.f32 %v9192_v59, %v3011_v27  ;;  %v2683_v61 = vpop.f32.mrf.mxu0  ;;  %v9194_v31 = vld [vmem:[#allocation201_spill] sm:$0xff]  ;;  %v2876_v18 = vpop.f32.mrf.mxu1  ;;  %v9197_v29 = vld [vmem:[#allocation104_spill] sm:$0xff] }
 0x2a9   : > { %v3419_v3 = vsel %vm3418_vm12, %v3417_v47, %v9189_v13  ;;  %v3012_v12 = vadd.f32 %v2872_v8, %v9193_v20  ;;  %vm937_vm14 = vcmp.eq.s32.totalorder %v7860_v19, %v6434_v17  ;;  %v3292_v23 = vadd.f32 %v3291_v22, %v3137_v16  ;;  %v9200_v8 = vld [vmem:[#allocation202_spill] sm:$0xff]  ;;  %v9203_v16 = vld [vmem:[#allocation204_spill] sm:$0xff] }
 0x2aa   : > { %v3433_v55 = vsel %vm3418_vm12, %v3432_v58, %v9191_v38  ;;  %v3138_v40 = vmul.f32 %v9194_v31, %v3010_v35  ;;  %v3013_v21 = vadd.f32 %v2681_v10, %v9195_v4  ;;  %v3015_v11 = vadd.f32 %v2874_v54, %v9196_v63  ;;  %v2687_v5 = vpop.f32.mrf.mxu0  ;;  %v2880_v9 = vpop.f32.mrf.mxu1  ;;  %v9202_v10 = vld [vmem:[#allocation203_spill] sm:$0xff]  ;;  %v9206_v31 = vld [vmem:[#allocation112_spill] sm:$0xff]  ;;  %v9207_v4 = vld [vmem:[#allocation109_spill] sm:$0xff] }
 0x2ab   : > { %v3318_v52 = vadd.f32 %v3317_v24, %v3139_v50  ;;  %v3140_v37 = vmul.f32 %v7336_v15, %v3012_v12  ;;  %v3014_v26 = vadd.f32 %v2683_v61, %v9197_v29  ;;  %v3016_v0 = vadd.f32 %v2876_v18, %v9198_v49 }
 0x2ac   : > { %v3305_v25 = vadd.f32 %v3304_v1, %v3138_v40  ;;  %v3141_v60 = vmul.f32 %v9199_v42, %v3013_v21  ;;  %v3143_v22 = vmul.f32 %v9200_v8, %v3015_v11  ;;  %v3017_v62 = vadd.f32 %v2687_v5, %v9201_v33  ;;  %v2689_v35 = vpop.f32.mrf.mxu0  ;;  %v9205_v1 = vld [vmem:[#allocation108_spill] sm:$0xff]  ;;  %v2882_v20 = vpop.f32.mrf.mxu1  ;;  %v9208_v11 = vld [vmem:[#allocation205_spill] sm:$0xff]  ;;  %v9212_v8 = vld [vmem:[#allocation207_spill] sm:$0xff] }
 0x2ad   : > { %v3331_v27 = vadd.f32 %v3330_v30, %v3140_v37  ;;  %v3142_v13 = vmul.f32 %v9202_v10, %v3014_v26  ;;  %v3144_v24 = vmul.f32 %v9203_v16, %v3016_v0  ;;  %v3019_v15 = vadd.f32 %v2880_v9, %v9204_v32  ;;  %v9209_v37 = vld [vmem:[#allocation110_spill] sm:$0xff]  ;;  %v9211_v0 = vld [vmem:[#allocation33_spill] sm:$0xff]  ;;  %v9213_v33 = vld [vmem:[#allocation111_spill] sm:$0xff] }
 0x2ae   : > { %v3293_v54 = vadd.f32 %v3292_v23, %v3141_v60  ;;  %v3319_v38 = vadd.f32 %v3318_v52, %v3143_v22  ;;  %v3145_v59 = vmul.f32 %v7385_v46, %v3017_v62  ;;  %v3018_v50 = vadd.f32 %v2689_v35, %v9205_v1  ;;  %v2691_v21 = vpop.f32.mrf.mxu0  ;;  %v2884_v26 = vpop.f32.mrf.mxu1  ;;  %v9210_v52 = vld [vmem:[#allocation206_spill] sm:$0xff]  ;;  %v9215_v10 = vld [vmem:[#allocation113_spill] sm:$0xff] }
 0x2af   : > { %v3306_v12 = vadd.f32 %v3305_v25, %v3142_v13  ;;  %v3332_v61 = vadd.f32 %v3331_v27, %v3144_v24  ;;  %v3147_v40 = vmul.f32 %v9206_v31, %v3019_v15  ;;  %v3020_v30 = vadd.f32 %v2882_v20, %v9207_v4  ;;  %v9216_v24 = vld [vmem:[#allocation208_spill] sm:$0xff]  ;;  %v9217_v15 = vld [vmem:[#allocation114_spill] sm:$0xff] }
 0x2b0   : > { %v3294_v63 = vadd.f32 %v3293_v54, %v3145_v59  ;;  %v3146_v18 = vmul.f32 %v9208_v11, %v3018_v50  ;;  %v3021_v29 = vadd.f32 %v2691_v21, %v9209_v37  ;;  %v7957_v23 = vsel %vm3420_vm15, %v3417_v47, %v3419_v3  ;;  %v2693_v25 = vpop.f32.mrf.mxu0  ;;  %v2886_v9 = vpop.f32.mrf.mxu1  ;;  %v9214_v3 = vld [vmem:[#allocation115_spill] sm:$0xff]  ;;  %v9218_v59 = vld [vmem:[#allocation209_spill] sm:$0xff]  ;;  %v9219_v50 = vld [vmem:[#allocation34_spill] sm:$0xff] }
 0x2b1   : > { %v3320_v46 = vadd.f32 %v3319_v38, %v3147_v40  ;;  %v3148_v49 = vmul.f32 %v9210_v52, %v3020_v30  ;;  %v3023_v5 = vadd.f32 %v2884_v26, %v9211_v0  ;;  %v7962_v42 = vsel %vm3420_vm15, %v3432_v58, %v3433_v55  ;;  %v9220_v40 = vld [vmem:[#allocation31_spill] sm:$0xff]  ;;  %v9221_v30 = vld [vmem:[#allocation116_spill] sm:$0xff] }
 0x2b2   : > { %v3307_v60 = vadd.f32 %v3306_v12, %v3146_v18  ;;  %v3149_v22 = vmul.f32 %v9212_v8, %v3021_v29  ;;  %v3022_v62 = vadd.f32 %v2693_v25, %v9213_v33  ;;  %vm936_vm6 = vcmp.eq.s32.totalorder %v7860_v19, %v6440_v53  ;;  %v2697_v16 = vpop.f32.mrf.mxu0  ;;  %v2890_v54 = vpop.f32.mrf.mxu1  ;;  %v9222_v18 = vld [vmem:[#allocation210_spill] sm:$0xff]  ;;  %v9223_v29 = vld [vmem:[#allocation117_spill] sm:$0xff]  ;;  %v9225_v33 = vld [vmem:[#allocation211_spill] sm:$0xff] }
 0x2b3   : > { %v3333_v47 = vadd.f32 %v3332_v61, %v3148_v49  ;;  %v3151_v27 = vmul.f32 %v9214_v3, %v3023_v5  ;;  %v3024_v13 = vadd.f32 %v2886_v9, %v9215_v10  ;;  %v7974_v58 = vsel %vm935_vm2, 1.0, %v8694_v14  ;;  %v9224_v5 = vld [vmem:[#allocation118_spill] sm:$0xff]  ;;  %v9226_v9 = vld [vmem:[#allocation119_spill] sm:$0xff] }
 0x2b4   : > { %v3295_v55 = vadd.f32 %v3294_v63, %v3149_v22  ;;  %v3150_v32 = vmul.f32 %v9216_v24, %v3022_v62  ;;  %v3025_v35 = vadd.f32 %v2697_v16, %v9217_v15  ;;  %v7982_v53 = vsel %vm937_vm14, 1.0, %v8694_v14  ;;  %v2699_v57 = vpop.f32.mrf.mxu0  ;;  %v2892_v63 = vpop.f32.mrf.mxu1  ;;  %v9228_v24 = vld [vmem:[#allocation120_spill] sm:$0xff] }
 0x2b5   : > { %v3321_v38 = vadd.f32 %v3320_v46, %v3151_v27  ;;  %v3152_v1 = vmul.f32 %v9218_v59, %v3024_v13  ;;  %v3027_v20 = vadd.f32 %v2890_v54, %v9219_v50  ;;  %v7987_v12 = vsel %vm936_vm6, 1.0, %v8694_v14  ;;  %v9227_v13 = vld [vmem:[#allocation212_spill] sm:$0xff]  ;;  %v9230_v59 = vld [vmem:[#allocation121_spill] sm:$0xff] }
 0x2b6   : > { %v3296_v61 = vrot.slane %v3295_v55, 4  ;;  %v3308_v31 = vadd.f32 %v3307_v60, %v3150_v32  ;;  %v3153_v4 = vmul.f32 %v9220_v40, %v3025_v35  ;;  %v3026_v21 = vadd.f32 %v2699_v57, %v9221_v30  ;;  %v2701_v46 = vpop.f32.mrf.mxu0  ;;  %v2894_v8 = vpop.f32.mrf.mxu1 }
 0x2b7   : > { %v3322_v11 = vrot.slane %v3321_v38, 4  ;;  %v3334_v17 = vadd.f32 %v3333_v47, %v3152_v1  ;;  %v3155_v37 = vmul.f32 %v9222_v18, %v3027_v20  ;;  %v3028_v26 = vadd.f32 %v2892_v63, %v9223_v29 }
 0x2b8   : > { %v3297_v52 = vadd.f32 %v3296_v61, %v3295_v55  ;;  %v3309_v49 = vrot.slane %v3308_v31, 4  ;;  %v3154_v0 = vmul.f32 %v7484_v45, %v3026_v21  ;;  %v3029_v25 = vadd.f32 %v2701_v46, %v9224_v5  ;;  %v2703_v27 = vpop.f32.mrf.mxu0  ;;  %v2896_v55 = vpop.f32.mrf.mxu1  ;;  %v9229_v45 = vld [vmem:[#allocation213_spill] sm:$0xff] }
 0x2b9   : > { %v3323_v60 = vadd.f32 %v3322_v11, %v3321_v38  ;;  %v3335_v22 = vrot.slane %v3334_v17, 4  ;;  %v3156_v62 = vmul.f32 %v9225_v33, %v3028_v26  ;;  %v3031_v3 = vadd.f32 %v2894_v8, %v9226_v9  ;;  %v9231_v61 = vld [vmem:[#allocation125_spill] sm:$0xff]  ;;  %v9232_v11 = vld [vmem:[#allocation214_spill] sm:$0xff]  ;;  %v9234_v33 = vld [vmem:[#allocation123_spill] sm:$0xff] }
 0x2ba   : > { %v3298_v47 = vrot.slane %v3297_v52, 2  ;;  %v3310_v10 = vadd.f32 %v3309_v49, %v3308_v31  ;;  %v3157_v16 = vmul.f32 %v9227_v13, %v3029_v25  ;;  %v3030_v32 = vadd.f32 %v2703_v27, %v9228_v24  ;;  %v2707_v38 = vpop.f32.mrf.mxu0  ;;  %v2900_v30 = vpop.f32.mrf.mxu1  ;;  %v9233_v49 = vld [vmem:[#allocation122_spill] sm:$0xff] }
 0x2bb   : > { %v3324_v15 = vrot.slane %v3323_v60, 2  ;;  %v3336_v35 = vadd.f32 %v3335_v22, %v3334_v17  ;;  %v3159_v54 = vmul.f32 %v9229_v45, %v3031_v3  ;;  %v3032_v1 = vadd.f32 %v2896_v55, %v9230_v59  ;;  %v9237_v45 = vld [vmem:[#allocation126_spill] sm:$0xff] }
 0x2bc   : > { %v3299_v50 = vadd.f32 %v3298_v47, %v3297_v52  ;;  %v3311_v20 = vrot.slane %v3310_v10, 2  ;;  %v3341_v57 = vadd.f32 %v3157_v16, %v3153_v4  ;;  %v3158_v40 = vmul.f32 %v9231_v61, %v3030_v32  ;;  %v2709_v29 = vpop.f32.mrf.mxu0  ;;  %v2902_v25 = vpop.f32.mrf.mxu1 }
 0x2bd   : > { %v3325_v21 = vadd.f32 %v3324_v15, %v3323_v60  ;;  %v3337_v31 = vrot.slane %v3336_v35, 2  ;;  %v3367_v63 = vadd.f32 %v3159_v54, %v3155_v37  ;;  %v3160_v18 = vmul.f32 %v9232_v11, %v3032_v1  ;;  %v9235_v37 = vld [vmem:[#allocation32_spill] sm:$0xff] }
 0x2be   : > { %v3300_v26 = vrot.slane %v3299_v50, 1  ;;  %v3312_v46 = vadd.f32 %v3311_v20, %v3310_v10  ;;  %v3354_v17 = vadd.f32 %v3158_v40, %v3154_v0  ;;  %v3033_v5 = vadd.f32 %v2707_v38, %v9233_v49  ;;  %v2711_v9 = vpop.f32.mrf.mxu0  ;;  %v2904_v13 = vpop.f32.mrf.mxu1  ;;  %v9236_v10 = vld [vmem:[#allocation124_spill] sm:$0xff]  ;;  %v9239_v20 = vld [vmem:[#allocation127_spill] sm:$0xff]  ;;  %v9243_v49 = vld [vmem:[#allocation129_spill] sm:$0xff] }
 0x2bf   : > { %v3326_v8 = vrot.slane %v3325_v21, 1  ;;  %v3338_v22 = vadd.f32 %v3337_v31, %v3336_v35  ;;  %v3380_v52 = vadd.f32 %v3160_v18, %v3156_v62  ;;  %v3035_v4 = vadd.f32 %v2900_v30, %v9234_v33  ;;  %v9241_v11 = vld [vmem:[#allocation128_spill] sm:$0xff]  ;;  %v9244_v33 = vld [vmem:[#allocation130_spill] sm:$0xff] }
 0x2c0   : > { %v3301_v3 = vadd.f32 %v3300_v26, %v3299_v50  ;;  %v3313_v27 = vrot.slane %v3312_v46, 1  ;;  %v3161_v60 = vmul.f32 %v7545_v7, %v3033_v5  ;;  %v3034_v47 = vadd.f32 %v2709_v29, %v9235_v37  ;;  %v2713_v55 = vpop.f32.mrf.mxu0  ;;  %v2906_v59 = vpop.f32.mrf.mxu1  ;;  %v9238_v7 = vld [vmem:[#allocation215_spill] sm:$0xff]  ;;  %v9242_v26 = vld [vmem:[#allocation29_spill] sm:$0xff] }
 0x2c1   : > { %v3327_v16 = vadd.f32 %v3326_v8, %v3325_v21  ;;  %v3339_v24 = vrot.slane %v3338_v22, 1  ;;  %v3163_v0 = vmul.f32 %v7548_v6, %v3035_v4  ;;  %v3036_v32 = vadd.f32 %v2902_v25, %v9236_v10  ;;  %v9240_v21 = vld [vmem:[#allocation11_spill] sm:$0xff] }
 0x2c2   : > { %v3314_v15 = vadd.f32 %v3313_v27, %v3312_v46  ;;  %v3342_v35 = vadd.f32 %v3341_v57, %v3161_v60  ;;  %v3162_v62 = vmul.f32 %v7558_v41, %v3034_v47  ;;  %v3037_v54 = vadd.f32 %v2711_v9, %v9237_v45  ;;  %v2717_v40 = vpop.f32.mrf.mxu0  ;;  %v2910_v57 = vpop.f32.mrf.mxu1  ;;  %v9249_v45 = vld [vmem:[#allocation133_spill] sm:$0xff] }
 0x2c3   : > { %v3340_v1 = vadd.f32 %v3339_v24, %v3338_v22  ;;  %v3368_v38 = vadd.f32 %v3367_v63, %v3163_v0  ;;  %v3164_v50 = vmul.f32 %v9238_v7, %v3036_v32  ;;  %v3039_v61 = vadd.f32 %v2904_v13, %v9239_v20  ;;  %v9245_v13 = vld [vmem:[#allocation157_spill] sm:$0xff]  ;;  %v9246_v24 = vld [vmem:[#allocation26_spill] sm:$0xff]  ;;  %v9252_v20 = vld [vmem:[#allocation159_spill] sm:$0xff] }
 0x2c4   : > { %v3413_v30 = vcombine.low %v3301_v3, %v3314_v15  ;;  %v3355_v6 = vadd.f32 %v3354_v17, %v3162_v62  ;;  %v3165_v31 = vmul.f32 %v9240_v21, %v3037_v54  ;;  %v3038_v18 = vadd.f32 %v2713_v55, %v9241_v11  ;;  %v2719_v5 = vpop.f32.mrf.mxu0  ;;  %v2912_v17 = vpop.f32.mrf.mxu1  ;;  %v9247_v55 = vld [vmem:[#allocation131_spill] sm:$0xff] }
 0x2c5   : > { %vm3425_vm10 = vcmask 1046534   ;;  %v3414_v41 = vcombine.low %v3327_v16, %v3340_v1  ;;  %v3381_v29 = vadd.f32 %v3380_v52, %v3164_v50  ;;  %v3167_v46 = vmul.f32 %v9242_v26, %v3039_v61 }
 0x2c6   : > { %v3040_v63 = vadd.f32 %v2906_v59, %v9243_v49  ;;  %v3422_v25 = vrot.slane %v3413_v30, 6  ;;  %v3343_v8 = vadd.f32 %v3342_v35, %v3165_v31  ;;  %v3166_v22 = vmul.f32 %v7608_v28, %v3038_v18  ;;  %v2721_v37 = vpop.f32.mrf.mxu0  ;;  %v2914_v0 = vpop.f32.mrf.mxu1  ;;  %v9250_v59 = vld [vmem:[#allocation25_spill] sm:$0xff]  ;;  %v9255_v18 = vld [vmem:[#allocation162_spill] sm:$0xff] }
 0x2c7   : > { %v3041_v4 = vadd.f32 %v2717_v40, %v9244_v33  ;;  %v3435_v9 = vrot.slane %v3414_v41, 6  ;;  %v3369_v3 = vadd.f32 %v3368_v38, %v3167_v46  ;;  %v3043_v60 = vadd.f32 %v2910_v57, %v7595_v56  ;;  %v9251_v38 = vld [vmem:[#allocation24_spill] sm:$0xff]  ;;  %v9253_v40 = vld [vmem:[#allocation22_spill] sm:$0xff] }
 0x2c8   : > { %v3168_v27 = vmul.f32 %v7613_v34, %v3040_v63  ;;  %vm938_vm7 = vcmp.eq.s32.totalorder %v7860_v19, %v6446_v44  ;;  %v3356_v52 = vadd.f32 %v3355_v6, %v3166_v22  ;;  %v3042_v16 = vadd.f32 %v2719_v5, %v9245_v13  ;;  %v9248_v34 = vld [vmem:[#allocation132_spill] sm:$0xff]  ;;  %v2723_v56 = vpop.f32.mrf.mxu0  ;;  %v2916_v7 = vpop.f32.mrf.mxu1  ;;  %v9254_v6 = vld [vmem:[#allocation158_spill] sm:$0xff]  ;;  %v9257_v63 = vld [vmem:[#allocation161_spill] sm:$0xff] }
 0x2c9   : > { %v3169_v47 = vmul.f32 %v7636_v43, %v3041_v4  ;;  %v3044_v28 = vadd.f32 %v2912_v17, %v9246_v24  ;;  %v3171_v32 = vmul.f32 %v7641_v48, %v3043_v60  ;;  %v3045_v15 = vadd.f32 %v2721_v37, %v9247_v55  ;;  %v9256_v41 = vld [vmem:[#allocation134_spill] sm:$0xff]  ;;  %v9260_v13 = vld [vmem:[#allocation164_spill] sm:$0xff] }
 0x2ca   : > { %v3382_v10 = vadd.f32 %v3381_v29, %v3168_v27  ;;  %v3047_v35 = vadd.f32 %v2914_v0, %v9248_v34  ;;  %v3170_v54 = vmul.f32 %v9249_v45, %v3042_v16  ;;  %v3046_v43 = vadd.f32 %v2723_v56, %v9251_v38  ;;  %v2727_v21 = vpop.f32.mrf.mxu0  ;;  %v2920_v26 = vpop.f32.mrf.mxu1 }
 0x2cb   : > { %v3344_v62 = vadd.f32 %v3343_v8, %v3169_v47  ;;  %v3172_v1 = vmul.f32 %v9250_v59, %v3044_v28  ;;  %v3370_v50 = vadd.f32 %v3369_v3, %v3171_v32  ;;  %v3173_v61 = vmul.f32 %v9252_v20, %v3045_v15  ;;  %v9258_v8 = vld [vmem:[#allocation160_spill] sm:$0xff]  ;;  %v9259_v3 = vld [vmem:[#allocation135_spill] sm:$0xff] }
 0x2cc   : > { %v3175_v30 = vmul.f32 %v9253_v40, %v3047_v35  ;;  %v3048_v48 = vadd.f32 %v2916_v7, %v9254_v6  ;;  %v3357_v31 = vadd.f32 %v3356_v52, %v3170_v54  ;;  %v3174_v57 = vmul.f32 %v9255_v18, %v3046_v43  ;;  %v2729_v33 = vpop.f32.mrf.mxu0  ;;  %v2922_v60 = vpop.f32.mrf.mxu1  ;;  %v9261_v32 = vld [vmem:[#allocation163_spill] sm:$0xff]  ;;  %v9262_v35 = vld [vmem:[#allocation165_spill] sm:$0xff] }
 0x2cd   : > { %v3383_v11 = vadd.f32 %v3382_v10, %v3172_v1  ;;  %v3049_v29 = vadd.f32 %v2727_v21, %v9256_v41  ;;  %v3345_v46 = vadd.f32 %v3344_v62, %v3173_v61  ;;  %v3051_v22 = vadd.f32 %v2920_v26, %v9258_v8  ;;  %v9263_v54 = vld [vmem:[#allocation23_spill] sm:$0xff] }
 0x2ce   : > { %v3371_v49 = vadd.f32 %v3370_v50, %v3175_v30  ;;  %v3176_v5 = vmul.f32 %v9257_v63, %v3048_v48  ;;  %v3358_v4 = vadd.f32 %v3357_v31, %v3174_v57  ;;  %v3050_v27 = vadd.f32 %v2729_v33, %v9259_v3  ;;  %v2731_v24 = vpop.f32.mrf.mxu0 }
 0x2cf   : > { %v3177_v17 = vmul.f32 %v7833_v39, %v3049_v29  ;;  %v3424_v37 = vsel %vm3423_vm11, %v3422_v25, %v7957_v23  ;;  %v3179_v47 = vmul.f32 %v7841_v36, %v3051_v22  ;;  %v3052_v16 = vadd.f32 %v2922_v60, %v9260_v13  ;;  %v2924_v39 = vpop.f32.mrf.mxu1 }
 0x2d0   : > { %v3384_v52 = vadd.f32 %v3383_v11, %v3176_v5  ;;  %v3426_v28 = vsel %vm3425_vm10, %v3422_v25, %v3424_v37  ;;  %v3178_v10 = vmul.f32 %v7874_v51, %v3050_v27  ;;  %v3053_v55 = vadd.f32 %v2731_v24, %v9261_v32  ;;  %v2733_v36 = vpop.f32.mrf.mxu0 }
 0x2d1   : > { %v3346_v0 = vadd.f32 %v3345_v46, %v3177_v17  ;;  %v3436_v15 = vsel %vm3423_vm11, %v3435_v9, %v7962_v42  ;;  %v3372_v34 = vadd.f32 %v3371_v49, %v3179_v47  ;;  %v3180_v23 = vmul.f32 %v7882_v2, %v3052_v16  ;;  %v2926_v1 = vpop.f32.mrf.mxu1  ;;  %v9264_v2 = vld [vmem:[#allocation166_spill] sm:$0xff] }
 0x2d2   : > { %v3055_v56 = vadd.f32 %v2924_v39, %v9262_v35  ;;  %v3437_v62 = vsel %vm3425_vm10, %v3435_v9, %v3436_v15  ;;  %v3359_v45 = vadd.f32 %v3358_v4, %v3178_v10  ;;  %v3181_v25 = vmul.f32 %v7974_v58, %v3053_v55 }
 0x2d3   : > { %v3054_v59 = vadd.f32 %v2733_v36, %v9263_v54  ;;  %v3786_v51 = vsel %vm938_vm7, 1.0, %v8694_v14  ;;  %v3385_v42 = vadd.f32 %v3384_v52, %v3180_v23  ;;  %v3056_v43 = vadd.f32 %v2926_v1, %v9264_v2 }
 0x2d4   : > { %v3183_v38 = vmul.f32 %v7982_v53, %v3055_v56  ;;  %v3347_v7 = vadd.f32 %v3346_v0, %v3181_v25  ;;  %vm3428_vm8 = vcmask 1043459   ;;  %vm3430_vm13 = vcmask 1047559  }
 0x2d5   : > { %v3182_v50 = vmul.f32 %v7987_v12, %v3054_v59  ;;  %v3184_v20 = vmul.f32 %v3786_v51, %v3056_v43 }
 0x2d6   : > { %v3373_v9 = vadd.f32 %v3372_v34, %v3183_v38  ;;  %v3348_v61 = vrot.slane %v3347_v7, 4 }
 0x2d7   : > { %v3360_v58 = vadd.f32 %v3359_v45, %v3182_v50  ;;  %v3386_v30 = vadd.f32 %v3385_v42, %v3184_v20 }
 0x2d8   : > { %v3374_v40 = vrot.slane %v3373_v9, 4  ;;  %v3349_v6 = vadd.f32 %v3348_v61, %v3347_v7 }
 0x2d9   : > { %v3361_v48 = vrot.slane %v3360_v58, 4  ;;  %v3387_v14 = vrot.slane %v3386_v30, 4 }
 0x2da   : > { %v3375_v44 = vadd.f32 %v3374_v40, %v3373_v9  ;;  %v3350_v19 = vrot.slane %v3349_v6, 2 }
 0x2db   : > { %v3362_v21 = vadd.f32 %v3361_v48, %v3360_v58  ;;  %v3388_v53 = vadd.f32 %v3387_v14, %v3386_v30 }
 0x2dc   : > { %v3376_v31 = vrot.slane %v3375_v44, 2  ;;  %v3351_v11 = vadd.f32 %v3350_v19, %v3349_v6 }
 0x2dd   : > { %v3363_v18 = vrot.slane %v3362_v21, 2  ;;  %v3389_v41 = vrot.slane %v3388_v53, 2 }
 0x2de   : > { %v3377_v57 = vadd.f32 %v3376_v31, %v3375_v44  ;;  %v3352_v12 = vrot.slane %v3351_v11, 1 }
 0x2df   : > { %v3364_v29 = vadd.f32 %v3363_v18, %v3362_v21  ;;  %v3390_v46 = vadd.f32 %v3389_v41, %v3388_v53 }
 0x2e0   : > { %v3378_v26 = vrot.slane %v3377_v57, 1  ;;  %v3353_v5 = vadd.f32 %v3352_v12, %v3351_v11 }
 0x2e1   : > { %v3365_v49 = vrot.slane %v3364_v29, 1  ;;  %v3391_v63 = vrot.slane %v3390_v46, 1 }
 0x2e2   : > { %v3379_v22 = vadd.f32 %v3378_v26, %v3377_v57 }
 0x2e3   : > { %v3366_v8 = vadd.f32 %v3365_v49, %v3364_v29  ;;  %v3392_v33 = vadd.f32 %v3391_v63, %v3390_v46 }
 0x2e5   : > { %v3415_v4 = vcombine.low %v3353_v5, %v3366_v8  ;;  %v3416_v17 = vcombine.low %v3379_v22, %v3392_v33 }
 0x2e7   : > { %v3427_v3 = vrot.slane %v3415_v4, 5  ;;  %v3438_v27 = vrot.slane %v3416_v17, 5 }
 0x2e9   : > { %v3429_v60 = vsel %vm3428_vm8, %v3427_v3, %v3426_v28  ;;  %v3439_v52 = vsel %vm3428_vm8, %v3438_v27, %v3437_v62 }
 0x2ea   : > { %v3431_v37 = vsel %vm3430_vm13, %v3427_v3, %v3429_v60  ;;  %v3440_v47 = vsel %vm3430_vm13, %v3438_v27, %v3439_v52 }
 0x2eb   : > { %3443 = vst [vmem:[%s191_s14] sm:$0xff] %v3431_v37  ;;  %3444 = vst [vmem:[%s191_s14 + $0x8] sm:$0xff] %v3440_v47 }
 0x2ec   : > { %4473 = shalt.err (!%p4470_p3)
}
 0x2ed   : > { %s4474_s6 = scalar_lea.hbm %s8067_s27, 256  ;;  %s4478_s9 = scalar_lea.hbm %s8112_s4, 512 }
 0x2ee   : > { %p4475_p4 = scmp.ne.s32.totalorder %s8067_s27, %s4474_s6  ;;  %p4479_p9 = scmp.lt.s32.totalorder %s8067_s27, %s8112_s4 }
 0x2ef   : > { %p4480_p10 = scmp.lt.s32.totalorder %s4478_s9, %s4474_s6 }
 0x2f0   : > { %p4476_p7 = pnand %p4475_p4, %p4588_p5 }
 0x2f1   : > { %p4481_p11 = por %p4480_p10, %p4479_p9 }
 0x2f2   : > { %p4477_p8 = pneg %p4476_p7 }
 0x2f4   : > { %p4482_p12 = pnand %p4481_p11, %p4477_p8 }
 0x2f6   : > { %4485 = shalt.err (!%p4482_p12)
}
 0x2f7   : > { %4275 = dma.vmem_to_hbm [thread:$0]  (%p4588_p5), %s8069_s20, 256, %s8067_s27, %s3446_s19  }
 0x2f8 PF: > { %p4281_p13 = scmp.ge.s32.totalorder %s4520_s18, 2  ;;  %s3472_s12 = sand.u32 1, %s4508_s15  }
 0x2f9   : > { %s3473_s13 = scalar_lea.sflag [#allocation3], %s3472_s12 }
 0x2fa   : > { %p4278_p0 = pnand %p4281_p13, %p4592_p6 }
 0x2fc   : > { %p4279_p1 = pneg %p4278_p0 }
 0x2fe   : > { %4503 = dma.done.wait (%p4279_p1), %s3473_s13, 256  }
 0x2ff   : > { %4505 = vsyncadd (%p4279_p1), %s3473_s13, 4294967040  ;;  %p14_p2 = scmp.ge.s32.totalorder %s4575_s21, 4   ;;  %s9265_s15 = smov %s4512_s16 }
 0x300   : > { %s9266_s16 = smov %s4516_s17  ;;  %s9267_s17 = smov %s4586_s24 }
 0x301   : > { %s9268_s18 = smov %s4575_s21  ;;  %16 = sbr.rel (!%p14_p2) target bundleno = 3 (0x3), region = 71 }
 0x306   :  { %3478 = vsyncpa [#allocation3], 1 }
 0x307   :  { %3480 = vsyncpa [#allocation3 + $0x1], 1 }

</bundles_post_ra>
